<compile_context>
chip_gen: v7x
topology: tpu7x:2x2x1
jax: 0.10.0
libtpu: 0.0.40
codegen_flags: <defaults>
</compile_context>

<pallas_src>
import jax
import jax.numpy as jnp
from jax.experimental import pallas as pl
from jax.experimental.pallas import tpu as pltpu

LEAKY_SLOPE = 0.2
BN_EPS = 1e-5
PATH_COUNT_IN_ROW = 15
ALL_PATHS_COUNT = PATH_COUNT_IN_ROW ** 2           # 225
CIRCLE_RADIUS_COUNT = 1
FILL_COLOR = 3                                      # WITH_OPACITY = False
BACKGROUND_COLOR_COUNT = 3
ALL_POINTS_PER_PATH = CIRCLE_RADIUS_COUNT + FILL_COLOR   # 4 (WITH_DEFORMATION = False)
OUT_DIM = BACKGROUND_COLOR_COUNT + ALL_PATHS_COUNT * ALL_POINTS_PER_PATH  # 903


def _round_up(x, m):
    return (x + m - 1) // m * m


def make_mlp_kernel(num_layers):
    """Fused MLP kernel.

    refs = (x, [w, gamma_beta] * (num_layers-1), w_last, b_last, out)
      x          : [gB, in_pad]  f32
      w          : [fi_pad, fo_pad] bf16  (no bias: canceled by train-mode BN)
      gamma_beta : [2, fo_pad]   f32  (row 0 = gamma, row 1 = beta)
      w_last     : [fi_pad, out_pad] bf16
      b_last     : [1, out_pad]  f32
    """

    def kernel(*refs):
        x_ref = refs[0]
        out_ref = refs[-1]
        h = x_ref[...]                               # fp32 activations
        idx = 1
        for _ in range(num_layers - 1):
            w = refs[idx][...]                       # bf16
            gb = refs[idx + 1][...]                  # f32 [2, fo_pad]
            idx += 2
            # Linear (bias dropped: exactly canceled by the BN mean subtraction).
            h = jnp.dot(h.astype(jnp.bfloat16), w,
                        preferred_element_type=jnp.float32)
            # BatchNorm1d in training mode: batch statistics, biased variance.
            # Affine fused into a single scale/shift per feature column.
            mean = jnp.mean(h, axis=0, keepdims=True)
            var = jnp.mean(jnp.square(h - mean), axis=0, keepdims=True)
            scale = gb[0:1, :] * jax.lax.rsqrt(var + BN_EPS)   # [1, fo_pad]
            shift = gb[1:2, :] - mean * scale                  # [1, fo_pad]
            h = h * scale + shift
            # LeakyReLU(0.2)
            h = jnp.where(h > 0, h, LEAKY_SLOPE * h)
        w = refs[idx][...]
        b = refs[idx + 1][...]
        h = jnp.dot(h.astype(jnp.bfloat16), w,
                    preferred_element_type=jnp.float32) + b
        out_ref[...] = jax.nn.sigmoid(h)

    return kernel


def mlp_pallas(x, params, num_layers, group_batch):
    """x: [B_pad, in_pad] f32 with B_pad = num_groups * group_batch.

    Each group of `group_batch` rows is processed as one independent forward
    call of the original module (BN statistics span exactly that group). The
    weight/gamma/beta index_maps are constant, so the weights are DMA'd once
    per launch and stay resident across grid steps; the group axis is
    "parallel" so v7x can split groups across its two TensorCores.
    """
    B, in_pad = x.shape
    assert B % group_batch == 0
    num_groups = B // group_batch
    out_pad = params[-2].shape[1]  # padded out dim of final linear weight
    kernel = make_mlp_kernel(num_layers)

    in_specs = [pl.BlockSpec((group_batch, in_pad), lambda g: (g, 0))]
    for p in params:
        # Constant block index -> parameter stays resident across grid steps.
        in_specs.append(pl.BlockSpec(p.shape, lambda g: (0, 0)))
    out_specs = pl.BlockSpec((group_batch, out_pad), lambda g: (g, 0))

    # NOTE: total bf16 weight footprint is ~2 MB (x2 for default double
    # buffering), well inside the default scoped VMEM limit on all chips, so
    # no vmem_limit_bytes override and no pl.Buffered(1) is needed here.
    return pl.pallas_call(
        kernel,
        out_shape=jax.ShapeDtypeStruct((B, out_pad), jnp.float32),
        grid=(num_groups,),
        in_specs=in_specs,
        out_specs=out_specs,
        compiler_params=pltpu.CompilerParams(
            dimension_semantics=("parallel",),
        ),
    )(x, *params)


def init_params(key, z_dim, audio_embedding_dim, num_layers):
    """Deterministic parameter init reproducing the module's layer-size schedule.
    has_emotions is False (Emotion enum is external). Weights ~ U(-1/sqrt(fan_in),
    +1/sqrt(fan_in)) like PyTorch nn.Linear; BN gamma=1, beta=0. Hidden-layer
    Linear biases are omitted (train-mode BN cancels them exactly)."""
    in_features = z_dim + audio_embedding_dim
    out_features = OUT_DIM
    feature_step = (in_features - out_features) // num_layers

    layer_dims = []
    fin = in_features
    for _ in range(num_layers - 1):
        fout = fin - feature_step
        layer_dims.append((fin, fout, True))   # Linear + BN + LeakyReLU
        fin = fout
    layer_dims.append((fin, OUT_DIM, False))   # final Linear + Sigmoid

    params = []
    for (fi, fo, has_bn) in layer_dims:
        key, kw, kb = jax.random.split(key, 3)
        bound = 1.0 / (fi ** 0.5)
        w = jax.random.uniform(kw, (fi, fo), jnp.float32, -bound, bound)
        fi_p, fo_p = _round_up(fi, 128), _round_up(fo, 128)
        w_p = jnp.zeros((fi_p, fo_p), jnp.float32).at[:fi, :fo].set(w)
        params.append(w_p.astype(jnp.bfloat16))     # bf16 weights: half the DMA bytes
        if has_bn:
            # Packed gamma/beta: row 0 = gamma (1 on real features, 0 on padding),
            # row 1 = beta (0). Bias of the preceding Linear is dropped.
            gb = jnp.zeros((2, fo_p), jnp.float32).at[0, :fo].set(1.0)
            params.append(gb)
        else:
            b = jax.random.uniform(kb, (fo,), jnp.float32, -bound, bound)
            b_p = jnp.zeros((1, fo_p), jnp.float32).at[0, :fo].set(b)
            params.append(b_p)
    return params, in_features


def generator_forward(noise, audio_embedding, emotions, params, num_layers,
                      in_features, canvas_size, group_batch=None):
    """group_batch: batch size of one original-module forward call. The total
    batch may stack several independent calls (num_groups = B // group_batch);
    BN statistics span each group separately, matching per-call semantics.
    Default (None) = whole batch is a single group (exact single-call match)."""
    # Input concat (plain-JAX glue), then pad to TPU-friendly shape.
    if emotions is not None:
        inp = jnp.concatenate([noise, audio_embedding, emotions], axis=1)
    else:
        inp = jnp.concatenate([noise, audio_embedding], axis=1)
    B = inp.shape[0]
    if group_batch is None:
        group_batch = B
    assert B % group_batch == 0, "batch must be a multiple of group_batch"
    assert group_batch % 8 == 0, \
        "per-group batch must be a multiple of 8 (BN batch stats + sublane tiling)"
    in_pad = _round_up(in_features, 128)
    x = jnp.zeros((B, in_pad), jnp.float32).at[:, :in_features].set(inp)

    out = mlp_pallas(x, params, num_layers, group_batch)
    shape_params = out[:, :OUT_DIM]                      # [B, 903], sigmoid outputs

    # --- geometric parameter extraction (matches the per-path loop, vectorized) ---
    background_color = shape_params[:, :BACKGROUND_COLOR_COUNT]          # [B, 3]
    per_path = shape_params[:, BACKGROUND_COLOR_COUNT:].reshape(
        B, ALL_PATHS_COUNT, ALL_POINTS_PER_PATH)
    base_radius = canvas_size / (PATH_COUNT_IN_ROW * 2)
    radii = per_path[:, :, 0] * base_radius * 2.5                         # [B, 225]
    fill_rgb = per_path[:, :, 1:1 + FILL_COLOR]                           # [B, 225, 3]
    fill_color = jnp.concatenate(
        [fill_rgb, jnp.ones_like(fill_rgb[..., :1])], axis=-1)           # [B, 225, 4]
    pidx = jnp.arange(ALL_PATHS_COUNT)
    center_x = (pidx % PATH_COUNT_IN_ROW) * (2.0 * base_radius) + base_radius
    center_y = (pidx // PATH_COUNT_IN_ROW) * (2.0 * base_radius) + base_radius
    centers = jnp.stack([center_x, center_y], axis=-1).astype(jnp.float32)  # [225, 2]

    # TODO(synk): create_circle_control_points + diffvg rasterization
    # (as_diffvg_render / as_protosvg) are external rendering code with no
    # Pallas equivalent; returning the SVG shape parameters instead of images.
    return shape_params, background_color, radii, fill_color, centers


if __name__ == "__main__":
    key = jax.random.PRNGKey(0)
    z_dim = 16
    audio_embedding_dim = 32
    num_layers = 3
    canvas_size = 16
    group_batch = 8      # batch of one original-module forward call
    num_groups = 4       # 4 independent forward calls fused into one launch
    batch = group_batch * num_groups

    kp, kn, ka = jax.random.split(key, 3)
    params, in_features = init_params(kp, z_dim, audio_embedding_dim, num_layers)
    noise = jax.random.normal(kn, (batch, z_dim), jnp.float32)
    audio = jax.random.normal(ka, (batch, audio_embedding_dim), jnp.float32)

    outs = generator_forward(noise, audio, None, params, num_layers,
                             in_features, canvas_size, group_batch=group_batch)
    outs = jax.block_until_ready(outs)

    shape_params = outs[0]
    assert shape_params.shape == (batch, OUT_DIM)
    assert not bool(jnp.any(jnp.isnan(shape_params)))
    assert bool(jnp.all(shape_params >= 0.0)) and bool(jnp.all(shape_params <= 1.0))
    print("KERNEL_OK")
</pallas_src>

<mosaic_0001>
module attributes {stable_mosaic.version = 11 : i64} {
  func.func @kernel(%arg0: i32, %arg1: memref<8x128xf32, #tpu.memory_space<vmem>>, %arg2: memref<128x384xbf16, #tpu.memory_space<vmem>>, %arg3: memref<2x384xf32, #tpu.memory_space<vmem>>, %arg4: memref<384x640xbf16, #tpu.memory_space<vmem>>, %arg5: memref<2x640xf32, #tpu.memory_space<vmem>>, %arg6: memref<640x1024xbf16, #tpu.memory_space<vmem>>, %arg7: memref<1x1024xf32, #tpu.memory_space<vmem>>, %arg8: memref<8x1024xf32, #tpu.memory_space<vmem>>) attributes {dimension_semantics = [#tpu.dimension_semantics<parallel>], iteration_bounds = array<i64: 4>, scalar_prefetch = 0 : i64, scratch_operands = 0 : i64, tpu.core_type = #tpu.core_type<tc>, window_params = [{transform_indices = @transform_0, window_bounds = array<i64: 8, 128>}, {pipeline_mode = #tpu.pipeline_mode<synchronous>, transform_indices = @transform_1, window_bounds = array<i64: 128, 384>}, {pipeline_mode = #tpu.pipeline_mode<synchronous>, transform_indices = @transform_2, window_bounds = array<i64: 2, 384>}, {pipeline_mode = #tpu.pipeline_mode<synchronous>, transform_indices = @transform_3, window_bounds = array<i64: 384, 640>}, {pipeline_mode = #tpu.pipeline_mode<synchronous>, transform_indices = @transform_4, window_bounds = array<i64: 2, 640>}, {pipeline_mode = #tpu.pipeline_mode<synchronous>, transform_indices = @transform_5, window_bounds = array<i64: 640, 1024>}, {pipeline_mode = #tpu.pipeline_mode<synchronous>, transform_indices = @transform_6, window_bounds = array<i64: 1, 1024>}, {transform_indices = @transform_7, window_bounds = array<i64: 8, 1024>}]} {
    %c0 = arith.constant 0 : index
    %c0_0 = arith.constant 0 : index
    %0 = vector.load %arg1[%c0, %c0_0] : memref<8x128xf32, #tpu.memory_space<vmem>>, vector<8x128xf32>
    %c0_1 = arith.constant 0 : index
    %c0_2 = arith.constant 0 : index
    %1 = vector.load %arg2[%c0_1, %c0_2] : memref<128x384xbf16, #tpu.memory_space<vmem>>, vector<128x384xbf16>
    %c0_3 = arith.constant 0 : index
    %c0_4 = arith.constant 0 : index
    %2 = vector.load %arg3[%c0_3, %c0_4] : memref<2x384xf32, #tpu.memory_space<vmem>>, vector<2x384xf32>
    %3 = arith.truncf %0 : vector<8x128xf32> to vector<8x128xbf16>
    %cst = arith.constant dense<0.000000e+00> : vector<8x384xf32>
    %4 = tpu.matmul %3, %1, %cst {dimension_numbers = #tpu.dot_dimension_numbers<[1], [0], [0], [1], [0, 0, 1, 1], [], []>} : vector<8x128xbf16>, vector<128x384xbf16>, vector<8x384xf32> -> vector<8x384xf32>
    %cst_5 = arith.constant dense<0.000000e+00> : vector<384xf32>
    %5 = vector.multi_reduction <add>, %4, %cst_5 [0] : vector<8x384xf32> to vector<384xf32>
    %6 = vector.shape_cast %5 : vector<384xf32> to vector<1x384xf32>
    %cst_6 = arith.constant 8.000000e+00 : f32
    %7 = vector.broadcast %cst_6 : f32 to vector<1x384xf32>
    %8 = arith.divf %6, %7 : vector<1x384xf32>
    %9 = vector.broadcast %8 : vector<1x384xf32> to vector<8x384xf32>
    %10 = arith.subf %4, %9 : vector<8x384xf32>
    %11 = arith.mulf %10, %10 : vector<8x384xf32>
    %cst_7 = arith.constant dense<0.000000e+00> : vector<384xf32>
    %12 = vector.multi_reduction <add>, %11, %cst_7 [0] : vector<8x384xf32> to vector<384xf32>
    %13 = vector.shape_cast %12 : vector<384xf32> to vector<1x384xf32>
    %cst_8 = arith.constant 8.000000e+00 : f32
    %14 = vector.broadcast %cst_8 : f32 to vector<1x384xf32>
    %15 = arith.divf %13, %14 : vector<1x384xf32>
    %16 = vector.extract_strided_slice %2 {offsets = [0, 0], sizes = [1, 384], strides = [1, 1]} : vector<2x384xf32> to vector<1x384xf32>
    %cst_9 = arith.constant 9.99999974E-6 : f32
    %17 = vector.broadcast %cst_9 : f32 to vector<1x384xf32>
    %18 = arith.addf %15, %17 : vector<1x384xf32>
    %19 = math.rsqrt %18 : vector<1x384xf32>
    %20 = arith.mulf %16, %19 : vector<1x384xf32>
    %21 = vector.extract_strided_slice %2 {offsets = [1, 0], sizes = [1, 384], strides = [1, 1]} : vector<2x384xf32> to vector<1x384xf32>
    %22 = arith.mulf %8, %20 : vector<1x384xf32>
    %23 = arith.subf %21, %22 : vector<1x384xf32>
    %24 = vector.broadcast %20 : vector<1x384xf32> to vector<8x384xf32>
    %25 = arith.mulf %4, %24 : vector<8x384xf32>
    %26 = vector.broadcast %23 : vector<1x384xf32> to vector<8x384xf32>
    %27 = arith.addf %25, %26 : vector<8x384xf32>
    %cst_10 = arith.constant 0.000000e+00 : f32
    %28 = vector.broadcast %cst_10 : f32 to vector<8x384xf32>
    %29 = arith.cmpf ogt, %27, %28 : vector<8x384xf32>
    %cst_11 = arith.constant 2.000000e-01 : f32
    %30 = vector.broadcast %cst_11 : f32 to vector<8x384xf32>
    %31 = arith.mulf %30, %27 : vector<8x384xf32>
    %32 = arith.select %29, %27, %31 : vector<8x384xi1>, vector<8x384xf32>
    %c0_12 = arith.constant 0 : index
    %c0_13 = arith.constant 0 : index
    %33 = vector.load %arg4[%c0_12, %c0_13] : memref<384x640xbf16, #tpu.memory_space<vmem>>, vector<384x640xbf16>
    %c0_14 = arith.constant 0 : index
    %c0_15 = arith.constant 0 : index
    %34 = vector.load %arg5[%c0_14, %c0_15] : memref<2x640xf32, #tpu.memory_space<vmem>>, vector<2x640xf32>
    %35 = arith.truncf %32 : vector<8x384xf32> to vector<8x384xbf16>
    %cst_16 = arith.constant dense<0.000000e+00> : vector<8x640xf32>
    %36 = tpu.matmul %35, %33, %cst_16 {dimension_numbers = #tpu.dot_dimension_numbers<[1], [0], [0], [1], [0, 0, 1, 1], [], []>} : vector<8x384xbf16>, vector<384x640xbf16>, vector<8x640xf32> -> vector<8x640xf32>
    %cst_17 = arith.constant dense<0.000000e+00> : vector<640xf32>
    %37 = vector.multi_reduction <add>, %36, %cst_17 [0] : vector<8x640xf32> to vector<640xf32>
    %38 = vector.shape_cast %37 : vector<640xf32> to vector<1x640xf32>
    %cst_18 = arith.constant 8.000000e+00 : f32
    %39 = vector.broadcast %cst_18 : f32 to vector<1x640xf32>
    %40 = arith.divf %38, %39 : vector<1x640xf32>
    %41 = vector.broadcast %40 : vector<1x640xf32> to vector<8x640xf32>
    %42 = arith.subf %36, %41 : vector<8x640xf32>
    %43 = arith.mulf %42, %42 : vector<8x640xf32>
    %cst_19 = arith.constant dense<0.000000e+00> : vector<640xf32>
    %44 = vector.multi_reduction <add>, %43, %cst_19 [0] : vector<8x640xf32> to vector<640xf32>
    %45 = vector.shape_cast %44 : vector<640xf32> to vector<1x640xf32>
    %cst_20 = arith.constant 8.000000e+00 : f32
    %46 = vector.broadcast %cst_20 : f32 to vector<1x640xf32>
    %47 = arith.divf %45, %46 : vector<1x640xf32>
    %48 = vector.extract_strided_slice %34 {offsets = [0, 0], sizes = [1, 640], strides = [1, 1]} : vector<2x640xf32> to vector<1x640xf32>
    %cst_21 = arith.constant 9.99999974E-6 : f32
    %49 = vector.broadcast %cst_21 : f32 to vector<1x640xf32>
    %50 = arith.addf %47, %49 : vector<1x640xf32>
    %51 = math.rsqrt %50 : vector<1x640xf32>
    %52 = arith.mulf %48, %51 : vector<1x640xf32>
    %53 = vector.extract_strided_slice %34 {offsets = [1, 0], sizes = [1, 640], strides = [1, 1]} : vector<2x640xf32> to vector<1x640xf32>
    %54 = arith.mulf %40, %52 : vector<1x640xf32>
    %55 = arith.subf %53, %54 : vector<1x640xf32>
    %56 = vector.broadcast %52 : vector<1x640xf32> to vector<8x640xf32>
    %57 = arith.mulf %36, %56 : vector<8x640xf32>
    %58 = vector.broadcast %55 : vector<1x640xf32> to vector<8x640xf32>
    %59 = arith.addf %57, %58 : vector<8x640xf32>
    %cst_22 = arith.constant 0.000000e+00 : f32
    %60 = vector.broadcast %cst_22 : f32 to vector<8x640xf32>
    %61 = arith.cmpf ogt, %59, %60 : vector<8x640xf32>
    %cst_23 = arith.constant 2.000000e-01 : f32
    %62 = vector.broadcast %cst_23 : f32 to vector<8x640xf32>
    %63 = arith.mulf %62, %59 : vector<8x640xf32>
    %64 = arith.select %61, %59, %63 : vector<8x640xi1>, vector<8x640xf32>
    %c0_24 = arith.constant 0 : index
    %c0_25 = arith.constant 0 : index
    %65 = vector.load %arg6[%c0_24, %c0_25] : memref<640x1024xbf16, #tpu.memory_space<vmem>>, vector<640x1024xbf16>
    %c0_26 = arith.constant 0 : index
    %c0_27 = arith.constant 0 : index
    %66 = vector.load %arg7[%c0_26, %c0_27] : memref<1x1024xf32, #tpu.memory_space<vmem>>, vector<1x1024xf32>
    %67 = arith.truncf %64 : vector<8x640xf32> to vector<8x640xbf16>
    %cst_28 = arith.constant dense<0.000000e+00> : vector<8x1024xf32>
    %68 = tpu.matmul %67, %65, %cst_28 {dimension_numbers = #tpu.dot_dimension_numbers<[1], [0], [0], [1], [0, 0, 1, 1], [], []>} : vector<8x640xbf16>, vector<640x1024xbf16>, vector<8x1024xf32> -> vector<8x1024xf32>
    %69 = vector.broadcast %66 : vector<1x1024xf32> to vector<8x1024xf32>
    %70 = arith.addf %68, %69 : vector<8x1024xf32>
    %71 = arith.negf %70 : vector<8x1024xf32>
    %72 = math.exp %71 : vector<8x1024xf32>
    %cst_29 = arith.constant 1.000000e+00 : f32
    %73 = vector.broadcast %cst_29 : f32 to vector<8x1024xf32>
    %74 = arith.addf %73, %72 : vector<8x1024xf32>
    %75 = arith.divf %73, %74 : vector<8x1024xf32>
    %c0_30 = arith.constant 0 : index
    %c0_31 = arith.constant 0 : index
    %76 = vector.load %arg8[%c0_30, %c0_31] : memref<8x1024xf32, #tpu.memory_space<vmem>>, vector<8x1024xf32>
    tpu.vector_store %arg8[%c0_30, %c0_31], %75 {strides = array<i32>} : memref<8x1024xf32, #tpu.memory_space<vmem>>, vector<8x1024xf32>,
    return
  }
  func.func @transform_0(%arg0: i32) -> (i32, i32) {
    %c0_i32 = arith.constant 0 : i32
    %c0_i32_0 = arith.constant 0 : i32
    return %arg0, %c0_i32 : i32, i32
  }
  func.func @transform_1(%arg0: i32) -> (i32, i32) {
    %c0_i32 = arith.constant 0 : i32
    %c0_i32_0 = arith.constant 0 : i32
    %c0_i32_1 = arith.constant 0 : i32
    return %c0_i32, %c0_i32_0 : i32, i32
  }
  func.func @transform_2(%arg0: i32) -> (i32, i32) {
    %c0_i32 = arith.constant 0 : i32
    %c0_i32_0 = arith.constant 0 : i32
    %c0_i32_1 = arith.constant 0 : i32
    return %c0_i32, %c0_i32_0 : i32, i32
  }
  func.func @transform_3(%arg0: i32) -> (i32, i32) {
    %c0_i32 = arith.constant 0 : i32
    %c0_i32_0 = arith.constant 0 : i32
    %c0_i32_1 = arith.constant 0 : i32
    return %c0_i32, %c0_i32_0 : i32, i32
  }
  func.func @transform_4(%arg0: i32) -> (i32, i32) {
    %c0_i32 = arith.constant 0 : i32
    %c0_i32_0 = arith.constant 0 : i32
    %c0_i32_1 = arith.constant 0 : i32
    return %c0_i32, %c0_i32_0 : i32, i32
  }
  func.func @transform_5(%arg0: i32) -> (i32, i32) {
    %c0_i32 = arith.constant 0 : i32
    %c0_i32_0 = arith.constant 0 : i32
    %c0_i32_1 = arith.constant 0 : i32
    return %c0_i32, %c0_i32_0 : i32, i32
  }
  func.func @transform_6(%arg0: i32) -> (i32, i32) {
    %c0_i32 = arith.constant 0 : i32
    %c0_i32_0 = arith.constant 0 : i32
    %c0_i32_1 = arith.constant 0 : i32
    return %c0_i32, %c0_i32_0 : i32, i32
  }
  func.func @transform_7(%arg0: i32) -> (i32, i32) {
    %c0_i32 = arith.constant 0 : i32
    %c0_i32_0 = arith.constant 0 : i32
    return %arg0, %c0_i32 : i32, i32
  }
}

</mosaic_0001>

<bundles_post_ra>
// kernel: tpu_custom_call.1
= control target key start
LH: loop header
LB: loop body
LE: loop exit
PB: predicated region body
PF: predicated region fallthrough
CT: control target
= control target key end

     0   :  { %s6658_s0 = inlined_call_operand.hbm [shape: f32[32,128], index: 0, kind: input, shape index: {}]   ;;  %s6659_s1 = inlined_call_operand.hbm [shape: bf16[128,384], index: 1, kind: input, shape index: {}]   ;;  %s6660_s2 = inlined_call_operand.hbm [shape: f32[2,384], index: 2, kind: input, shape index: {}]   ;;  %s6661_s3 = inlined_call_operand.hbm [shape: bf16[384,640], index: 3, kind: input, shape index: {}]   ;;  %s6662_s4 = inlined_call_operand.hbm [shape: f32[2,640], index: 4, kind: input, shape index: {}]   ;;  %s6663_s5 = inlined_call_operand.hbm [shape: bf16[640,1024], index: 5, kind: input, shape index: {}]   ;;  %s6664_s6 = inlined_call_operand.hbm [shape: f32[1,1024], index: 6, kind: input, shape index: {}]   ;;  %s6665_s7 = inlined_call_operand.hbm [shape: f32[32,1024], index: 7, kind: output, shape index: {}]  }
   0x1   :  { %6669 = sst [smem:[#allocation20_spill]] %s6659_s1 }
   0x2   :  { %12 = vsyncpa [#allocation3], 0 }
   0x3   :  { %14 = vsyncpa [#allocation3 + $0x1], 0 }
   0x4   :  { %15 = vsyncpa [#allocation6], 0 }
   0x5   :  { %16 = vsyncpa [#allocation9], 0 }
   0x6   :  { %17 = vsyncpa [#allocation12], 0 }
   0x7   :  { %18 = vsyncpa [#allocation4], 0 }
   0x8   :  { %20 = vsyncpa [#allocation4 + $0x1], 0  ;;  %s6075_s24 = smov 0   ;;  %s6077_s25 = smov 0  }
   0x9   :  { %s6079_s26 = smov 0   ;;  %s6081_s27 = smov 0  }
   0xa LB: > { %s6017_s28 = smov [#allocation5]   ;;  %s6096_s30 = sadd.s32 4294967295, %s6015_s27   ;;  %s6015_s27 = sphi %s6081_s27, %s6692_s27   ;;  %s6011_s26 = sphi %s6079_s26, %s6691_s26   ;;  %s6007_s25 = sphi %s6077_s25, %s6690_s25   ;;  %s6003_s24 = sphi %s6075_s24, %s6689_s24  }
   0xb   : > { %s221_s29 = sshll.u32 %s6017_s28, 4  ;;  %p4749_p0 = scmp.ge.s32.totalorder %s6015_s27, 1  ;;  %s6101_s29 = int_to_ptr.vmem [resolvable:$true] %s221_s29 }
   0xc   : > { %p6666_p1 = scmp.eq.s32.totalorder %s6096_s30, 0  ;;  %p209_p2 = scmp.lt.s32.totalorder %s6015_s27, 5 }
   0xd   : > { %s6018_s9 = smov [#allocation8]   ;;  %s6019_s12 = smov [#allocation11]  }
   0xe   : > { %p6103_p3 = pnand %p4749_p0, %p209_p2  ;;  %s245_s10 = sshll.u32 %s6018_s9, 4  ;;  %s6115_s10 = int_to_ptr.vmem [resolvable:$true] %s245_s10 }
   0xf   : > { %s6117_s13 = sshll.u32 %s6019_s12, 4  ;;  %s6672_s1 = sld [smem:[#allocation20_spill]]  ;;  %s270_s13 = int_to_ptr.vmem [resolvable:$true] %s6117_s13 }
  0x10   : > { %s6670_s8 = scalar_select %p6103_p3, 1, 0 }
  0x11   : > { %p5402_p4 = pneg %p6103_p3 }
  0x13   : > { %p6111_p5 = pnand %p5402_p4, %p6666_p1 }
  0x15   : > { %s5739_s16 = scalar_lea.hbm %s6672_s1, 3072  ;;  %p6127_p7 = pneg %p6111_p5 }
  0x16   : > { %p5740_p6 = scmp.ne.s32.totalorder %s6672_s1, %s5739_s16  ;;  %p5746_p10 = scmp.lt.u32.totalorder %s5739_s16, %s6672_s1 }
  0x18   : > { %p5742_p8 = pnand %p6127_p7, %p5740_p6 }
  0x1a   : > { %p5743_p9 = pneg %p5742_p8 }
  0x1c   : > { %p5748_p11 = pnand %p5746_p10, %p5743_p9 }
  0x1e   : > { %5751 = shalt.err (!%p5748_p11)
}
  0x1f   : > { %s5752_s22 = scalar_lea.vmem %s6101_s29, 3072  ;;  %p5760_p2 = scmp.lt.s32.totalorder %s6101_s29, %s6101_s29 }
  0x20   : > { %p5753_p12 = scmp.ne.s32.totalorder %s6101_s29, %s5752_s22  ;;  %p5761_p4 = scmp.lt.s32.totalorder %s5752_s22, %s5752_s22 }
  0x22   : > { %p5755_p13 = pnand %p5753_p12, %p6127_p7  ;;  %p5762_p6 = por %p5761_p4, %p5760_p2 }
  0x24   : > { %p5756_p0 = pneg %p5755_p13 }
  0x26   : > { %p5763_p8 = pnand %p5762_p6, %p5756_p0 }
  0x28   : > { %5766 = shalt.err (!%p5763_p8)
}
  0x29   : > { %s6020_s23 = smov 192   ;;  %s6021_s28 = smov 12  }
  0x2a   : > { %5405 = dma.hbm_to_vmem [thread:$0]  (!%p6111_p5), %s6672_s1, 3072, %s6101_s29, [#allocation6], %s6020_s23, %s6020_s23, %s6021_s28  }
  0x2b   : > { %s5767_s16 = scalar_lea.hbm %s6661_s3, 15360 }
  0x2c   : > { %p5768_p9 = scmp.ne.s32.totalorder %s6661_s3, %s5767_s16  ;;  %p5774_p12 = scmp.lt.u32.totalorder %s5767_s16, %s6661_s3 }
  0x2e   : > { %p5770_p10 = pnand %p5768_p9, %p6127_p7 }
  0x30   : > { %p5771_p11 = pneg %p5770_p10 }
  0x32   : > { %p5776_p13 = pnand %p5774_p12, %p5771_p11 }
  0x34   : > { %5779 = shalt.err (!%p5776_p13)
}
  0x35   : > { %s5780_s29 = scalar_lea.vmem %s6115_s10, 15360  ;;  %p5788_p6 = scmp.lt.s32.totalorder %s6115_s10, %s6115_s10 }
  0x36   : > { %p5781_p0 = scmp.ne.s32.totalorder %s6115_s10, %s5780_s29  ;;  %p5789_p8 = scmp.lt.s32.totalorder %s5780_s29, %s5780_s29 }
  0x38   : > { %p5783_p2 = pnand %p5781_p0, %p6127_p7  ;;  %p5790_p9 = por %p5789_p8, %p5788_p6 }
  0x3a   : > { %p5784_p4 = pneg %p5783_p2 }
  0x3c   : > { %p5791_p10 = pnand %p5790_p9, %p5784_p4 }
  0x3e   : > { %5794 = shalt.err (!%p5791_p10)
}
  0x3f   : > { %s6022_s22 = smov 320   ;;  %s6023_s23 = smov 20  }
  0x40   : > { %5411 = dma.hbm_to_vmem [thread:$0]  (!%p6111_p5), %s6661_s3, 15360, %s6115_s10, [#allocation9], %s6022_s22, %s6022_s22, %s6023_s23  }
  0x41   : > { %s5795_s15 = scalar_lea.hbm %s6663_s5, 40960 }
  0x42   : > { %p5796_p11 = scmp.ne.s32.totalorder %s6663_s5, %s5795_s15  ;;  %p5802_p0 = scmp.lt.u32.totalorder %s5795_s15, %s6663_s5 }
  0x44   : > { %p5798_p12 = pnand %p5796_p11, %p6127_p7 }
  0x46   : > { %p5799_p13 = pneg %p5798_p12 }
  0x48   : > { %p5804_p2 = pnand %p5802_p0, %p5799_p13 }
  0x4a   : > { %5807 = shalt.err (!%p5804_p2)
}
  0x4b   : > { %s5808_s21 = scalar_lea.vmem %s270_s13, 40960  ;;  %p5816_p9 = scmp.lt.s32.totalorder %s270_s13, %s270_s13 }
  0x4c   : > { %p5809_p4 = scmp.ne.s32.totalorder %s270_s13, %s5808_s21  ;;  %p5817_p10 = scmp.lt.s32.totalorder %s5808_s21, %s5808_s21 }
  0x4e   : > { %p5811_p6 = pnand %p5809_p4, %p6127_p7  ;;  %p5818_p1 = por %p5817_p10, %p5816_p9 }
  0x50   : > { %p5812_p8 = pneg %p5811_p6 }
  0x52   : > { %p5819_p3 = pnand %p5818_p1, %p5812_p8 }
  0x54   : > { %5822 = shalt.err (!%p5819_p3)
}
  0x55   : > { %s6024_s10 = smov 512   ;;  %s6025_s29 = smov 32  }
  0x56   : > { %5417 = dma.hbm_to_vmem [thread:$0]  (!%p6111_p5), %s6663_s5, 40960, %s270_s13, [#allocation12], %s6024_s10, %s6024_s10, %s6025_s29  }
  0x57   : > { %s6026_s28 = smov [#allocation7]   ;;  %s6027_s12 = smov [#allocation10]  }
  0x58   : > { %s235_s9 = sshll.u32 %s6026_s28, 4  ;;  %s259_s14 = sshll.u32 %s6027_s12, 4  ;;  %s236_s9 = int_to_ptr.vmem [resolvable:$true] %s235_s9  ;;  %s260_s14 = int_to_ptr.vmem [resolvable:$true] %s259_s14 }
  0x59   : > { %s5823_s17 = scalar_lea.hbm %s6660_s2, 96 }
  0x5a   : > { %p5824_p1 = scmp.ne.s32.totalorder %s6660_s2, %s5823_s17  ;;  %p5830_p12 = scmp.lt.u32.totalorder %s5823_s17, %s6660_s2 }
  0x5c   : > { %p5826_p3 = pnand %p5824_p1, %p6127_p7 }
  0x5e   : > { %p5827_p11 = pneg %p5826_p3 }
  0x60   : > { %p5832_p13 = pnand %p5830_p12, %p5827_p11 }
  0x62   : > { %5835 = shalt.err (!%p5832_p13)
}
  0x63   : > { %s5836_s13 = scalar_lea.vmem %s236_s9, 96  ;;  %p5844_p6 = scmp.lt.s32.totalorder %s236_s9, %s236_s9 }
  0x64   : > { %p5837_p0 = scmp.ne.s32.totalorder %s236_s9, %s5836_s13  ;;  %p5845_p8 = scmp.lt.s32.totalorder %s5836_s13, %s5836_s13 }
  0x66   : > { %p5839_p2 = pnand %p5837_p0, %p6127_p7  ;;  %p5846_p9 = por %p5845_p8, %p5844_p6 }
  0x68   : > { %p5840_p4 = pneg %p5839_p2 }
  0x6a   : > { %p5847_p10 = pnand %p5846_p9, %p5840_p4 }
  0x6c   : > { %5850 = shalt.err (!%p5847_p10)
}
  0x6d   : > { %5408 = dma.hbm_to_vmem [thread:$0]  (!%p6111_p5), %s6660_s2, 96, %s236_s9, [#allocation6]  }
  0x6e   : > { %s5851_s23 = scalar_lea.hbm %s6662_s4, 160 }
  0x6f   : > { %p5852_p1 = scmp.ne.s32.totalorder %s6662_s4, %s5851_s23  ;;  %p5858_p12 = scmp.lt.u32.totalorder %s5851_s23, %s6662_s4 }
  0x71   : > { %p5854_p3 = pnand %p5852_p1, %p6127_p7 }
  0x73   : > { %p5855_p11 = pneg %p5854_p3 }
  0x75   : > { %p5860_p13 = pnand %p5858_p12, %p5855_p11 }
  0x77   : > { %5863 = shalt.err (!%p5860_p13)
}
  0x78   : > { %s5864_s17 = scalar_lea.vmem %s260_s14, 160  ;;  %p5872_p6 = scmp.lt.s32.totalorder %s260_s14, %s260_s14 }
  0x79   : > { %p5865_p0 = scmp.ne.s32.totalorder %s260_s14, %s5864_s17  ;;  %p5873_p8 = scmp.lt.s32.totalorder %s5864_s17, %s5864_s17 }
  0x7b   : > { %p5867_p2 = pnand %p5865_p0, %p6127_p7  ;;  %p5874_p9 = por %p5873_p8, %p5872_p6 }
  0x7d   : > { %p5868_p4 = pneg %p5867_p2 }
  0x7f   : > { %p5875_p10 = pnand %p5874_p9, %p5868_p4 }
  0x81   : > { %5878 = shalt.err (!%p5875_p10)
}
  0x82   : > { %5414 = dma.hbm_to_vmem [thread:$0]  (!%p6111_p5), %s6662_s4, 160, %s260_s14, [#allocation9]  }
  0x83   : > { %s6028_s20 = smov [#allocation13]   ;;  %s5879_s29 = scalar_lea.hbm %s6664_s6, 128 }
  0x84   : > { %s283_s21 = sshll.u32 %s6028_s20, 4  ;;  %p5880_p1 = scmp.ne.s32.totalorder %s6664_s6, %s5879_s29  ;;  %s284_s21 = int_to_ptr.vmem [resolvable:$true] %s283_s21 }
  0x85   : > { %p5886_p12 = scmp.lt.u32.totalorder %s5879_s29, %s6664_s6 }
  0x86   : > { %p5882_p3 = pnand %p5880_p1, %p6127_p7 }
  0x88   : > { %p5883_p11 = pneg %p5882_p3 }
  0x8a   : > { %p5888_p13 = pnand %p5886_p12, %p5883_p11 }
  0x8c   : > { %5891 = shalt.err (!%p5888_p13)
}
  0x8d   : > { %s5892_s14 = scalar_lea.vmem %s284_s21, 128  ;;  %p5900_p6 = scmp.lt.s32.totalorder %s284_s21, %s284_s21 }
  0x8e   : > { %p5893_p0 = scmp.ne.s32.totalorder %s284_s21, %s5892_s14  ;;  %p5901_p8 = scmp.lt.s32.totalorder %s5892_s14, %s5892_s14 }
  0x90   : > { %p5895_p2 = pnand %p5893_p0, %p6127_p7  ;;  %p5902_p9 = por %p5901_p8, %p5900_p6 }
  0x92   : > { %p5896_p4 = pneg %p5895_p2 }
  0x94   : > { %p5903_p10 = pnand %p5902_p9, %p5896_p4 }
  0x96   : > { %5906 = shalt.err (!%p5903_p10)
}
  0x97   : > { %5420 = dma.hbm_to_vmem [thread:$0]  (!%p6111_p5), %s6664_s6, 128, %s284_s21, [#allocation12]  }
  0x98   : > { %s4748_s19 = sadd.s32 4294967294, %s6015_s27   ;;  %s6246_s11 = sadd.s32 1, %s6015_s27  }
  0x99   : > { %s30_s16 = ssub.s32 %s6015_s27, %s6246_s11  ;;  %s33_s17 = sadd.s32 1, %s6011_s26 }
  0x9a   : > { %p31_p7 = scmp.eq.s32.totalorder %s30_s16, 0  ;;  %p40_p1 = scmp.ne.s32.totalorder %s6011_s26, %s6007_s25 }
  0x9b   : > { %p41_p3 = scmp.eq.s32.totalorder %s6015_s27, 0  ;;  %p46_p11 = scmp.ne.s32.totalorder %s6007_s25, %s6003_s24 }
  0x9c   : > { %s6257_s9 = scalar_select %p31_p7, %s6011_s26, %s33_s17  }
  0x9d   : > { %p6259_p12 = por %p41_p3, %p40_p1  ;;  %p6675_p13 = scmp.eq.s32.totalorder %s6096_s30, 0 }
  0x9e   : > { %p196_p0 = scmp.eq.s32.totalorder %s6096_s30, 3  ;;  %p202_p2 = scmp.eq.s32.totalorder %s4748_s19, 3 }
  0x9f   : > { %p6265_p5 = por %p6675_p13, %p46_p11  ;;  %p5435_p4 = scmp.lt.s32.totalorder %s6015_s27, 4 }
  0xa0   : > { %s294_s21 = sand.u32 1, %s6011_s26   ;;  %p6272_p6 = por %p196_p0, %p40_p1 }
  0xa1   : > { %p6276_p8 = por %p202_p2, %p46_p11  ;;  %s4757_s29 = sshll.u32 %s294_s21, 3 }
  0xa2   : > { %s6677_s13 = scalar_select %p6272_p6, 1, 0 }
  0xa3   : > { %s6678_s10 = scalar_select %p6276_p8, 1, 0 }
  0xa4   : > { %s4758_s1 = sshll.u32 %s6015_s27, 7  ;;  %s298_s14 = scalar_lea.vmem [#allocation2], %s4757_s29 }
  0xa5   : > { %s6284_s28 = scalar_lea.hbm %s6658_s0, %s4758_s1  ;;  %s305_s12 = sshll.u32 %s298_s14, 4  ;;  %s6286_s12 = int_to_ptr.vmem [resolvable:$true] %s305_s12 }
  0xa6   : > { %p6290_p9 = pnand %p5435_p4, %p6259_p12  ;;  %s295_s19 = scalar_lea.sflag [#allocation3], %s294_s21 }
  0xa7   : > { %s5907_s16 = scalar_lea.hbm %s6284_s28, 128  ;;  %s5912_s1 = scalar_lea.hbm %s6658_s0, 512 }
  0xa8   : > { %p5908_p10 = scmp.ne.s32.totalorder %s6284_s28, %s5907_s16  ;;  %p5909_p7 = pneg %p6290_p9 }
  0xa9   : > { %p5913_p11 = scmp.lt.u32.totalorder %s6284_s28, %s6658_s0  ;;  %p5914_p12 = scmp.lt.u32.totalorder %s5912_s1, %s5907_s16 }
  0xaa   : > { %p5910_p1 = pnand %p5909_p7, %p5908_p10  ;;  %p5916_p0 = scmp.lt.u32.totalorder %s5907_s16, %s6284_s28 }
  0xab   : > { %p5915_p13 = por %p5914_p12, %p5913_p11 }
  0xac   : > { %p5911_p3 = pneg %p5910_p1 }
  0xad   : > { %p5917_p2 = por %p5916_p0, %p5915_p13 }
  0xaf   : > { %p5918_p4 = pnand %p5917_p2, %p5911_p3 }
  0xb1   : > { %5921 = shalt.err (!%p5918_p4)
}
  0xb2   : > { %s5922_s21 = scalar_lea.vmem %s6286_s12, 128  ;;  %s6029_s23 = smov [#allocation2]  }
  0xb3   : > { %p5923_p10 = scmp.ne.s32.totalorder %s6286_s12, %s5922_s21  ;;  %s5927_s14 = sshll.u32 %s6029_s23, 4  ;;  %s5928_s14 = int_to_ptr.vmem [resolvable:$false] %s5927_s14 }
  0xb4   : > { %s5929_s17 = scalar_lea.vmem %s5928_s14, 256  ;;  %p5930_p6 = scmp.lt.s32.totalorder %s6286_s12, %s5928_s14 }
  0xb5   : > { %p5925_p1 = pnand %p5923_p10, %p5909_p7  ;;  %p5931_p11 = scmp.lt.s32.totalorder %s5929_s17, %s5922_s21 }
  0xb7   : > { %p5926_p8 = pneg %p5925_p1  ;;  %p5932_p12 = por %p5931_p11, %p5930_p6 }
  0xb9   : > { %p5933_p13 = pnand %p5932_p12, %p5926_p8 }
  0xbb   : > { %5936 = shalt.err (!%p5933_p13)
}
  0xbc   : > { %5424 = dma.hbm_to_vmem [thread:$0]  (!%p6290_p9), %s6284_s28, 128, %s6286_s12, %s295_s19  }
  0xbd   : > { %p6680_p3 = scmp.ne.s32.totalorder %s6670_s8, 0 }
  0xbe   : > { %s6322_s16 = sand.u32 (!%p6680_p3), 1, %s6007_s25  }
  0xbf   : > { %314 = sbr.rel (%p6680_p3) target bundleno = 1374 (0x55e), region = 48  ;;  %s4760_s29 = sshll.u32 (!%p6680_p3), %s6322_s16, 3 }
  0xc0   : > { %s317_s1 = scalar_lea.sflag (!%p6680_p3), [#allocation3], %s6322_s16  ;;  %s6326_s18 = scalar_lea.vmem (!%p6680_p3), [#allocation2], %s4760_s29 }
  0xc6   : > { %5982 = dma.done.wait (%p6265_p5), %s317_s1, 128  }
  0xc7   : > { %5984 = vsyncadd (%p6265_p5), %s317_s1, 4294967168  ;;  %p6681_p6 = scmp.eq.s32.totalorder %s6096_s30, 0 }
  0xc9   : > { %5986 = dma.done.wait (%p6681_p6), [#allocation6], 3168   ;;  %p6682_p8 = pmov %p6681_p6 }
  0xca   : > { %p6683_p9 = pmov %p6681_p6 }
  0xcb   : > { %5988 = vsyncadd (%p6682_p8), [#allocation6], 4294964128 }
  0xcc   : > { %5990 = dma.done.wait (%p6683_p9), [#allocation9], 15520   ;;  %p6684_p7 = pmov %p6681_p6 }
  0xcd   : > { %p6685_p0 = pmov %p6681_p6 }
  0xce   : > { %5992 = vsyncadd (%p6684_p7), [#allocation9], 4294951776 }
  0xcf   : > { %5994 = dma.done.wait (%p6685_p0), [#allocation12], 41088   ;;  %p6686_p2 = pmov %p6685_p0 }
  0xd0   : > { %v6030_v0 = vmov 0.0   ;;  %vm6031_vm0 = vmmov 0   ;;  %v6032_v1 = vmov 0   ;;  %v5491_v2 = vld [vmem:[#allocation5 + $0x4] ss:$12 sps:$4 sm:$0xff]   ;;  %s4767_s8 = sshll.u32 %s6322_s16, 6 }
  0xd1   : > { %5996 = vsyncadd (%p6686_p2), [#allocation12], 4294926208  ;;  %5286 = vmatprep.subr.bf16.mxu1 %v6030_v0  ;;  %5302 = vmatprep.mubr.msk.bf16.mxu1 %vm6031_vm0, %v6030_v0  ;;  %v5493_v3 = vld [vmem:[#allocation5 + $0x8] ss:$12 sps:$4 sm:$0xff]   ;;  %v5494_v4 = vld [vmem:[#allocation5] ss:$12 sps:$4 sm:$0xff]  }
  0xd2   : > { %571 = vmatprep.mubr.bf16.mxu0 %v6032_v1  ;;  %539 = vmatprep.subr.bf16.mxu0 %v5491_v2  ;;  %v5495_v5 = vld [vmem:[#allocation5 + $0x1c] ss:$12 sps:$4 sm:$0xff]   ;;  %v5497_v6 = vld [vmem:[#allocation5 + $0x20] ss:$12 sps:$4 sm:$0xff]   ;;  %v5498_v7 = vld [vmem:[#allocation5 + $0x18] ss:$12 sps:$4 sm:$0xff]  }
  0xd3   : > { %5287 = vmatpush3.bf16.msra.mxu1 %v5493_v3  ;;  %540 = vmatpush1.bf16.msra.mxu0 %v5494_v4  ;;  %v5499_v8 = vld [vmem:[#allocation5 + $0x34] ss:$12 sps:$4 sm:$0xff]   ;;  %v5501_v9 = vld [vmem:[#allocation5 + $0x38] ss:$12 sps:$4 sm:$0xff]   ;;  %v5502_v10 = vld [vmem:[#allocation5 + $0x30] ss:$12 sps:$4 sm:$0xff]  }
  0xd4   : > { %5288 = vmatprep.subr.bf16.mxu1 %v6030_v0  ;;  %541 = vmatprep.subr.bf16.mxu0 %v5495_v5  ;;  %v5503_v11 = vld [vmem:[#allocation5 + $0x4c] ss:$12 sps:$4 sm:$0xff]   ;;  %v5505_v12 = vld [vmem:[#allocation5 + $0x50] ss:$12 sps:$4 sm:$0xff]   ;;  %v5506_v13 = vld [vmem:[#allocation5 + $0x48] ss:$12 sps:$4 sm:$0xff]  }
  0xd5   : > { %v5507_v14 = vld [vmem:[#allocation5 + $0x64] ss:$12 sps:$4 sm:$0xff]   ;;  %v5509_v15 = vld [vmem:[#allocation5 + $0x68] ss:$12 sps:$4 sm:$0xff]   ;;  %v5510_v16 = vld [vmem:[#allocation5 + $0x60] ss:$12 sps:$4 sm:$0xff]  }
  0xd6   : > { %v5511_v17 = vld [vmem:[#allocation5 + $0x7c] ss:$12 sps:$4 sm:$0xff]   ;;  %v5513_v18 = vld [vmem:[#allocation5 + $0x80] ss:$12 sps:$4 sm:$0xff]   ;;  %v5514_v19 = vld [vmem:[#allocation5 + $0x78] ss:$12 sps:$4 sm:$0xff]  }
  0xd7   : > { %5289 = vmatpush3.bf16.msra.mxu1 %v5497_v6  ;;  %542 = vmatpush1.bf16.msra.mxu0 %v5498_v7  ;;  %v5515_v20 = vld [vmem:[#allocation5 + $0x94] ss:$12 sps:$4 sm:$0xff]   ;;  %v5517_v21 = vld [vmem:[#allocation5 + $0x98] ss:$12 sps:$4 sm:$0xff]   ;;  %v5518_v22 = vld [vmem:[#allocation5 + $0x90] ss:$12 sps:$4 sm:$0xff]  }
  0xd8   : > { %5290 = vmatprep.subr.bf16.mxu1 %v6030_v0  ;;  %543 = vmatprep.subr.bf16.mxu0 %v5499_v8  ;;  %v5519_v23 = vld [vmem:[#allocation5 + $0xac] ss:$12 sps:$4 sm:$0xff]   ;;  %v5521_v24 = vld [vmem:[#allocation5 + $0xb0] ss:$12 sps:$4 sm:$0xff]   ;;  %v5522_v26 = vld [vmem:[#allocation5 + $0xa8] ss:$12 sps:$4 sm:$0xff]  }
  0xd9   : > { %v376_v25 = vld [vmem:[%s6326_s18] sm:$0xff]  ;;  %s6594_s20 = scalar_lea.vmem [#allocation14], %s4767_s8  ;;  %s5245_s28 = sshll.u32 %s6096_s30, 10 }
  0xda   : > { %v410_v27 = vpack.c.bf16 %v376_v25, %v376_v25  ;;  %v5525_v28 = vld [vmem:[#allocation8 + $0x4] ss:$20 sps:$4 sm:$0xff]   ;;  %v5528_v29 = vld [vmem:[#allocation8 + $0xc] ss:$20 sps:$4 sm:$0xff]   ;;  %v5526_v31 = vld [vmem:[#allocation8 + $0x8] ss:$20 sps:$4 sm:$0xff]   ;;  %s6613_s22 = scalar_lea.hbm %s6665_s7, %s5245_s28 }
  0xdb   : > { %5291 = vmatpush3.bf16.msra.mxu1 %v5501_v9  ;;  %544 = vmatpush1.bf16.msra.mxu0 %v5502_v10  ;;  %v5523_v30 = vld [vmem:[#allocation8] ss:$20 sps:$4 sm:$0xff]   ;;  %v5529_v34 = vld [vmem:[#allocation8 + $0x28] ss:$20 sps:$4 sm:$0xff]   ;;  %v5532_v35 = vld [vmem:[#allocation8 + $0x30] ss:$20 sps:$4 sm:$0xff]  }
  0xdc   : > { %5292 = vmatprep.subr.bf16.mxu1 %v6030_v0  ;;  %545 = vmatprep.subr.bf16.mxu0 %v5503_v11  ;;  %v5531_v32 = vld [vmem:[#allocation8 + $0x2c] ss:$20 sps:$4 sm:$0xff]   ;;  %v5534_v33 = vld [vmem:[#allocation8 + $0x34] ss:$20 sps:$4 sm:$0xff]   ;;  %v5540_v37 = vld [vmem:[#allocation8 + $0x5c] ss:$20 sps:$4 sm:$0xff]  }
  0xdd   : > { %v5537_v36 = vld [vmem:[#allocation8 + $0x54] ss:$20 sps:$4 sm:$0xff]   ;;  %v5535_v38 = vld [vmem:[#allocation8 + $0x50] ss:$20 sps:$4 sm:$0xff]   ;;  %v5538_v39 = vld [vmem:[#allocation8 + $0x58] ss:$20 sps:$4 sm:$0xff]  }
  0xde   : > { %v5543_v40 = vld [vmem:[#allocation8 + $0x7c] ss:$20 sps:$4 sm:$0xff]   ;;  %v5546_v41 = vld [vmem:[#allocation8 + $0x84] ss:$20 sps:$4 sm:$0xff]   ;;  %v5544_v43 = vld [vmem:[#allocation8 + $0x80] ss:$20 sps:$4 sm:$0xff]  }
  0xdf   : > { %5293 = vmatpush3.bf16.msra.mxu1 %v5505_v12  ;;  %546 = vmatpush1.bf16.msra.mxu0 %v5506_v13  ;;  %v5541_v42 = vld [vmem:[#allocation8 + $0x78] ss:$20 sps:$4 sm:$0xff]   ;;  %v5547_v46 = vld [vmem:[#allocation8 + $0xa0] ss:$20 sps:$4 sm:$0xff]   ;;  %v5550_v47 = vld [vmem:[#allocation8 + $0xa8] ss:$20 sps:$4 sm:$0xff]  }
  0xe0   : > { %5294 = vmatprep.subr.bf16.mxu1 %v6030_v0  ;;  %547 = vmatprep.subr.bf16.mxu0 %v5507_v14  ;;  %v5549_v44 = vld [vmem:[#allocation8 + $0xa4] ss:$20 sps:$4 sm:$0xff]   ;;  %v5552_v45 = vld [vmem:[#allocation8 + $0xac] ss:$20 sps:$4 sm:$0xff]   ;;  %v5558_v49 = vld [vmem:[#allocation8 + $0xd4] ss:$20 sps:$4 sm:$0xff]  }
  0xe1   : > { %v5555_v48 = vld [vmem:[#allocation8 + $0xcc] ss:$20 sps:$4 sm:$0xff]   ;;  %v5553_v50 = vld [vmem:[#allocation8 + $0xc8] ss:$20 sps:$4 sm:$0xff]   ;;  %v5556_v51 = vld [vmem:[#allocation8 + $0xd0] ss:$20 sps:$4 sm:$0xff]  }
  0xe2   : > { %v5561_v52 = vld [vmem:[#allocation8 + $0xf4] ss:$20 sps:$4 sm:$0xff]   ;;  %v5564_v53 = vld [vmem:[#allocation8 + $0xfc] ss:$20 sps:$4 sm:$0xff]   ;;  %v5562_v55 = vld [vmem:[#allocation8 + $0xf8] ss:$20 sps:$4 sm:$0xff]  }
  0xe3   : > { %5295 = vmatpush3.bf16.msra.mxu1 %v5509_v15  ;;  %548 = vmatpush1.bf16.msra.mxu0 %v5510_v16  ;;  %v5559_v54 = vld [vmem:[#allocation8 + $0xf0] ss:$20 sps:$4 sm:$0xff]   ;;  %v5565_v58 = vld [vmem:[#allocation8 + $0x118] ss:$20 sps:$4 sm:$0xff]   ;;  %v5568_v59 = vld [vmem:[#allocation8 + $0x120] ss:$20 sps:$4 sm:$0xff]  }
  0xe4   : > { %5296 = vmatprep.subr.bf16.mxu1 %v6030_v0  ;;  %549 = vmatprep.subr.bf16.mxu0 %v5511_v17  ;;  %v5567_v56 = vld [vmem:[#allocation8 + $0x11c] ss:$20 sps:$4 sm:$0xff]   ;;  %v5570_v57 = vld [vmem:[#allocation8 + $0x124] ss:$20 sps:$4 sm:$0xff]   ;;  %v5576_v61 = vld [vmem:[#allocation8 + $0x14c] ss:$20 sps:$4 sm:$0xff]  }
  0xe5   : > { %v5573_v60 = vld [vmem:[#allocation8 + $0x144] ss:$20 sps:$4 sm:$0xff]   ;;  %v5571_v62 = vld [vmem:[#allocation8 + $0x140] ss:$20 sps:$4 sm:$0xff]   ;;  %v5574_v63 = vld [vmem:[#allocation8 + $0x148] ss:$20 sps:$4 sm:$0xff]  }
  0xe6   : > { %v5579_v2 = vld [vmem:[#allocation8 + $0x16c] ss:$20 sps:$4 sm:$0xff]   ;;  %v5582_v3 = vld [vmem:[#allocation8 + $0x174] ss:$20 sps:$4 sm:$0xff]   ;;  %v5580_v5 = vld [vmem:[#allocation8 + $0x170] ss:$20 sps:$4 sm:$0xff]  }
  0xe7   : > { %5297 = vmatpush3.bf16.msra.mxu1 %v5513_v18  ;;  %550 = vmatpush1.bf16.msra.mxu0 %v5514_v19  ;;  %v5577_v4 = vld [vmem:[#allocation8 + $0x168] ss:$20 sps:$4 sm:$0xff]   ;;  %v5583_v8 = vld [vmem:[#allocation8 + $0x190] ss:$20 sps:$4 sm:$0xff]   ;;  %v5586_v9 = vld [vmem:[#allocation8 + $0x198] ss:$20 sps:$4 sm:$0xff]  }
  0xe8   : > { %5298 = vmatprep.subr.bf16.mxu1 %v6030_v0  ;;  %551 = vmatprep.subr.bf16.mxu0 %v5515_v20  ;;  %v5585_v6 = vld [vmem:[#allocation8 + $0x194] ss:$20 sps:$4 sm:$0xff]   ;;  %v5588_v7 = vld [vmem:[#allocation8 + $0x19c] ss:$20 sps:$4 sm:$0xff]   ;;  %v5594_v11 = vld [vmem:[#allocation8 + $0x1c4] ss:$20 sps:$4 sm:$0xff]  }
  0xe9   : > { %v5591_v10 = vld [vmem:[#allocation8 + $0x1bc] ss:$20 sps:$4 sm:$0xff]   ;;  %v5589_v12 = vld [vmem:[#allocation8 + $0x1b8] ss:$20 sps:$4 sm:$0xff]   ;;  %v5592_v13 = vld [vmem:[#allocation8 + $0x1c0] ss:$20 sps:$4 sm:$0xff]  }
  0xea   : > { %v5597_v14 = vld [vmem:[#allocation8 + $0x1e4] ss:$20 sps:$4 sm:$0xff]   ;;  %v5600_v15 = vld [vmem:[#allocation8 + $0x1ec] ss:$20 sps:$4 sm:$0xff]   ;;  %v5598_v17 = vld [vmem:[#allocation8 + $0x1e8] ss:$20 sps:$4 sm:$0xff]  }
  0xeb   : > { %5299 = vmatpush3.bf16.msra.mxu1 %v5517_v21  ;;  %552 = vmatpush1.bf16.msra.mxu0 %v5518_v22  ;;  %v5595_v16 = vld [vmem:[#allocation8 + $0x1e0] ss:$20 sps:$4 sm:$0xff]   ;;  %v5601_v20 = vld [vmem:[#allocation8 + $0x208] ss:$20 sps:$4 sm:$0xff]   ;;  %v5604_v21 = vld [vmem:[#allocation8 + $0x210] ss:$20 sps:$4 sm:$0xff]  }
  0xec   : > { %5300 = vmatprep.subr.bf16.mxu1 %v6030_v0  ;;  %553 = vmatprep.subr.bf16.mxu0 %v5519_v23  ;;  %v5603_v18 = vld [vmem:[#allocation8 + $0x20c] ss:$20 sps:$4 sm:$0xff]   ;;  %v5606_v19 = vld [vmem:[#allocation8 + $0x214] ss:$20 sps:$4 sm:$0xff]   ;;  %v5612_v23 = vld [vmem:[#allocation8 + $0x23c] ss:$20 sps:$4 sm:$0xff]  }
  0xed   : > { %v5609_v22 = vld [vmem:[#allocation8 + $0x234] ss:$20 sps:$4 sm:$0xff]   ;;  %v5610_v25 = vld [vmem:[#allocation8 + $0x238] ss:$20 sps:$4 sm:$0xff]   ;;  %s4621_s12 = sshll.u32 %s6594_s20, 4  ;;  %s4607_s30 = scalar_lea.sflag [#allocation4], %s6322_s16  ;;  %s6615_s12 = int_to_ptr.vmem [resolvable:$true] %s4621_s12 }
  0xee   : > { %s5937_s21 = scalar_lea.vmem %s6615_s12, 1024  ;;  %p6687_p4 = scmp.ne.s32.totalorder %s6677_s13, 0 }
  0xef   : > { %5301 = vmatpush3.bf16.msra.mxu1 %v5521_v24  ;;  %554 = vmatpush1.bf16.msra.mxu0 %v5522_v26  ;;  %v5607_v24 = vld [vmem:[#allocation8 + $0x230] ss:$20 sps:$4 sm:$0xff]   ;;  %v5613_v26 = vld [vmem:[#allocation8 + $0x258] ss:$20 sps:$4 sm:$0xff]   ;;  %p5938_p5 = scmp.ne.s32.totalorder %s6615_s12, %s5937_s21  ;;  %s6034_s23 = smov [#allocation14]  }
  0xf0   : > { %1565 = vmatprep.subr.bf16.mxu0 %v5525_v28  ;;  %1647 = vmatprep.subr.bf16.mxu1 %v5528_v29  ;;  %v5616_v28 = vld [vmem:[#allocation8 + $0x260] ss:$20 sps:$4 sm:$0xff]   ;;  %v5618_v29 = vld [vmem:[#allocation8 + $0x264] ss:$20 sps:$4 sm:$0xff]   ;;  %s5941_s14 = sshll.u32 %s6034_s23, 4  ;;  %s5942_s14 = int_to_ptr.vmem [resolvable:$false] %s5941_s14 }
  0xf1   : > { %p5939_p10 = pnand %p5938_p5, %p6687_p4  ;;  %s5943_s17 = scalar_lea.vmem %s5942_s14, 2048 }
  0xf2   : > { %5303 = vmatmul.mubr.bf16.vlgmr.msra.gmra.mrb[0].mxu1 %v410_v27  ;;  %572 = vmatmul.mubr.bf16.vlgmr.msra.gmra.mrb[0].mxu0 %v410_v27  ;;  %v5615_v27 = vld [vmem:[#allocation8 + $0x25c] ss:$20 sps:$4 sm:$0xff]   ;;  %p5944_p11 = scmp.lt.s32.totalorder %s6615_s12, %s5942_s14  ;;  %p5945_p12 = scmp.lt.s32.totalorder %s5943_s17, %s5937_s21 }
  0xf3   : > { %1566 = vmatpush1.bf16.msra.mxu0 %v5523_v30  ;;  %1648 = vmatpush1.bf16.msra.mxu1 %v5526_v31  ;;  %v5621_v30 = vld [vmem:[#allocation8 + $0x284] ss:$20 sps:$4 sm:$0xff]   ;;  %v5624_v31 = vld [vmem:[#allocation8 + $0x28c] ss:$20 sps:$4 sm:$0xff]   ;;  %p5940_p1 = pneg %p5939_p10 }
  0xf4   : > { %1567 = vmatprep.subr.bf16.mxu0 %v5531_v32  ;;  %1649 = vmatprep.subr.bf16.mxu1 %v5534_v33  ;;  %p5946_p13 = por %p5945_p12, %p5944_p11 }
  0xf6   : > { %p5947_p3 = pnand %p5946_p13, %p5940_p1 }
  0xf7   : > { %1568 = vmatpush1.bf16.msra.mxu0 %v5529_v34  ;;  %1650 = vmatpush1.bf16.msra.mxu1 %v5532_v35 }
  0xf8   : > { %1569 = vmatprep.subr.bf16.mxu0 %v5537_v36  ;;  %1651 = vmatprep.subr.bf16.mxu1 %v5540_v37 }
  0xfb   : > { %1570 = vmatpush1.bf16.msra.mxu0 %v5535_v38  ;;  %1652 = vmatpush1.bf16.msra.mxu1 %v5538_v39 }
  0xfc   : > { %1571 = vmatprep.subr.bf16.mxu0 %v5543_v40  ;;  %1653 = vmatprep.subr.bf16.mxu1 %v5546_v41 }
  0xff   : > { %1572 = vmatpush1.bf16.msra.mxu0 %v5541_v42  ;;  %1654 = vmatpush1.bf16.msra.mxu1 %v5544_v43 }
 0x100   : > { %1573 = vmatprep.subr.bf16.mxu0 %v5549_v44  ;;  %1655 = vmatprep.subr.bf16.mxu1 %v5552_v45 }
 0x103   : > { %1574 = vmatpush1.bf16.msra.mxu0 %v5547_v46  ;;  %1656 = vmatpush1.bf16.msra.mxu1 %v5550_v47 }
 0x104   : > { %1575 = vmatprep.subr.bf16.mxu0 %v5555_v48  ;;  %1657 = vmatprep.subr.bf16.mxu1 %v5558_v49 }
 0x107   : > { %1576 = vmatpush1.bf16.msra.mxu0 %v5553_v50  ;;  %1658 = vmatpush1.bf16.msra.mxu1 %v5556_v51 }
 0x108   : > { %1577 = vmatprep.subr.bf16.mxu0 %v5561_v52  ;;  %1659 = vmatprep.subr.bf16.mxu1 %v5564_v53 }
 0x10b   : > { %1578 = vmatpush1.bf16.msra.mxu0 %v5559_v54  ;;  %1660 = vmatpush1.bf16.msra.mxu1 %v5562_v55 }
 0x10c   : > { %1579 = vmatprep.subr.bf16.mxu0 %v5567_v56  ;;  %1661 = vmatprep.subr.bf16.mxu1 %v5570_v57 }
 0x10f   : > { %1580 = vmatpush1.bf16.msra.mxu0 %v5565_v58  ;;  %1662 = vmatpush1.bf16.msra.mxu1 %v5568_v59 }
 0x110   : > { %1581 = vmatprep.subr.bf16.mxu0 %v5573_v60  ;;  %1663 = vmatprep.subr.bf16.mxu1 %v5576_v61 }
 0x113   : > { %1582 = vmatpush1.bf16.msra.mxu0 %v5571_v62  ;;  %1664 = vmatpush1.bf16.msra.mxu1 %v5574_v63 }
 0x114   : > { %1583 = vmatprep.subr.bf16.mxu0 %v5579_v2  ;;  %1665 = vmatprep.subr.bf16.mxu1 %v5582_v3 }
 0x117   : > { %1584 = vmatpush1.bf16.msra.mxu0 %v5577_v4  ;;  %1666 = vmatpush1.bf16.msra.mxu1 %v5580_v5 }
 0x118   : > { %1585 = vmatprep.subr.bf16.mxu0 %v5585_v6  ;;  %1667 = vmatprep.subr.bf16.mxu1 %v5588_v7 }
 0x11b   : > { %1586 = vmatpush1.bf16.msra.mxu0 %v5583_v8  ;;  %1668 = vmatpush1.bf16.msra.mxu1 %v5586_v9 }
 0x11c   : > { %1587 = vmatprep.subr.bf16.mxu0 %v5591_v10  ;;  %1669 = vmatprep.subr.bf16.mxu1 %v5594_v11 }
 0x11f   : > { %1588 = vmatpush1.bf16.msra.mxu0 %v5589_v12  ;;  %1670 = vmatpush1.bf16.msra.mxu1 %v5592_v13 }
 0x120   : > { %1589 = vmatprep.subr.bf16.mxu0 %v5597_v14  ;;  %1671 = vmatprep.subr.bf16.mxu1 %v5600_v15 }
 0x123   : > { %1590 = vmatpush1.bf16.msra.mxu0 %v5595_v16  ;;  %1672 = vmatpush1.bf16.msra.mxu1 %v5598_v17 }
 0x124   : > { %1591 = vmatprep.subr.bf16.mxu0 %v5603_v18  ;;  %1673 = vmatprep.subr.bf16.mxu1 %v5606_v19 }
 0x127   : > { %1592 = vmatpush1.bf16.msra.mxu0 %v5601_v20  ;;  %1674 = vmatpush1.bf16.msra.mxu1 %v5604_v21 }
 0x128   : > { %1593 = vmatprep.subr.bf16.mxu0 %v5609_v22  ;;  %1675 = vmatprep.subr.bf16.mxu1 %v5612_v23 }
 0x12b   : > { %1594 = vmatpush1.bf16.msra.mxu0 %v5607_v24  ;;  %1676 = vmatpush1.bf16.msra.mxu1 %v5610_v25 }
 0x12c   : > { %1595 = vmatprep.subr.bf16.mxu0 %v5615_v27  ;;  %1677 = vmatprep.subr.bf16.mxu1 %v5618_v29  ;;  %v6033_v29 = vmov 1983009808  }
 0x12f   : > { %1596 = vmatpush1.bf16.msra.mxu0 %v5613_v26  ;;  %1678 = vmatpush1.bf16.msra.mxu1 %v5616_v28 }
 0x130   : > { %1606 = vmatprep.subr.bf16.mxu0 %v5621_v30  ;;  %1688 = vmatprep.subr.bf16.mxu1 %v5624_v31  ;;  %v680_v30 = vunpack.c.l.s4 %v6033_v29  ;;  %v682_v31 = vlaneseq  ;;  %v5631_v29 = vld [vmem:[#allocation8 + $0x2d0] ss:$20 sps:$4 sm:$0xff]  }
 0x1c5   : > { %v6356_v32 = vpop.f32.mrb[0].mxu1  ;;  %v6359_v34 = vpop.f32.mrb[0].mxu0 }
 0x1c6   : > { %v632_v33 = vrot.slane %v6356_v32, 4  ;;  %v5304_v35 = vpop.f32.mrb[1].mxu1  ;;  %v620_v36 = vrot.slane %v6359_v34, 4  ;;  %v6362_v37 = vpop.f32.mrb[1].mxu0 }
 0x1c7   : > { %v617_v38 = vpop.f32.mrb[2].mxu1  ;;  %v626_v40 = vrot.slane %v6362_v37, 4  ;;  %v577_v41 = vpop.f32.mrb[2].mxu0  ;;  %v6371_v35 = vshrl.u32 %v682_v31, 7  ;;  %v5639_v31 = vld [vmem:[#allocation8 + $0x2fc] ss:$20 sps:$4 sm:$0xff]  }
 0x1c8   : > { %v633_v39 = vadd.f32 %v632_v33, %v6356_v32  ;;  %v5305_v42 = vpop.f32.mrb[3].mxu1  ;;  %v621_v43 = vadd.f32 %v620_v36, %v6359_v34  ;;  %v578_v44 = vpop.f32.mrb[3].mxu0  ;;  %v681_v33 = vunpack.c.0.s8 %v680_v30  ;;  %v5634_v30 = vld [vmem:[#allocation8 + $0x2d8] ss:$20 sps:$4 sm:$0xff]  }
 0x1c9   : > { %v627_v46 = vadd.f32 %v626_v40, %v6362_v37  ;;  %v409_v44 = vld [vmem:[#allocation7] sm:$0x3f] }
 0x1ca   : > { %v634_v45 = vrot.slane %v633_v39, 2  ;;  %v622_v47 = vrot.slane %v621_v43, 2 }
 0x1cb   : > { %v628_v49 = vrot.slane %v627_v46, 2 }
 0x1cc   : > { %v635_v48 = vadd.f32 %v634_v45, %v633_v39  ;;  %v623_v50 = vadd.f32 %v622_v47, %v621_v43  ;;  %v6374_v39 = vsub.s32 %v681_v33, %v6371_v35  ;;  %v6382_v47 = vsub.s32 2, %v6371_v35  ;;  %v5642_v33 = vld [vmem:[#allocation8 + $0x304] ss:$20 sps:$4 sm:$0xff]  }
 0x1cd   : > { %v629_v52 = vadd.f32 %v628_v49, %v627_v46  ;;  %v6379_v46 = vsub.s32 0, %v6371_v35 }
 0x1ce   : > { %v636_v51 = vrot.slane %v635_v48, 1  ;;  %v624_v53 = vrot.slane %v623_v50, 1 }
 0x1cf   : > { %v630_v55 = vrot.slane %v629_v52, 1 }
 0x1d0   : > { %v637_v54 = vadd.f32 %v636_v51, %v635_v48  ;;  %v625_v56 = vadd.f32 %v624_v53, %v623_v50  ;;  %v6385_v48 = vsub.s32 4, %v6371_v35 }
 0x1d1   : > { %v631_v58 = vadd.f32 %v630_v55, %v629_v52 }
 0x1d2   : > { %v641_v57 = vmul.f32 0.125, %v637_v54  ;;  %v639_v59 = vmul.f32 0.125, %v625_v56 }
 0x1d3   : > { %v640_v61 = vmul.f32 0.125, %v631_v58 }
 0x1d4   : > { %v644_v60 = vsub.f32 %v6356_v32, %v641_v57  ;;  %v642_v62 = vsub.f32 %v6359_v34, %v639_v59 }
 0x1d5   : > { %v643_v2 = vsub.f32 %v6362_v37, %v640_v61 }
 0x1d6   : > { %v647_v63 = vmul.f32 %v644_v60, %v644_v60  ;;  %v645_v3 = vmul.f32 %v642_v62, %v642_v62 }
 0x1d7   : > { %v646_v5 = vmul.f32 %v643_v2, %v643_v2 }
 0x1d8   : > { %v660_v4 = vrot.slane %v647_v63, 4  ;;  %v648_v6 = vrot.slane %v645_v3, 4 }
 0x1d9   : > { %v654_v8 = vrot.slane %v646_v5, 4 }
 0x1da   : > { %v661_v7 = vadd.f32 %v660_v4, %v647_v63  ;;  %v649_v9 = vadd.f32 %v648_v6, %v645_v3  ;;  %v6402_v6 = vsub.s32 3, %v6371_v35 }
 0x1db   : > { %v655_v11 = vadd.f32 %v654_v8, %v646_v5 }
 0x1dc   : > { %v662_v10 = vrot.slane %v661_v7, 2  ;;  %v650_v12 = vrot.slane %v649_v9, 2 }
 0x1dd   : > { %v656_v14 = vrot.slane %v655_v11, 2 }
 0x1de   : > { %v663_v13 = vadd.f32 %v662_v10, %v661_v7  ;;  %v651_v15 = vadd.f32 %v650_v12, %v649_v9  ;;  %v6405_v7 = vsub.s32 5, %v6371_v35 }
 0x1df   : > { %v657_v17 = vadd.f32 %v656_v14, %v655_v11 }
 0x1e0   : > { %v664_v16 = vrot.slane %v663_v13, 1  ;;  %v652_v18 = vrot.slane %v651_v15, 1 }
 0x1e1   : > { %v658_v20 = vrot.slane %v657_v17, 1 }
 0x1e2   : > { %v665_v19 = vadd.f32 %v664_v16, %v663_v13  ;;  %v653_v21 = vadd.f32 %v652_v18, %v651_v15 }
 0x1e3   : > { %v659_v23 = vadd.f32 %v658_v20, %v657_v17  ;;  %v5619_v20 = vld [vmem:[#allocation8 + $0x280] ss:$20 sps:$4 sm:$0xff]  }
 0x1e4   : > { %v668_v22 = vmul.f32 0.125, %v665_v19  ;;  %v666_v24 = vmul.f32 0.125, %v653_v21  ;;  %v5622_v21 = vld [vmem:[#allocation8 + $0x288] ss:$20 sps:$4 sm:$0xff]  }
 0x1e5   : > { %v667_v26 = vmul.f32 0.125, %v659_v23  ;;  %v5627_v23 = vld [vmem:[#allocation8 + $0x2ac] ss:$20 sps:$4 sm:$0xff]  }
 0x1e6   : > { %v671_v25 = vadd.f32 1e-05, %v668_v22  ;;  %v669_v27 = vadd.f32 1e-05, %v666_v24  ;;  %v5630_v24 = vld [vmem:[#allocation8 + $0x2b4] ss:$20 sps:$4 sm:$0xff]  }
 0x1e7   : > { %v670_v28 = vadd.f32 1e-05, %v667_v26  ;;  %v5628_v26 = vld [vmem:[#allocation8 + $0x2b0] ss:$20 sps:$4 sm:$0xff]  }
 0x1e8   : > { %5691 = vrsqrt.f32 %v671_v25  ;;  %v5625_v25 = vld [vmem:[#allocation8 + $0x2a8] ss:$20 sps:$4 sm:$0xff]  }
 0x1e9   : > { %5693 = vrsqrt.f32 %v669_v27  ;;  %v5633_v27 = vld [vmem:[#allocation8 + $0x2d4] ss:$20 sps:$4 sm:$0xff]  }
 0x1ea   : > { %5695 = vrsqrt.f32 %v670_v28  ;;  %v5636_v28 = vld [vmem:[#allocation8 + $0x2dc] ss:$20 sps:$4 sm:$0xff]  }
 0x1f2   : > { %v5692_v36 = vpop.eup %5691 }
 0x1f3   : > { %v5694_v38 = vpop.eup %5693  ;;  %v692_v43 = vrot.slane %v5692_v36, %v6374_v39  ;;  %v5637_v36 = vld [vmem:[#allocation8 + $0x2f8] ss:$20 sps:$4 sm:$0xff]  }
 0x1f4   : > { %v5696_v40 = vpop.eup %5695 }
 0x1f5   : > { %v678_v41 = vcombine.low %v5694_v38, %v5696_v40  ;;  %v5640_v38 = vld [vmem:[#allocation8 + $0x300] ss:$20 sps:$4 sm:$0xff]   ;;  %v5645_v40 = vld [vmem:[#allocation8 + $0x324] ss:$20 sps:$4 sm:$0xff]  }
 0x1f7   : > { %v685_v42 = vrot.slane %v678_v41, %v6374_v39  ;;  %v5648_v41 = vld [vmem:[#allocation8 + $0x32c] ss:$20 sps:$4 sm:$0xff]  }
 0x1f9   : > { %v693_v45 = vcombine.low %v685_v42, %v692_v43  ;;  %v5643_v42 = vld [vmem:[#allocation8 + $0x320] ss:$20 sps:$4 sm:$0xff]   ;;  %v5646_v43 = vld [vmem:[#allocation8 + $0x328] ss:$20 sps:$4 sm:$0xff]  }
 0x1fb   : > { %v695_v49 = vmul.f32 %v693_v45, %v409_v44  ;;  %v5654_v45 = vld [vmem:[#allocation8 + $0x354] ss:$20 sps:$4 sm:$0xff]  }
 0x1fd   : > { %v700_v50 = vrot.slane %v695_v49, %v6379_v46  ;;  %v704_v51 = vrot.slane %v695_v49, %v6382_v47  ;;  %v708_v52 = vrot.slane %v695_v49, %v6385_v48  ;;  %v5649_v49 = vld [vmem:[#allocation8 + $0x348] ss:$20 sps:$4 sm:$0xff]  }
 0x1ff   : > { %v712_v53 = vmul.f32 %v700_v50, %v639_v59  ;;  %v713_v54 = vmul.f32 %v704_v51, %v640_v61  ;;  %v714_v55 = vmul.f32 %v708_v52, %v641_v57  ;;  %v744_v56 = vrot.slane %v704_v51, %v6379_v46  ;;  %v5657_v51 = vld [vmem:[#allocation8 + $0x374] ss:$20 sps:$4 sm:$0xff]  }
 0x200   : > { %v740_v58 = vrot.slane %v700_v50, %v6379_v46  ;;  %v748_v60 = vrot.slane %v708_v52, %v6379_v46  ;;  %v6399_v57 = vsub.s32 1, %v6371_v35  ;;  %v5652_v50 = vld [vmem:[#allocation8 + $0x350] ss:$20 sps:$4 sm:$0xff]  }
 0x201   : > { %v718_v62 = vcombine.low %v712_v53, %v713_v54  ;;  %v750_v63 = vmul.f32 %v744_v56, %v6362_v37  ;;  %v732_v5 = vrot.slane %v714_v55, %v6374_v39  ;;  %v5660_v52 = vld [vmem:[#allocation8 + $0x37c] ss:$20 sps:$4 sm:$0xff]   ;;  %v5658_v54 = vld [vmem:[#allocation8 + $0x378] ss:$20 sps:$4 sm:$0xff]  }
 0x202   : > { %v749_v2 = vmul.f32 %v740_v58, %v6359_v34  ;;  %v751_v3 = vmul.f32 %v748_v60, %v6356_v32  ;;  %v5655_v53 = vld [vmem:[#allocation8 + $0x370] ss:$20 sps:$4 sm:$0xff]   ;;  %v5661_v60 = vld [vmem:[#allocation8 + $0x398] ss:$20 sps:$4 sm:$0xff]  }
 0x203   : > { %v725_v4 = vrot.slane %v718_v62, %v6374_v39  ;;  %v5663_v55 = vld [vmem:[#allocation8 + $0x39c] ss:$20 sps:$4 sm:$0xff]   ;;  %v5666_v56 = vld [vmem:[#allocation8 + $0x3a4] ss:$20 sps:$4 sm:$0xff]   ;;  %v5664_v62 = vld [vmem:[#allocation8 + $0x3a0] ss:$20 sps:$4 sm:$0xff]  }
 0x205   : > { %v733_v59 = vcombine.low %v725_v4, %v732_v5  ;;  %v5669_v5 = vld [vmem:[#allocation8 + $0x290] ss:$20 sps:$4 sm:$0xff]  }
 0x207   : > { %v734_v61 = vrot.slane %v733_v59, 7  ;;  %v5670_v59 = vld [vmem:[#allocation8 + $0x178] ss:$20 sps:$4 sm:$0xff]  }
 0x209   : > { %v736_v37 = vsub.f32 %v409_v44, %v734_v61  ;;  %v5651_v44 = vld [vmem:[#allocation8 + $0x34c] ss:$20 sps:$4 sm:$0xff]  }
 0x20a   : > { %v5671_v61 = vld [vmem:[#allocation8 + $0x38] ss:$20 sps:$4 sm:$0xff]  }
 0x20b   : > { %v760_v34 = vrot.slane %v736_v37, %v6402_v6  ;;  %v756_v32 = vrot.slane %v736_v37, %v6399_v57  ;;  %v764_v8 = vrot.slane %v736_v37, %v6405_v7  ;;  %v5672_v37 = vld [vmem:[#allocation8 + $0x2b8] ss:$20 sps:$4 sm:$0xff]  }
 0x20d   : > { %v775_v9 = vrot.slane %v760_v34, %v6399_v57  ;;  %v771_v10 = vrot.slane %v756_v32, %v6399_v57  ;;  %v779_v11 = vrot.slane %v764_v8, %v6399_v57  ;;  %v5673_v34 = vld [vmem:[#allocation8 + $0x1a0] ss:$20 sps:$4 sm:$0xff]  }
 0x20e   : > { %v5674_v32 = vld [vmem:[#allocation8 + $0x60] ss:$20 sps:$4 sm:$0xff]  }
 0x20f   : > { %v781_v12 = vadd.f32 %v775_v9, %v750_v63  ;;  %v780_v13 = vadd.f32 %v771_v10, %v749_v2  ;;  %v6413_v14 = vadd.f32 %v779_v11, %v751_v3  ;;  %v5667_v63 = vld [vmem:[#allocation8 + $0x150] ss:$20 sps:$4 sm:$0xff]   ;;  %v5675_v8 = vld [vmem:[#allocation8 + $0x2e0] ss:$20 sps:$4 sm:$0xff]   ;;  %v5676_v9 = vld [vmem:[#allocation8 + $0x1c8] ss:$20 sps:$4 sm:$0xff]  }
 0x210   : > { %v5668_v3 = vld [vmem:[#allocation8 + $0x10] ss:$20 sps:$4 sm:$0xff]   ;;  %v5677_v10 = vld [vmem:[#allocation8 + $0x88] ss:$20 sps:$4 sm:$0xff]  }
 0x211   : > { %vm784_vm1 = vcmp.gt.f32.partialorder %v781_v12, 0.0  ;;  %v787_v15 = vmul.f32 0.2, %v781_v12  ;;  %vm783_vm2 = vcmp.gt.f32.partialorder %v780_v13, 0.0  ;;  %v786_v16 = vmul.f32 0.2, %v780_v13 }
 0x212   : > { %v788_v58 = vmul.f32 0.2, %v6413_v14  ;;  %vm785_vm3 = vcmp.gt.f32.partialorder %v6413_v14, 0.0  ;;  %v5678_v11 = vld [vmem:[#allocation8 + $0x308] ss:$20 sps:$4 sm:$0xff]  }
 0x213   : > { %v790_v17 = vsel %vm784_vm1, %v781_v12, %v787_v15  ;;  %v789_v18 = vsel %vm783_vm2, %v780_v13, %v786_v16  ;;  %v5679_v12 = vld [vmem:[#allocation8 + $0x1f0] ss:$20 sps:$4 sm:$0xff]   ;;  %v5682_v15 = vld [vmem:[#allocation8 + $0x218] ss:$20 sps:$4 sm:$0xff]  }
 0x214   : > { %v6415_v19 = vpack.c.bf16 %v790_v17, %v790_v17  ;;  %v6417_v22 = vpack.c.bf16 %v789_v18, %v789_v18  ;;  %v791_v2 = vsel %vm785_vm3, %v6413_v14, %v788_v58  ;;  %v5680_v13 = vld [vmem:[#allocation8 + $0xb0] ss:$20 sps:$4 sm:$0xff]   ;;  %v5683_v16 = vld [vmem:[#allocation8 + $0xd8] ss:$20 sps:$4 sm:$0xff]   ;;  %v5685_v18 = vld [vmem:[#allocation8 + $0x240] ss:$20 sps:$4 sm:$0xff]  }
 0x215   : > { %v940_v4 = vpack.c.bf16 %v791_v2, %v791_v2  ;;  %v5681_v14 = vld [vmem:[#allocation8 + $0x330] ss:$20 sps:$4 sm:$0xff]   ;;  %v5684_v17 = vld [vmem:[#allocation8 + $0x358] ss:$20 sps:$4 sm:$0xff]  }
 0x216   : > { %1597 = vmatprep.mubr.bf16.mxu0 %v6415_v19  ;;  %1679 = vmatprep.mubr.bf16.mxu1 %v6415_v19  ;;  %v2116_v58 = vld [vmem:[#allocation11 + $0xc8] sm:$0xff] }
 0x217   : > { %1598 = vmatmul.mubr.bf16.vlgmr.msra.gmra.mrb[4].mxu0 %v6417_v22  ;;  %1680 = vmatmul.mubr.bf16.vlgmr.msra.gmra.mrb[4].mxu1 %v6417_v22 }
 0x218   : > { %1607 = vmatpush1.bf16.msra.mxu0 %v5619_v20  ;;  %1689 = vmatpush1.bf16.msra.mxu1 %v5622_v21  ;;  %v5687_v20 = vld [vmem:[#allocation8 + $0x380] ss:$20 sps:$4 sm:$0xff]   ;;  %v5688_v21 = vld [vmem:[#allocation8 + $0x268] ss:$20 sps:$4 sm:$0xff]  }
 0x219   : > { %1608 = vmatprep.subr.bf16.mxu0 %v5627_v23  ;;  %1690 = vmatprep.subr.bf16.mxu1 %v5630_v24  ;;  %v5689_v23 = vld [vmem:[#allocation8 + $0x128] ss:$20 sps:$4 sm:$0xff]  }
 0x21a   : > { %1638 = vmatprep.mubr.bf16.mxu0 %v6032_v1  ;;  %1720 = vmatprep.mubr.bf16.mxu1 %v6032_v1  ;;  %v5690_v24 = vld [vmem:[#allocation8 + $0x3a8] ss:$20 sps:$4 sm:$0xff]  }
 0x21c   : > { %1609 = vmatpush1.bf16.msra.mxu0 %v5625_v25  ;;  %1691 = vmatpush1.bf16.msra.mxu1 %v5628_v26  ;;  %v2091_v25 = vld [vmem:[#allocation11] sm:$0xff] }
 0x21d   : > { %1610 = vmatprep.subr.bf16.mxu0 %v5633_v27  ;;  %1692 = vmatprep.subr.bf16.mxu1 %v5636_v28  ;;  %v2095_v26 = vld [vmem:[#allocation11 + $0x20] sm:$0xff]  ;;  %v2092_v27 = vld [vmem:[#allocation11 + $0x8] sm:$0xff] }
 0x21e   : > { %v4913_v28 = vcombine.high %v2091_v25, %v2095_v26 }
 0x220   : > { %1611 = vmatpush1.bf16.msra.mxu0 %v5631_v29  ;;  %1693 = vmatpush1.bf16.msra.mxu1 %v5634_v30  ;;  %v2096_v29 = vld [vmem:[#allocation11 + $0x28] sm:$0xff]  ;;  %v4912_v30 = vcombine.low %v2091_v25, %v2095_v26  ;;  %v2147_v26 = vld [vmem:[#allocation11 + $0x1c0] sm:$0xff] }
 0x221   : > { %1612 = vmatprep.subr.bf16.mxu0 %v5639_v31  ;;  %1694 = vmatprep.subr.bf16.mxu1 %v5642_v33  ;;  %v4914_v31 = vcombine.low %v2092_v27, %v2096_v29  ;;  %v4915_v33 = vcombine.high %v2092_v27, %v2096_v29  ;;  %v2151_v27 = vld [vmem:[#allocation11 + $0x1e0] sm:$0xff] }
 0x222   : > { %v4969_v29 = vcombine.high %v2147_v26, %v2151_v27 }
 0x224   : > { %1613 = vmatpush1.bf16.msra.mxu0 %v5637_v36  ;;  %1695 = vmatpush1.bf16.msra.mxu1 %v5640_v38  ;;  %v2099_v36 = vld [vmem:[#allocation11 + $0x40] sm:$0xff] }
 0x225   : > { %1614 = vmatprep.subr.bf16.mxu0 %v5645_v40  ;;  %1696 = vmatprep.subr.bf16.mxu1 %v5648_v41  ;;  %v2103_v38 = vld [vmem:[#allocation11 + $0x60] sm:$0xff]  ;;  %v2100_v40 = vld [vmem:[#allocation11 + $0x48] sm:$0xff] }
 0x226   : > { %v2104_v41 = vld [vmem:[#allocation11 + $0x68] sm:$0xff] }
 0x228   : > { %1615 = vmatpush1.bf16.msra.mxu0 %v5643_v42  ;;  %1697 = vmatpush1.bf16.msra.mxu1 %v5646_v43  ;;  %v4920_v42 = vcombine.low %v2099_v36, %v2103_v38  ;;  %v4923_v43 = vcombine.high %v2100_v40, %v2104_v41 }
 0x229   : > { %1616 = vmatprep.subr.bf16.mxu0 %v5651_v44  ;;  %1698 = vmatprep.subr.bf16.mxu1 %v5654_v45  ;;  %v2107_v44 = vld [vmem:[#allocation11 + $0x80] sm:$0xff] }
 0x22a   : > { %v2111_v45 = vld [vmem:[#allocation11 + $0xa0] sm:$0xff] }
 0x22c   : > { %1617 = vmatpush1.bf16.msra.mxu0 %v5649_v49  ;;  %1699 = vmatpush1.bf16.msra.mxu1 %v5652_v50  ;;  %v2108_v49 = vld [vmem:[#allocation11 + $0x88] sm:$0xff]  ;;  %v4929_v50 = vcombine.high %v2107_v44, %v2111_v45 }
 0x22d   : > { %1618 = vmatprep.subr.bf16.mxu0 %v5657_v51  ;;  %1700 = vmatprep.subr.bf16.mxu1 %v5660_v52  ;;  %v2112_v51 = vld [vmem:[#allocation11 + $0xa8] sm:$0xff]  ;;  %v4928_v52 = vcombine.low %v2107_v44, %v2111_v45  ;;  %v2163_v45 = vld [vmem:[#allocation11 + $0x240] sm:$0xff] }
 0x230   : > { %1619 = vmatpush1.bf16.msra.mxu0 %v5655_v53  ;;  %1701 = vmatpush1.bf16.msra.mxu1 %v5658_v54  ;;  %v4930_v53 = vcombine.low %v2108_v49, %v2112_v51  ;;  %v4931_v54 = vcombine.high %v2108_v49, %v2112_v51  ;;  %v2167_v49 = vld [vmem:[#allocation11 + $0x260] sm:$0xff] }
 0x231   : > { %1620 = vmatprep.subr.bf16.mxu0 %v5663_v55  ;;  %1702 = vmatprep.subr.bf16.mxu1 %v5666_v56  ;;  %v2115_v55 = vld [vmem:[#allocation11 + $0xc0] sm:$0xff]  ;;  %v4985_v51 = vcombine.high %v2163_v45, %v2167_v49 }
 0x232   : > { %v2119_v56 = vld [vmem:[#allocation11 + $0xe0] sm:$0xff] }
 0x234   : > { %1621 = vmatpush1.bf16.msra.mxu0 %v5661_v60  ;;  %1703 = vmatpush1.bf16.msra.mxu1 %v5664_v62  ;;  %v4937_v60 = vcombine.high %v2115_v55, %v2119_v56  ;;  %v2120_v62 = vld [vmem:[#allocation11 + $0xe8] sm:$0xff] }
 0x235   : > { %5255 = vmatprep.subr.bf16.mxu0 %v5667_v63  ;;  %5306 = vmatprep.subr.bf16.mxu1 %v6030_v0  ;;  %v4936_v63 = vcombine.low %v2115_v55, %v2119_v56  ;;  %v4938_v2 = vcombine.low %v2116_v58, %v2120_v62  ;;  %v2171_v56 = vld [vmem:[#allocation11 + $0x280] sm:$0xff] }
 0x237   : > { %1639 = vmatmul.mubr.bf16.vlgmr.msra.gmra.mrb[4].mxu0 %v940_v4  ;;  %1721 = vmatmul.mubr.bf16.vlgmr.msra.gmra.mrb[4].mxu1 %v940_v4 }
 0x238   : > { %5256 = vmatpush3.bf16.msra.mxu0 %v5668_v3  ;;  %1761 = vmatprep.mubr.bf16.mxu0 %v6415_v19  ;;  %v5686_v19 = vld [vmem:[#allocation8 + $0x100] ss:$20 sps:$4 sm:$0xff]   ;;  %v4939_v3 = vcombine.high %v2116_v58, %v2120_v62  ;;  %v2175_v58 = vld [vmem:[#allocation11 + $0x2a0] sm:$0xff] }
 0x239   : > { %5307 = vmatpush3.bf16.msra.mxu1 %v5669_v5  ;;  %5257 = vmatprep.subr.bf16.mxu0 %v5670_v59  ;;  %v2127_v5 = vld [vmem:[#allocation11 + $0x120] sm:$0xff]  ;;  %v2124_v59 = vld [vmem:[#allocation11 + $0x108] sm:$0xff]  ;;  %v4993_v62 = vcombine.high %v2171_v56, %v2175_v58 }
 0x23a   : > { %5308 = vmatprep.subr.bf16.mxu1 %v6030_v0  ;;  %5322 = vmatprep.mubr.msk.bf16.mxu1 %vm6031_vm0, %v6030_v0 }
 0x23c   : > { %5258 = vmatpush3.bf16.msra.mxu0 %v5671_v61 }
 0x23d   : > { %5309 = vmatpush3.bf16.msra.mxu1 %v5672_v37  ;;  %5259 = vmatprep.subr.bf16.mxu0 %v5673_v34  ;;  %v2128_v37 = vld [vmem:[#allocation11 + $0x128] sm:$0xff] }
 0x23e   : > { %5310 = vmatprep.subr.bf16.mxu1 %v6030_v0 }
 0x240   : > { %5260 = vmatpush3.bf16.msra.mxu0 %v5674_v32  ;;  %v4946_v32 = vcombine.low %v2124_v59, %v2128_v37 }
 0x241   : > { %5311 = vmatpush3.bf16.msra.mxu1 %v5675_v8  ;;  %5261 = vmatprep.subr.bf16.mxu0 %v5676_v9  ;;  %v4947_v8 = vcombine.high %v2124_v59, %v2128_v37  ;;  %v2131_v9 = vld [vmem:[#allocation11 + $0x140] sm:$0xff] }
 0x242   : > { %5312 = vmatprep.subr.bf16.mxu1 %v6030_v0  ;;  %v2183_v59 = vld [vmem:[#allocation11 + $0x2e0] sm:$0xff] }
 0x244   : > { %5262 = vmatpush3.bf16.msra.mxu0 %v5677_v10  ;;  %v2135_v10 = vld [vmem:[#allocation11 + $0x160] sm:$0xff] }
 0x245   : > { %5313 = vmatpush3.bf16.msra.mxu1 %v5678_v11  ;;  %5263 = vmatprep.subr.bf16.mxu0 %v5679_v12  ;;  %v2132_v11 = vld [vmem:[#allocation11 + $0x148] sm:$0xff]  ;;  %v4953_v12 = vcombine.high %v2131_v9, %v2135_v10 }
 0x246   : > { %5314 = vmatprep.subr.bf16.mxu1 %v6030_v0 }
 0x248   : > { %5264 = vmatpush3.bf16.msra.mxu0 %v5680_v13  ;;  %v2136_v13 = vld [vmem:[#allocation11 + $0x168] sm:$0xff] }
 0x249   : > { %5315 = vmatpush3.bf16.msra.mxu1 %v5681_v14  ;;  %5265 = vmatprep.subr.bf16.mxu0 %v5682_v15  ;;  %v4952_v14 = vcombine.low %v2131_v9, %v2135_v10  ;;  %v4954_v15 = vcombine.low %v2132_v11, %v2136_v13  ;;  %v2187_v10 = vld [vmem:[#allocation11 + $0x300] sm:$0xff] }
 0x24a   : > { %5316 = vmatprep.subr.bf16.mxu1 %v6030_v0 }
 0x24c   : > { %5266 = vmatpush3.bf16.msra.mxu0 %v5683_v16  ;;  %v4955_v16 = vcombine.high %v2132_v11, %v2136_v13  ;;  %v2191_v11 = vld [vmem:[#allocation11 + $0x320] sm:$0xff] }
 0x24d   : > { %5317 = vmatpush3.bf16.msra.mxu1 %v5684_v17  ;;  %5267 = vmatprep.subr.bf16.mxu0 %v5685_v18  ;;  %v2139_v17 = vld [vmem:[#allocation11 + $0x180] sm:$0xff]  ;;  %v5009_v13 = vcombine.high %v2187_v10, %v2191_v11 }
 0x24e   : > { %5318 = vmatprep.subr.bf16.mxu1 %v6030_v0  ;;  %v2143_v18 = vld [vmem:[#allocation11 + $0x1a0] sm:$0xff] }
 0x250   : > { %5268 = vmatpush3.bf16.msra.mxu0 %v5686_v19  ;;  %v2140_v19 = vld [vmem:[#allocation11 + $0x188] sm:$0xff] }
 0x251   : > { %5319 = vmatpush3.bf16.msra.mxu1 %v5687_v20  ;;  %5269 = vmatprep.subr.bf16.mxu0 %v5688_v21  ;;  %v4961_v20 = vcombine.high %v2139_v17, %v2143_v18  ;;  %v2144_v21 = vld [vmem:[#allocation11 + $0x1a8] sm:$0xff] }
 0x252   : > { %5320 = vmatprep.subr.bf16.mxu1 %v6030_v0  ;;  %v4921_v0 = vcombine.high %v2099_v36, %v2103_v38  ;;  %v4963_v25 = vcombine.high %v2140_v19, %v2144_v21  ;;  %v2155_v38 = vld [vmem:[#allocation11 + $0x200] sm:$0xff] }
 0x254   : > { %5270 = vmatpush3.bf16.msra.mxu0 %v5689_v23  ;;  %v4960_v23 = vcombine.low %v2139_v17, %v2143_v18  ;;  %v2195_v18 = vld [vmem:[#allocation11 + $0x340] sm:$0xff] }
 0x255   : > { %5321 = vmatpush3.bf16.msra.mxu1 %v5690_v24  ;;  %4058 = vmatprep.subr.bf16.mxu0 %v4913_v28  ;;  %v4962_v24 = vcombine.low %v2140_v19, %v2144_v21  ;;  %v2148_v28 = vld [vmem:[#allocation11 + $0x1c8] sm:$0xff]  ;;  %v2199_v19 = vld [vmem:[#allocation11 + $0x360] sm:$0xff] }
 0x256   : > { %4181 = vmatprep.subr.bf16.mxu1 %v4915_v33  ;;  %v5017_v21 = vcombine.high %v2195_v18, %v2199_v19 }
 0x257   : > { %1762 = vmatmul.mubr.bf16.vlgmr.msra.gmra.mrb[8].mxu0 %v6417_v22  ;;  %v4922_v22 = vcombine.low %v2100_v40, %v2104_v41  ;;  %v2159_v40 = vld [vmem:[#allocation11 + $0x220] sm:$0xff] }
 0x258   : > { %5323 = vmatmul.mubr.bf16.vlgmr.msra.gmra.mrb[8].mxu1 %v940_v4  ;;  %4059 = vmatpush1.bf16.msra.mxu0 %v4912_v30  ;;  %v2123_v4 = vld [vmem:[#allocation11 + $0x100] sm:$0xff]  ;;  %v2152_v30 = vld [vmem:[#allocation11 + $0x1e8] sm:$0xff]  ;;  %v4977_v41 = vcombine.high %v2155_v38, %v2159_v40 }
 0x259   : > { %4182 = vmatpush1.bf16.msra.mxu1 %v4914_v31  ;;  %4060 = vmatprep.subr.bf16.mxu0 %v4921_v0  ;;  %v4945_v61 = vcombine.high %v2123_v4, %v2127_v5  ;;  %v4944_v34 = vcombine.low %v2123_v4, %v2127_v5  ;;  %v4968_v31 = vcombine.low %v2147_v26, %v2151_v27  ;;  %v2156_v0 = vld [vmem:[#allocation11 + $0x208] sm:$0xff]  ;;  %v2179_v5 = vld [vmem:[#allocation11 + $0x2c0] sm:$0xff] }
 0x25a   : > { %4183 = vmatprep.subr.bf16.mxu1 %v4923_v43  ;;  %v4970_v33 = vcombine.low %v2148_v28, %v2152_v30  ;;  %v4971_v36 = vcombine.high %v2148_v28, %v2152_v30  ;;  %v5001_v37 = vcombine.high %v2179_v5, %v2183_v59  ;;  %v2203_v27 = vld [vmem:[#allocation11 + $0x380] sm:$0xff] }
 0x25b   : > { %v2207_v28 = vld [vmem:[#allocation11 + $0x3a0] sm:$0xff] }
 0x25c   : > { %4061 = vmatpush1.bf16.msra.mxu0 %v4920_v42  ;;  %v2160_v42 = vld [vmem:[#allocation11 + $0x228] sm:$0xff]  ;;  %v5025_v30 = vcombine.high %v2203_v27, %v2207_v28 }
 0x25d   : > { %4184 = vmatpush1.bf16.msra.mxu1 %v4922_v22  ;;  %4062 = vmatprep.subr.bf16.mxu0 %v4929_v50  ;;  %v4976_v22 = vcombine.low %v2155_v38, %v2159_v40  ;;  %v4978_v43 = vcombine.low %v2156_v0, %v2160_v42  ;;  %v4979_v44 = vcombine.high %v2156_v0, %v2160_v42  ;;  %v2164_v50 = vld [vmem:[#allocation11 + $0x248] sm:$0xff]  ;;  %v2211_v40 = vld [vmem:[#allocation11 + $0x3c0] sm:$0xff] }
 0x25e   : > { %4185 = vmatprep.subr.bf16.mxu1 %v4931_v54  ;;  %v2215_v0 = vld [vmem:[#allocation11 + $0x3e0] sm:$0xff] }
 0x25f   : > { %v5033_v42 = vcombine.high %v2211_v40, %v2215_v0 }
 0x260   : > { %4063 = vmatpush1.bf16.msra.mxu0 %v4928_v52  ;;  %v2168_v52 = vld [vmem:[#allocation11 + $0x268] sm:$0xff] }
 0x261   : > { %4186 = vmatpush1.bf16.msra.mxu1 %v4930_v53  ;;  %4064 = vmatprep.subr.bf16.mxu0 %v4937_v60  ;;  %v4984_v53 = vcombine.low %v2163_v45, %v2167_v49  ;;  %v4986_v54 = vcombine.low %v2164_v50, %v2168_v52  ;;  %v4987_v55 = vcombine.high %v2164_v50, %v2168_v52  ;;  %v2172_v60 = vld [vmem:[#allocation11 + $0x288] sm:$0xff]  ;;  %v6440_v49 = vld [vmem:[#allocation11 + $0x400] sm:$0xff] }
 0x262   : > { %4187 = vmatprep.subr.bf16.mxu1 %v4939_v3  ;;  %v6442_v50 = vld [vmem:[#allocation11 + $0x420] sm:$0xff] }
 0x263   : > { %v5041_v52 = vcombine.high %v6440_v49, %v6442_v50 }
 0x264   : > { %4065 = vmatpush1.bf16.msra.mxu0 %v4936_v63  ;;  %v2176_v63 = vld [vmem:[#allocation11 + $0x2a8] sm:$0xff] }
 0x265   : > { %4188 = vmatpush1.bf16.msra.mxu1 %v4938_v2  ;;  %4066 = vmatprep.subr.bf16.mxu0 %v4945_v61  ;;  %v4992_v2 = vcombine.low %v2171_v56, %v2175_v58  ;;  %v4994_v3 = vcombine.low %v2172_v60, %v2176_v63  ;;  %v4995_v4 = vcombine.high %v2172_v60, %v2176_v63  ;;  %v2180_v61 = vld [vmem:[#allocation11 + $0x2c8] sm:$0xff] }
 0x266   : > { %4189 = vmatprep.subr.bf16.mxu1 %v4947_v8 }
 0x268   : > { %4067 = vmatpush1.bf16.msra.mxu0 %v4944_v34  ;;  %v2184_v34 = vld [vmem:[#allocation11 + $0x2e8] sm:$0xff] }
 0x269   : > { %4190 = vmatpush1.bf16.msra.mxu1 %v4946_v32  ;;  %4068 = vmatprep.subr.bf16.mxu0 %v4953_v12  ;;  %v5000_v32 = vcombine.low %v2179_v5, %v2183_v59  ;;  %v5002_v8 = vcombine.low %v2180_v61, %v2184_v34  ;;  %v5003_v9 = vcombine.high %v2180_v61, %v2184_v34  ;;  %v2188_v12 = vld [vmem:[#allocation11 + $0x308] sm:$0xff] }
 0x26a   : > { %4191 = vmatprep.subr.bf16.mxu1 %v4955_v16 }
 0x26c   : > { %4069 = vmatpush1.bf16.msra.mxu0 %v4952_v14  ;;  %v2192_v14 = vld [vmem:[#allocation11 + $0x328] sm:$0xff] }
 0x26d   : > { %4192 = vmatpush1.bf16.msra.mxu1 %v4954_v15  ;;  %4070 = vmatprep.subr.bf16.mxu0 %v4961_v20  ;;  %v5008_v15 = vcombine.low %v2187_v10, %v2191_v11  ;;  %v5010_v16 = vcombine.low %v2188_v12, %v2192_v14  ;;  %v5011_v17 = vcombine.high %v2188_v12, %v2192_v14  ;;  %v2196_v20 = vld [vmem:[#allocation11 + $0x348] sm:$0xff] }
 0x26e   : > { %4193 = vmatprep.subr.bf16.mxu1 %v4963_v25 }
 0x270   : > { %4071 = vmatpush1.bf16.msra.mxu0 %v4960_v23  ;;  %v2200_v23 = vld [vmem:[#allocation11 + $0x368] sm:$0xff] }
 0x271   : > { %4194 = vmatpush1.bf16.msra.mxu1 %v4962_v24  ;;  %4072 = vmatprep.subr.bf16.mxu0 %v4969_v29  ;;  %v5016_v24 = vcombine.low %v2195_v18, %v2199_v19  ;;  %v5018_v25 = vcombine.low %v2196_v20, %v2200_v23  ;;  %v5019_v26 = vcombine.high %v2196_v20, %v2200_v23  ;;  %v2204_v29 = vld [vmem:[#allocation11 + $0x388] sm:$0xff] }
 0x272   : > { %4195 = vmatprep.subr.bf16.mxu1 %v4971_v36 }
 0x274   : > { %4073 = vmatpush1.bf16.msra.mxu0 %v4968_v31  ;;  %v2208_v31 = vld [vmem:[#allocation11 + $0x3a8] sm:$0xff] }
 0x275   : > { %4196 = vmatpush1.bf16.msra.mxu1 %v4970_v33  ;;  %4074 = vmatprep.subr.bf16.mxu0 %v4977_v41  ;;  %v5024_v33 = vcombine.low %v2203_v27, %v2207_v28  ;;  %v5026_v36 = vcombine.low %v2204_v29, %v2208_v31  ;;  %v5027_v38 = vcombine.high %v2204_v29, %v2208_v31  ;;  %v2212_v41 = vld [vmem:[#allocation11 + $0x3c8] sm:$0xff] }
 0x276   : > { %4197 = vmatprep.subr.bf16.mxu1 %v4979_v44 }
 0x278   : > { %4075 = vmatpush1.bf16.msra.mxu0 %v4976_v22  ;;  %v2216_v22 = vld [vmem:[#allocation11 + $0x3e8] sm:$0xff] }
 0x279   : > { %4198 = vmatpush1.bf16.msra.mxu1 %v4978_v43  ;;  %4076 = vmatprep.subr.bf16.mxu0 %v4985_v51  ;;  %v5032_v43 = vcombine.low %v2211_v40, %v2215_v0  ;;  %v5034_v44 = vcombine.low %v2212_v41, %v2216_v22  ;;  %v5035_v45 = vcombine.high %v2212_v41, %v2216_v22  ;;  %v6444_v51 = vld [vmem:[#allocation11 + $0x408] sm:$0xff] }
 0x27a   : > { %4199 = vmatprep.subr.bf16.mxu1 %v4987_v55 }
 0x27c   : > { %4077 = vmatpush1.bf16.msra.mxu0 %v4984_v53  ;;  %v6448_v53 = vld [vmem:[#allocation11 + $0x428] sm:$0xff] }
 0x27d   : > { %4200 = vmatpush1.bf16.msra.mxu1 %v4986_v54  ;;  %4078 = vmatprep.subr.bf16.mxu0 %v4993_v62  ;;  %v5040_v54 = vcombine.low %v6440_v49, %v6442_v50  ;;  %v5042_v55 = vcombine.low %v6444_v51, %v6448_v53  ;;  %v5043_v56 = vcombine.high %v6444_v51, %v6448_v53  ;;  %v2248_v49 = vld [vmem:[#allocation11 + $0x4e8] sm:$0xff] }
 0x27e   : > { %4201 = vmatprep.subr.bf16.mxu1 %v4995_v4 }
 0x280   : > { %4079 = vmatpush1.bf16.msra.mxu0 %v4992_v2 }
 0x281   : > { %4202 = vmatpush1.bf16.msra.mxu1 %v4994_v3  ;;  %4080 = vmatprep.subr.bf16.mxu0 %v5001_v37 }
 0x282   : > { %4203 = vmatprep.subr.bf16.mxu1 %v5003_v9 }
 0x284   : > { %4081 = vmatpush1.bf16.msra.mxu0 %v5000_v32 }
 0x285   : > { %4204 = vmatpush1.bf16.msra.mxu1 %v5002_v8  ;;  %4082 = vmatprep.subr.bf16.mxu0 %v5009_v13 }
 0x286   : > { %4205 = vmatprep.subr.bf16.mxu1 %v5011_v17 }
 0x288   : > { %4083 = vmatpush1.bf16.msra.mxu0 %v5008_v15 }
 0x289   : > { %4206 = vmatpush1.bf16.msra.mxu1 %v5010_v16  ;;  %4084 = vmatprep.subr.bf16.mxu0 %v5017_v21 }
 0x28a   : > { %4207 = vmatprep.subr.bf16.mxu1 %v5019_v26 }
 0x28c   : > { %4085 = vmatpush1.bf16.msra.mxu0 %v5016_v24 }
 0x28d   : > { %4208 = vmatpush1.bf16.msra.mxu1 %v5018_v25  ;;  %4086 = vmatprep.subr.bf16.mxu0 %v5025_v30 }
 0x28e   : > { %4209 = vmatprep.subr.bf16.mxu1 %v5027_v38 }
 0x290   : > { %4087 = vmatpush1.bf16.msra.mxu0 %v5024_v33 }
 0x291   : > { %4210 = vmatpush1.bf16.msra.mxu1 %v5026_v36  ;;  %4088 = vmatprep.subr.bf16.mxu0 %v5033_v42 }
 0x292   : > { %4211 = vmatprep.subr.bf16.mxu1 %v5035_v45 }
 0x294   : > { %4089 = vmatpush1.bf16.msra.mxu0 %v5032_v43 }
 0x295   : > { %4212 = vmatpush1.bf16.msra.mxu1 %v5034_v44  ;;  %4099 = vmatprep.subr.bf16.mxu0 %v5041_v52 }
 0x296   : > { %4222 = vmatprep.subr.bf16.mxu1 %v5043_v56 }
 0x30a   : > { %v6456_v58 = vpop.f32.mrb[4].mxu0  ;;  %v6458_v60 = vpop.f32.mrb[4].mxu1 }
 0x30b   : > { %v1809_v62 = vrot.slane %v6456_v58, 4  ;;  %v1821_v63 = vrot.slane %v6458_v60, 4  ;;  %v6462_v2 = vpop.f32.mrb[5].mxu0  ;;  %v6464_v3 = vpop.f32.mrb[5].mxu1 }
 0x30c   : > { %v1815_v4 = vrot.slane %v6462_v2, 4  ;;  %v1827_v5 = vrot.slane %v6464_v3, 4  ;;  %v1644_v59 = vpop.f32.mrb[6].mxu0  ;;  %v1726_v61 = vpop.f32.mrb[6].mxu1 }
 0x30d   : > { %v1810_v37 = vadd.f32 %v1809_v62, %v6456_v58  ;;  %v1822_v34 = vadd.f32 %v1821_v63, %v6458_v60  ;;  %v1645_v32 = vpop.f32.mrb[7].mxu0  ;;  %v1727_v8 = vpop.f32.mrb[7].mxu1 }
 0x30e   : > { %v1816_v9 = vadd.f32 %v1815_v4, %v6462_v2  ;;  %v1828_v10 = vadd.f32 %v1827_v5, %v6464_v3 }
 0x30f   : > { %v1811_v11 = vrot.slane %v1810_v37, 2  ;;  %v1823_v12 = vrot.slane %v1822_v34, 2 }
 0x310   : > { %v1817_v13 = vrot.slane %v1816_v9, 2  ;;  %v1829_v14 = vrot.slane %v1828_v10, 2 }
 0x311   : > { %v1812_v15 = vadd.f32 %v1811_v11, %v1810_v37  ;;  %v1824_v16 = vadd.f32 %v1823_v12, %v1822_v34 }
 0x312   : > { %v1818_v17 = vadd.f32 %v1817_v13, %v1816_v9  ;;  %v1830_v18 = vadd.f32 %v1829_v14, %v1828_v10 }
 0x313   : > { %v1813_v19 = vrot.slane %v1812_v15, 1  ;;  %v1825_v20 = vrot.slane %v1824_v16, 1 }
 0x314   : > { %v1819_v21 = vrot.slane %v1818_v17, 1  ;;  %v1831_v23 = vrot.slane %v1830_v18, 1 }
 0x315   : > { %v1814_v24 = vadd.f32 %v1813_v19, %v1812_v15  ;;  %v1826_v25 = vadd.f32 %v1825_v20, %v1824_v16 }
 0x316   : > { %v1820_v26 = vadd.f32 %v1819_v21, %v1818_v17  ;;  %v1832_v27 = vadd.f32 %v1831_v23, %v1830_v18 }
 0x317   : > { %v6472_v28 = vmul.f32 0.125, %v1814_v24  ;;  %v6474_v29 = vmul.f32 0.125, %v1826_v25 }
 0x318   : > { %v6476_v30 = vmul.f32 0.125, %v1820_v26  ;;  %v6478_v31 = vmul.f32 0.125, %v1832_v27 }
 0x319   : > { %v1844_v33 = vsub.f32 %v6456_v58, %v6472_v28  ;;  %v1846_v36 = vsub.f32 %v6458_v60, %v6474_v29 }
 0x31a   : > { %v1845_v38 = vsub.f32 %v6462_v2, %v6476_v30  ;;  %v1847_v40 = vsub.f32 %v6464_v3, %v6478_v31 }
 0x31b   : > { %v1849_v0 = vmul.f32 %v1844_v33, %v1844_v33  ;;  %v1851_v41 = vmul.f32 %v1846_v36, %v1846_v36 }
 0x31c   : > { %v1850_v42 = vmul.f32 %v1845_v38, %v1845_v38  ;;  %v1852_v22 = vmul.f32 %v1847_v40, %v1847_v40 }
 0x31d   : > { %v1854_v43 = vrot.slane %v1849_v0, 4  ;;  %v1866_v44 = vrot.slane %v1851_v41, 4 }
 0x31e   : > { %v1860_v45 = vrot.slane %v1850_v42, 4  ;;  %v1872_v52 = vrot.slane %v1852_v22, 4 }
 0x31f   : > { %v1855_v56 = vadd.f32 %v1854_v43, %v1849_v0  ;;  %v1867_v62 = vadd.f32 %v1866_v44, %v1851_v41 }
 0x320   : > { %v1861_v63 = vadd.f32 %v1860_v45, %v1850_v42  ;;  %v1873_v4 = vadd.f32 %v1872_v52, %v1852_v22 }
 0x321   : > { %v1856_v5 = vrot.slane %v1855_v56, 2  ;;  %v1868_v59 = vrot.slane %v1867_v62, 2 }
 0x322   : > { %v1862_v61 = vrot.slane %v1861_v63, 2  ;;  %v1874_v37 = vrot.slane %v1873_v4, 2 }
 0x323   : > { %v1857_v34 = vadd.f32 %v1856_v5, %v1855_v56  ;;  %v1869_v32 = vadd.f32 %v1868_v59, %v1867_v62 }
 0x324   : > { %v1863_v8 = vadd.f32 %v1862_v61, %v1861_v63  ;;  %v1875_v9 = vadd.f32 %v1874_v37, %v1873_v4  ;;  %v936_v61 = vld [vmem:[#allocation10] sm:$0xff] }
 0x325   : > { %v1858_v10 = vrot.slane %v1857_v34, 1  ;;  %v1870_v11 = vrot.slane %v1869_v32, 1 }
 0x326   : > { %v1864_v12 = vrot.slane %v1863_v8, 1  ;;  %v1876_v13 = vrot.slane %v1875_v9, 1 }
 0x327   : > { %v1859_v14 = vadd.f32 %v1858_v10, %v1857_v34  ;;  %v1871_v15 = vadd.f32 %v1870_v11, %v1869_v32  ;;  %v1948_v32 = vsub.s32 6, %v6371_v35 }
 0x328   : > { %v1865_v16 = vadd.f32 %v1864_v12, %v1863_v8  ;;  %v1877_v17 = vadd.f32 %v1876_v13, %v1875_v9 }
 0x329   : > { %v1884_v18 = vmul.f32 0.125, %v1859_v14  ;;  %v1886_v19 = vmul.f32 0.125, %v1871_v15 }
 0x32a   : > { %v1885_v20 = vmul.f32 0.125, %v1865_v16  ;;  %v1887_v21 = vmul.f32 0.125, %v1877_v17  ;;  %v5271_v23 = vpop.f32.mrb[8].mxu0 }
 0x32b   : > { %v1889_v24 = vadd.f32 1e-05, %v1884_v18  ;;  %v1891_v25 = vadd.f32 1e-05, %v1886_v19  ;;  %v1803_v26 = vpop.f32.mrb[8].mxu1  ;;  %v5272_v27 = vpop.f32.mrb[9].mxu0 }
 0x32c   : > { %v1890_v33 = vadd.f32 1e-05, %v1885_v20  ;;  %v1892_v36 = vadd.f32 1e-05, %v1887_v21  ;;  %v5273_v38 = vadd.f32 %v5272_v27, %v5271_v23  ;;  %v5324_v40 = vpop.f32.mrb[9].mxu1  ;;  %v5274_v0 = vpop.f32.mrb[10].mxu0 }
 0x32d   : > { %5697 = vrsqrt.f32 %v1889_v24  ;;  %v1806_v41 = vpop.f32.mrb[10].mxu1  ;;  %v5275_v42 = vpop.f32.mrb[11].mxu0  ;;  %v2040_v40 = vsub.s32 7, %v6371_v35 }
 0x32e   : > { %5699 = vrsqrt.f32 %v1891_v25  ;;  %v6488_v22 = vadd.f32 %v5273_v38, %v1803_v26  ;;  %v5325_v43 = vpop.f32.mrb[11].mxu1 }
 0x32f   : > { %5701 = vrsqrt.f32 %v1890_v33 }
 0x330   : > { %5703 = vrsqrt.f32 %v1892_v36  ;;  %v1833_v63 = vrot.slane %v6488_v22, 4 }
 0x332   : > { %v1834_v37 = vadd.f32 %v1833_v63, %v6488_v22 }
 0x334   : > { %v1835_v9 = vrot.slane %v1834_v37, 2 }
 0x336   : > { %v1836_v19 = vadd.f32 %v1835_v9, %v1834_v37 }
 0x337   : > { %v5698_v44 = vpop.eup %5697 }
 0x338   : > { %v5700_v45 = vpop.eup %5699  ;;  %v1837_v33 = vrot.slane %v1836_v19, 1 }
 0x339   : > { %v5702_v52 = vpop.eup %5701 }
 0x33a   : > { %v5704_v56 = vpop.eup %5703  ;;  %v1904_v62 = vcombine.low %v5698_v44, %v5702_v52  ;;  %v1838_v0 = vadd.f32 %v1837_v33, %v1836_v19  ;;  %v2244_v33 = vld [vmem:[#allocation11 + $0x4c8] sm:$0xff] }
 0x33b   : > { %v1905_v4 = vcombine.low %v5700_v45, %v5704_v56 }
 0x33c   : > { %v1912_v5 = vrot.slane %v1904_v62, %v6374_v39  ;;  %v6520_v43 = vmul.f32 0.125, %v1838_v0  ;;  %v2252_v0 = vld [vmem:[#allocation11 + $0x508] sm:$0xff] }
 0x33d   : > { %v1919_v59 = vrot.slane %v1905_v4, %v6374_v39 }
 0x33f   : > { %v1920_v34 = vcombine.low %v1912_v5, %v1919_v59  ;;  %v1848_v5 = vsub.f32 %v6488_v22, %v6520_v43 }
 0x341   : > { %v1930_v8 = vmul.f32 %v1920_v34, %v936_v61  ;;  %v2227_v34 = vld [vmem:[#allocation11 + $0x440] sm:$0xff] }
 0x343   : > { %v1937_v10 = vrot.slane %v1930_v8, %v6379_v46  ;;  %v1941_v11 = vrot.slane %v1930_v8, %v6382_v47  ;;  %v1945_v12 = vrot.slane %v1930_v8, %v6385_v48  ;;  %v1949_v13 = vrot.slane %v1930_v8, %v1948_v32 }
 0x345   : > { %v1959_v14 = vmul.f32 %v1937_v10, %v6472_v28  ;;  %v1960_v15 = vmul.f32 %v1941_v11, %v6476_v30  ;;  %v1961_v16 = vmul.f32 %v1945_v12, %v6474_v29  ;;  %v1962_v17 = vmul.f32 %v1949_v13, %v6478_v31 }
 0x346   : > { %v2014_v18 = vrot.slane %v1949_v13, %v6379_v46  ;;  %v2006_v20 = vrot.slane %v1941_v11, %v6379_v46  ;;  %v2002_v21 = vrot.slane %v1937_v10, %v6379_v46  ;;  %v2010_v25 = vrot.slane %v1945_v12, %v6379_v46  ;;  %v2231_v10 = vld [vmem:[#allocation11 + $0x460] sm:$0xff]  ;;  %v2228_v11 = vld [vmem:[#allocation11 + $0x448] sm:$0xff] }
 0x347   : > { %v1969_v23 = vcombine.low %v1959_v14, %v1960_v15  ;;  %v1970_v24 = vcombine.low %v1961_v16, %v1962_v17  ;;  %v2232_v12 = vld [vmem:[#allocation11 + $0x468] sm:$0xff]  ;;  %v1853_v16 = vmul.f32 %v1848_v5, %v1848_v5  ;;  %v2235_v17 = vld [vmem:[#allocation11 + $0x480] sm:$0xff] }
 0x348   : > { %v2022_v26 = vmul.f32 %v2014_v18, %v6464_v3  ;;  %v2020_v28 = vmul.f32 %v2006_v20, %v6462_v2  ;;  %v2019_v30 = vmul.f32 %v2002_v21, %v6456_v58  ;;  %v2021_v27 = vmul.f32 %v2010_v25, %v6458_v60  ;;  %v2239_v20 = vld [vmem:[#allocation11 + $0x4a0] sm:$0xff]  ;;  %v2236_v21 = vld [vmem:[#allocation11 + $0x488] sm:$0xff] }
 0x349   : > { %v1977_v29 = vrot.slane %v1969_v23, %v6374_v39  ;;  %v1984_v31 = vrot.slane %v1970_v24, %v6374_v39  ;;  %v5049_v18 = vcombine.high %v2227_v34, %v2231_v10  ;;  %v5051_v19 = vcombine.high %v2228_v11, %v2232_v12  ;;  %v2240_v23 = vld [vmem:[#allocation11 + $0x4a8] sm:$0xff] }
 0x34a   : > { %v5048_v25 = vcombine.low %v2227_v34, %v2231_v10  ;;  %v5056_v50 = vcombine.low %v2235_v17, %v2239_v20  ;;  %v5058_v51 = vcombine.low %v2236_v21, %v2240_v23  ;;  %v2271_v34 = vld [vmem:[#allocation11 + $0x5a0] sm:$0xff] }
 0x34b   : > { %v1985_v36 = vcombine.low %v1977_v29, %v1984_v31  ;;  %v5059_v29 = vcombine.high %v2236_v21, %v2240_v23  ;;  %v2243_v31 = vld [vmem:[#allocation11 + $0x4c0] sm:$0xff] }
 0x34d   : > { %v1993_v38 = vrot.slane %v1985_v36, 7  ;;  %v2251_v36 = vld [vmem:[#allocation11 + $0x500] sm:$0xff] }
 0x34f   : > { %v1997_v41 = vsub.f32 %v936_v61, %v1993_v38  ;;  %v2255_v38 = vld [vmem:[#allocation11 + $0x520] sm:$0xff] }
 0x351   : > { %v2041_v3 = vrot.slane %v1997_v41, %v2040_v40  ;;  %v2033_v2 = vrot.slane %v1997_v41, %v6402_v6  ;;  %v2029_v58 = vrot.slane %v1997_v41, %v6399_v57  ;;  %v2037_v42 = vrot.slane %v1997_v41, %v6405_v7  ;;  %v2256_v41 = vld [vmem:[#allocation11 + $0x528] sm:$0xff] }
 0x353   : > { %v2066_v60 = vrot.slane %v2041_v3, %v6399_v57  ;;  %v2058_v44 = vrot.slane %v2033_v2, %v6399_v57  ;;  %v2054_v45 = vrot.slane %v2029_v58, %v6399_v57  ;;  %v2062_v52 = vrot.slane %v2037_v42, %v6399_v57 }
 0x354   : > { %v5066_v2 = vcombine.low %v2244_v33, %v2248_v49  ;;  %v5073_v42 = vcombine.high %v2251_v36, %v2255_v38 }
 0x355   : > { %v2074_v56 = vadd.f32 %v2066_v60, %v2022_v26  ;;  %v2072_v62 = vadd.f32 %v2058_v44, %v2020_v28  ;;  %v2071_v63 = vadd.f32 %v2054_v45, %v2019_v30  ;;  %v6526_v4 = vadd.f32 %v2062_v52, %v2021_v27  ;;  %v2247_v27 = vld [vmem:[#allocation11 + $0x4e0] sm:$0xff]  ;;  %v2260_v52 = vld [vmem:[#allocation11 + $0x548] sm:$0xff] }
 0x356   : > { %v5050_v26 = vcombine.low %v2228_v11, %v2232_v12  ;;  %v1878_v28 = vrot.slane %v1853_v16, 4  ;;  %v5057_v30 = vcombine.high %v2235_v17, %v2239_v20  ;;  %v5064_v3 = vcombine.low %v2243_v31, %v2247_v27  ;;  %v2259_v44 = vld [vmem:[#allocation11 + $0x540] sm:$0xff]  ;;  %v2280_v20 = vld [vmem:[#allocation11 + $0x5e8] sm:$0xff] }
 0x357   : > { %vm2077_vm4 = vcmp.gt.f32.partialorder %v2072_v62, 0.0  ;;  %v2082_v59 = vmul.f32 0.2, %v2072_v62  ;;  %vm2076_vm5 = vcmp.gt.f32.partialorder %v2071_v63, 0.0  ;;  %v2081_v61 = vmul.f32 0.2, %v2071_v63 }
 0x358   : > { %vm2079_vm6 = vcmp.gt.f32.partialorder %v2074_v56, 0.0  ;;  %v2084_v37 = vmul.f32 0.2, %v2074_v56  ;;  %v1879_v53 = vadd.f32 %v1878_v28, %v1853_v16  ;;  %v5075_v60 = vcombine.high %v2252_v0, %v2256_v41  ;;  %v2263_v45 = vld [vmem:[#allocation11 + $0x560] sm:$0xff] }
 0x359   : > { %v2087_v8 = vsel %vm2077_vm4, %v2072_v62, %v2082_v59  ;;  %v2086_v9 = vsel %vm2076_vm5, %v2071_v63, %v2081_v61  ;;  %v5072_v62 = vcombine.low %v2251_v36, %v2255_v38  ;;  %v5074_v63 = vcombine.low %v2252_v0, %v2256_v41  ;;  %v2275_v17 = vld [vmem:[#allocation11 + $0x5c0] sm:$0xff]  ;;  %v2292_v36 = vld [vmem:[#allocation11 + $0x648] sm:$0xff] }
 0x35a   : > { %v6530_v13 = vpack.c.bf16 %v2087_v8, %v2087_v8  ;;  %v6532_v14 = vpack.c.bf16 %v2086_v9, %v2086_v9  ;;  %v2089_v15 = vsel %vm2079_vm6, %v2074_v56, %v2084_v37  ;;  %v1880_v58 = vrot.slane %v1879_v53, 2  ;;  %v2264_v56 = vld [vmem:[#allocation11 + $0x568] sm:$0xff]  ;;  %v2267_v37 = vld [vmem:[#allocation11 + $0x580] sm:$0xff] }
 0x35b   : > { %v6538_v24 = vpack.c.bf16 %v2089_v15, %v2089_v15  ;;  %v5081_v59 = vcombine.high %v2259_v44, %v2263_v45  ;;  %v5083_v61 = vcombine.high %v2260_v52, %v2264_v56  ;;  %v2268_v8 = vld [vmem:[#allocation11 + $0x588] sm:$0xff]  ;;  %v5080_v10 = vcombine.low %v2259_v44, %v2263_v45 }
 0x35c   : > { %4090 = vmatprep.mubr.bf16.mxu0 %v6530_v13  ;;  %4213 = vmatprep.mubr.bf16.mxu1 %v6530_v13  ;;  %v1881_v5 = vadd.f32 %v1880_v58, %v1879_v53  ;;  %v2272_v9 = vld [vmem:[#allocation11 + $0x5a8] sm:$0xff]  ;;  %v5082_v11 = vcombine.low %v2260_v52, %v2264_v56  ;;  %v5089_v15 = vcombine.high %v2267_v37, %v2271_v34  ;;  %vm2078_vm7 = vcmp.gt.f32.partialorder %v6526_v4, 0.0 }
 0x35d   : > { %4091 = vmatmul.mubr.bf16.vlgmr.msra.gmra.mrb[12].mxu0 %v6532_v14  ;;  %4214 = vmatmul.mubr.bf16.vlgmr.msra.gmra.mrb[12].mxu1 %v6532_v14  ;;  %v5091_v16 = vcombine.high %v2268_v8, %v2272_v9  ;;  %v5088_v21 = vcombine.low %v2267_v37, %v2271_v34  ;;  %v5090_v23 = vcombine.low %v2268_v8, %v2272_v9  ;;  %v2296_v38 = vld [vmem:[#allocation11 + $0x668] sm:$0xff] }
 0x35e   : > { %4100 = vmatpush1.bf16.msra.mxu0 %v5040_v54  ;;  %4223 = vmatpush1.bf16.msra.mxu1 %v5042_v55  ;;  %v5065_v54 = vcombine.high %v2243_v31, %v2247_v27  ;;  %v5067_v55 = vcombine.high %v2244_v33, %v2248_v49  ;;  %v1882_v12 = vrot.slane %v1881_v5, 1  ;;  %v2284_v31 = vld [vmem:[#allocation11 + $0x608] sm:$0xff]  ;;  %v5115_v58 = vcombine.high %v2292_v36, %v2296_v38 }
 0x35f   : > { %4131 = vmatprep.mubr.bf16.mxu0 %v6538_v24  ;;  %4254 = vmatprep.mubr.bf16.mxu1 %v6538_v24  ;;  %v2288_v27 = vld [vmem:[#allocation11 + $0x628] sm:$0xff]  ;;  %v5114_v56 = vcombine.low %v2292_v36, %v2296_v38 }
 0x360   : > { %4101 = vmatprep.subr.bf16.mxu0 %v5049_v18  ;;  %4224 = vmatprep.subr.bf16.mxu1 %v5051_v19  ;;  %v2279_v18 = vld [vmem:[#allocation11 + $0x5e0] sm:$0xff]  ;;  %v2276_v19 = vld [vmem:[#allocation11 + $0x5c8] sm:$0xff]  ;;  %v5107_v53 = vcombine.high %v2284_v31, %v2288_v27  ;;  %v5106_v41 = vcombine.low %v2284_v31, %v2288_v27 }
 0x361   : > { %v5099_v28 = vcombine.high %v2276_v19, %v2280_v20  ;;  %v5096_v33 = vcombine.low %v2275_v17, %v2279_v18  ;;  %v5098_v49 = vcombine.low %v2276_v19, %v2280_v20  ;;  %v2300_v44 = vld [vmem:[#allocation11 + $0x688] sm:$0xff] }
 0x362   : > { %4102 = vmatpush1.bf16.msra.mxu0 %v5048_v25  ;;  %4225 = vmatpush1.bf16.msra.mxu1 %v5050_v26  ;;  %v1883_v25 = vadd.f32 %v1882_v12, %v1881_v5  ;;  %v5097_v26 = vcombine.high %v2275_v17, %v2279_v18  ;;  %v2304_v45 = vld [vmem:[#allocation11 + $0x6a8] sm:$0xff]  ;;  %v2307_v5 = vld [vmem:[#allocation11 + $0x6c0] sm:$0xff] }
 0x363   : > { %4103 = vmatprep.subr.bf16.mxu0 %v5057_v30  ;;  %4226 = vmatprep.subr.bf16.mxu1 %v5059_v29  ;;  %v2283_v30 = vld [vmem:[#allocation11 + $0x600] sm:$0xff]  ;;  %v2312_v37 = vld [vmem:[#allocation11 + $0x6e8] sm:$0xff]  ;;  %v5122_v8 = vcombine.low %v2300_v44, %v2304_v45 }
 0x364   : > { %v2287_v29 = vld [vmem:[#allocation11 + $0x620] sm:$0xff] }
 0x365   : > { %v5104_v0 = vcombine.low %v2283_v30, %v2287_v29  ;;  %v2319_v12 = vld [vmem:[#allocation11 + $0x720] sm:$0xff] }
 0x366   : > { %4104 = vmatpush1.bf16.msra.mxu0 %v5056_v50  ;;  %4227 = vmatpush1.bf16.msra.mxu1 %v5058_v51  ;;  %v1888_v50 = vmul.f32 0.125, %v1883_v25  ;;  %v5105_v51 = vcombine.high %v2283_v30, %v2287_v29  ;;  %v2324_v25 = vld [vmem:[#allocation11 + $0x748] sm:$0xff] }
 0x367   : > { %4105 = vmatprep.subr.bf16.mxu0 %v5065_v54  ;;  %4228 = vmatprep.subr.bf16.mxu1 %v5067_v55  ;;  %v2291_v54 = vld [vmem:[#allocation11 + $0x640] sm:$0xff] }
 0x368   : > { %v2295_v55 = vld [vmem:[#allocation11 + $0x660] sm:$0xff] }
 0x369   : > { %v5112_v52 = vcombine.low %v2291_v54, %v2295_v55 }
 0x36a   : > { %4106 = vmatpush1.bf16.msra.mxu0 %v5064_v3  ;;  %4229 = vmatpush1.bf16.msra.mxu1 %v5066_v2  ;;  %v1893_v3 = vadd.f32 1e-05, %v1888_v50  ;;  %v5113_v2 = vcombine.high %v2291_v54, %v2295_v55  ;;  %v2335_v50 = vld [vmem:[#allocation11 + $0x7a0] sm:$0xff]  ;;  %v6549_v54 = vld [vmem:[#allocation10 + $0x8] sm:$0x3] }
 0x36b   : > { %4107 = vmatprep.subr.bf16.mxu0 %v5073_v42  ;;  %4230 = vmatprep.subr.bf16.mxu1 %v5075_v60  ;;  %v2299_v42 = vld [vmem:[#allocation11 + $0x680] sm:$0xff] }
 0x36c   : > { %v2303_v60 = vld [vmem:[#allocation11 + $0x6a0] sm:$0xff]  ;;  %5705 = vrsqrt.f32 %v1893_v3 }
 0x36d   : > { %v5120_v34 = vcombine.low %v2299_v42, %v2303_v60 }
 0x36e   : > { %4108 = vmatpush1.bf16.msra.mxu0 %v5072_v62  ;;  %4231 = vmatpush1.bf16.msra.mxu1 %v5074_v63  ;;  %v5121_v62 = vcombine.high %v2299_v42, %v2303_v60  ;;  %v5123_v63 = vcombine.high %v2300_v44, %v2304_v45  ;;  %v2344_v42 = vld [vmem:[#allocation11 + $0x7e8] sm:$0xff] }
 0x36f   : > { %4109 = vmatprep.subr.bf16.mxu0 %v5081_v59  ;;  %4232 = vmatprep.subr.bf16.mxu1 %v5083_v61  ;;  %v2311_v59 = vld [vmem:[#allocation11 + $0x6e0] sm:$0xff]  ;;  %v2308_v61 = vld [vmem:[#allocation11 + $0x6c8] sm:$0xff] }
 0x370   : > { %v5129_v9 = vcombine.high %v2307_v5, %v2311_v59  ;;  %v5128_v17 = vcombine.low %v2307_v5, %v2311_v59  ;;  %v5130_v18 = vcombine.low %v2308_v61, %v2312_v37  ;;  %v2351_v5 = vld [vmem:[#allocation11 + $0x820] sm:$0xff]  ;;  %v2348_v59 = vld [vmem:[#allocation11 + $0x808] sm:$0xff] }
 0x372   : > { %4110 = vmatpush1.bf16.msra.mxu0 %v5080_v10  ;;  %4233 = vmatpush1.bf16.msra.mxu1 %v5082_v11  ;;  %v5131_v10 = vcombine.high %v2308_v61, %v2312_v37  ;;  %v2315_v11 = vld [vmem:[#allocation11 + $0x700] sm:$0xff]  ;;  %v2352_v61 = vld [vmem:[#allocation11 + $0x828] sm:$0xff] }
 0x373   : > { %4111 = vmatprep.subr.bf16.mxu0 %v5089_v15  ;;  %4234 = vmatprep.subr.bf16.mxu1 %v5091_v16  ;;  %v2316_v15 = vld [vmem:[#allocation11 + $0x708] sm:$0xff]  ;;  %v5137_v19 = vcombine.high %v2315_v11, %v2319_v12  ;;  %v5136_v30 = vcombine.low %v2315_v11, %v2319_v12 }
 0x374   : > { %v2320_v16 = vld [vmem:[#allocation11 + $0x728] sm:$0xff] }
 0x375   : > { %v5139_v20 = vcombine.high %v2316_v15, %v2320_v16  ;;  %v5138_v29 = vcombine.low %v2316_v15, %v2320_v16  ;;  %v2359_v15 = vld [vmem:[#allocation11 + $0x860] sm:$0xff]  ;;  %v2356_v16 = vld [vmem:[#allocation11 + $0x848] sm:$0xff] }
 0x376   : > { %4112 = vmatpush1.bf16.msra.mxu0 %v5088_v21  ;;  %4235 = vmatpush1.bf16.msra.mxu1 %v5090_v23  ;;  %v2323_v21 = vld [vmem:[#allocation11 + $0x740] sm:$0xff] }
 0x377   : > { %4113 = vmatprep.subr.bf16.mxu0 %v5097_v26  ;;  %4236 = vmatprep.subr.bf16.mxu1 %v5099_v28  ;;  %v2327_v23 = vld [vmem:[#allocation11 + $0x760] sm:$0xff]  ;;  %v2328_v26 = vld [vmem:[#allocation11 + $0x768] sm:$0xff]  ;;  %v5706_v28 = vpop.eup %5705 }
 0x378   : > { %v5145_v31 = vcombine.high %v2323_v21, %v2327_v23  ;;  %v5147_v27 = vcombine.high %v2324_v25, %v2328_v26  ;;  %v5144_v55 = vcombine.low %v2323_v21, %v2327_v23  ;;  %v5146_v36 = vcombine.low %v2324_v25, %v2328_v26  ;;  %v2363_v25 = vld [vmem:[#allocation11 + $0x880] sm:$0xff] }
 0x37a   : > { %4114 = vmatpush1.bf16.msra.mxu0 %v5096_v33  ;;  %4237 = vmatpush1.bf16.msra.mxu1 %v5098_v49  ;;  %v2331_v33 = vld [vmem:[#allocation11 + $0x780] sm:$0xff]  ;;  %v1927_v49 = vrot.slane %v5706_v28, %v6374_v39 }
 0x37b   : > { %4115 = vmatprep.subr.bf16.mxu0 %v5105_v51  ;;  %4238 = vmatprep.subr.bf16.mxu1 %v5107_v53  ;;  %v2332_v51 = vld [vmem:[#allocation11 + $0x788] sm:$0xff]  ;;  %v5153_v38 = vcombine.high %v2331_v33, %v2335_v50  ;;  %v5152_v60 = vcombine.low %v2331_v33, %v2335_v50  ;;  %v2367_v28 = vld [vmem:[#allocation11 + $0x8a0] sm:$0xff] }
 0x37c   : > { %v2336_v53 = vld [vmem:[#allocation11 + $0x7a8] sm:$0xff]  ;;  %v1931_v3 = vmul.f32 %v1927_v49, %v6549_v54  ;;  %v2371_v33 = vld [vmem:[#allocation11 + $0x8c0] sm:$0xff] }
 0x37d   : > { %v5154_v44 = vcombine.low %v2332_v51, %v2336_v53  ;;  %v2375_v50 = vld [vmem:[#allocation11 + $0x8e0] sm:$0xff] }
 0x37e   : > { %4116 = vmatpush1.bf16.msra.mxu0 %v5104_v0  ;;  %4239 = vmatpush1.bf16.msra.mxu1 %v5106_v41  ;;  %v5155_v0 = vcombine.high %v2332_v51, %v2336_v53  ;;  %v2339_v41 = vld [vmem:[#allocation11 + $0x7c0] sm:$0xff]  ;;  %v2372_v51 = vld [vmem:[#allocation11 + $0x8c8] sm:$0xff]  ;;  %v5184_v53 = vcombine.low %v2363_v25, %v2367_v28 }
 0x37f   : > { %4117 = vmatprep.subr.bf16.mxu0 %v5113_v2  ;;  %4240 = vmatprep.subr.bf16.mxu1 %v5115_v58  ;;  %v2343_v2 = vld [vmem:[#allocation11 + $0x7e0] sm:$0xff]  ;;  %v2340_v58 = vld [vmem:[#allocation11 + $0x7c8] sm:$0xff] }
 0x380   : > { %v5161_v45 = vcombine.high %v2339_v41, %v2343_v2  ;;  %v5160_v37 = vcombine.low %v2339_v41, %v2343_v2  ;;  %v2383_v41 = vld [vmem:[#allocation11 + $0x920] sm:$0xff]  ;;  %v2384_v2 = vld [vmem:[#allocation11 + $0x928] sm:$0xff] }
 0x382   : > { %4118 = vmatpush1.bf16.msra.mxu0 %v5112_v52  ;;  %4241 = vmatpush1.bf16.msra.mxu1 %v5114_v56  ;;  %v5163_v52 = vcombine.high %v2340_v58, %v2344_v42  ;;  %v2347_v56 = vld [vmem:[#allocation11 + $0x800] sm:$0xff] }
 0x383   : > { %4119 = vmatprep.subr.bf16.mxu0 %v5121_v62  ;;  %4242 = vmatprep.subr.bf16.mxu1 %v5123_v63  ;;  %v6553_v62 = vrot.slane %v1931_v3, %v6379_v46  ;;  %v2083_v63 = vmul.f32 0.2, %v6526_v4  ;;  %v2380_v3 = vld [vmem:[#allocation11 + $0x908] sm:$0xff] }
 0x385   : > { %v1963_v11 = vmul.f32 %v6553_v62, %v6520_v43  ;;  %v2088_v12 = vsel %vm2078_vm7, %v6526_v4, %v2083_v63  ;;  %v2364_v43 = vld [vmem:[#allocation11 + $0x888] sm:$0xff] }
 0x386   : > { %4120 = vmatpush1.bf16.msra.mxu0 %v5120_v34  ;;  %4243 = vmatpush1.bf16.msra.mxu1 %v5122_v8  ;;  %v5162_v34 = vcombine.low %v2340_v58, %v2344_v42  ;;  %v5169_v8 = vcombine.high %v2347_v56, %v2351_v5  ;;  %v5192_v42 = vcombine.low %v2371_v33, %v2375_v50  ;;  %v2388_v63 = vld [vmem:[#allocation11 + $0x948] sm:$0xff] }
 0x387   : > { %4121 = vmatprep.subr.bf16.mxu0 %v5129_v9  ;;  %4244 = vmatprep.subr.bf16.mxu1 %v5131_v10  ;;  %v5171_v9 = vcombine.high %v2348_v59, %v2352_v61  ;;  %v2355_v10 = vld [vmem:[#allocation11 + $0x840] sm:$0xff]  ;;  %v1992_v26 = vrot.slane %v1963_v11, %v6374_v39  ;;  %v2376_v39 = vld [vmem:[#allocation11 + $0x8e8] sm:$0xff] }
 0x388   : > { %v5177_v21 = vcombine.high %v2355_v10, %v2359_v15  ;;  %v5176_v4 = vcombine.low %v2355_v10, %v2359_v15  ;;  %v2399_v10 = vld [vmem:[#allocation11 + $0x9a0] sm:$0xff]  ;;  %v2396_v11 = vld [vmem:[#allocation11 + $0x988] sm:$0xff] }
 0x389   : > { %v1994_v49 = vrot.slane %v1992_v26, 7  ;;  %v2408_v26 = vld [vmem:[#allocation11 + $0x9e8] sm:$0xff] }
 0x38a   : > { %4122 = vmatpush1.bf16.msra.mxu0 %v5128_v17  ;;  %4245 = vmatpush1.bf16.msra.mxu1 %v5130_v18  ;;  %v2360_v17 = vld [vmem:[#allocation11 + $0x868] sm:$0xff]  ;;  %v5168_v18 = vcombine.low %v2347_v56, %v2351_v5  ;;  %v2391_v56 = vld [vmem:[#allocation11 + $0x960] sm:$0xff] }
 0x38b   : > { %4123 = vmatprep.subr.bf16.mxu0 %v5137_v19  ;;  %4246 = vmatprep.subr.bf16.mxu1 %v5139_v20  ;;  %v5170_v19 = vcombine.low %v2348_v59, %v2352_v61  ;;  %v6560_v20 = vpack.c.bf16 %v2088_v12, %v2088_v12  ;;  %v5179_v23 = vcombine.high %v2356_v16, %v2360_v17  ;;  %v2392_v5 = vld [vmem:[#allocation11 + $0x968] sm:$0xff] }
 0x38c   : > { %v1998_v58 = vsub.f32 %v6549_v54, %v1994_v49  ;;  %v2018_v61 = vrot.slane %v6553_v62, %v6379_v46  ;;  %v2400_v12 = vld [vmem:[#allocation11 + $0x9a8] sm:$0xff]  ;;  %v5210_v62 = vcombine.low %v2388_v63, %v2392_v5  ;;  %v2098_v49 = vld [vmem:[#allocation11 + $0x38] sm:$0xff] }
 0x38e   : > { %4124 = vmatpush1.bf16.msra.mxu0 %v5136_v30  ;;  %4247 = vmatpush1.bf16.msra.mxu1 %v5138_v29  ;;  %v2368_v30 = vld [vmem:[#allocation11 + $0x8a8] sm:$0xff]  ;;  %v5178_v29 = vcombine.low %v2356_v16, %v2360_v17  ;;  %v2045_v59 = vrot.slane %v1998_v58, %v6399_v57  ;;  %v2023_v16 = vmul.f32 %v2018_v61, %v6488_v22 }
 0x38f   : > { %4125 = vmatprep.subr.bf16.mxu0 %v5145_v31  ;;  %4248 = vmatprep.subr.bf16.mxu1 %v5147_v27  ;;  %v5185_v31 = vcombine.high %v2363_v25, %v2367_v28  ;;  %v5187_v27 = vcombine.high %v2364_v43, %v2368_v30  ;;  %v2404_v25 = vld [vmem:[#allocation11 + $0x9c8] sm:$0xff] }
 0x390   : > { %v2070_v15 = vrot.slane %v2045_v59, %v6399_v57 }
 0x392   : > { %4126 = vmatpush1.bf16.msra.mxu0 %v5144_v55  ;;  %4249 = vmatpush1.bf16.msra.mxu1 %v5146_v36  ;;  %v5186_v55 = vcombine.low %v2364_v43, %v2368_v30  ;;  %v5193_v36 = vcombine.high %v2371_v33, %v2375_v50  ;;  %v2075_v28 = vadd.f32 %v2070_v15, %v2023_v16  ;;  %v2094_v33 = vld [vmem:[#allocation11 + $0x18] sm:$0xff]  ;;  %v2125_v15 = vld [vmem:[#allocation11 + $0x110] sm:$0xff] }
 0x393   : > { %4127 = vmatprep.subr.bf16.mxu0 %v5153_v38  ;;  %4250 = vmatprep.subr.bf16.mxu1 %v5155_v0  ;;  %v5195_v38 = vcombine.high %v2372_v51, %v2376_v39  ;;  %v2379_v0 = vld [vmem:[#allocation11 + $0x900] sm:$0xff]  ;;  %v5218_v30 = vcombine.low %v2396_v11, %v2400_v12  ;;  %v4918_v58 = vcombine.low %v2094_v33, %v2098_v49  ;;  %v2129_v16 = vld [vmem:[#allocation11 + $0x130] sm:$0xff] }
 0x394   : > { %v5200_v54 = vcombine.low %v2379_v0, %v2383_v41  ;;  %vm2080_vm8 = vcmp.gt.f32.partialorder %v2075_v28, 0.0 }
 0x396   : > { %4128 = vmatpush1.bf16.msra.mxu0 %v5152_v60  ;;  %4251 = vmatpush1.bf16.msra.mxu1 %v5154_v44  ;;  %v5194_v60 = vcombine.low %v2372_v51, %v2376_v39  ;;  %v5201_v44 = vcombine.high %v2379_v0, %v2383_v41  ;;  %v5226_v51 = vcombine.low %v2404_v25, %v2408_v26  ;;  %v2102_v0 = vld [vmem:[#allocation11 + $0x58] sm:$0xff] }
 0x397   : > { %4129 = vmatprep.subr.bf16.mxu0 %v5161_v45  ;;  %4252 = vmatprep.subr.bf16.mxu1 %v5163_v52  ;;  %v5203_v45 = vcombine.high %v2380_v3, %v2384_v2  ;;  %v2387_v52 = vld [vmem:[#allocation11 + $0x940] sm:$0xff]  ;;  %v2106_v41 = vld [vmem:[#allocation11 + $0x78] sm:$0xff] }
 0x398   : > { %v5208_v17 = vcombine.low %v2387_v52, %v2391_v56 }
 0x39a   : > { %4130 = vmatpush1.bf16.msra.mxu0 %v5160_v37  ;;  %4253 = vmatpush1.bf16.msra.mxu1 %v5162_v34  ;;  %v5202_v37 = vcombine.low %v2380_v3, %v2384_v2  ;;  %v5209_v34 = vcombine.high %v2387_v52, %v2391_v56  ;;  %v2110_v52 = vld [vmem:[#allocation11 + $0x98] sm:$0xff] }
 0x39b   : > { %4140 = vmatprep.subr.bf16.mxu0 %v5169_v8  ;;  %4263 = vmatprep.subr.bf16.mxu1 %v5171_v9  ;;  %v5211_v8 = vcombine.high %v2388_v63, %v2392_v5  ;;  %v2395_v9 = vld [vmem:[#allocation11 + $0x980] sm:$0xff]  ;;  %v2114_v56 = vld [vmem:[#allocation11 + $0xb8] sm:$0xff]  ;;  %v4926_v5 = vcombine.low %v2102_v0, %v2106_v41 }
 0x39c   : > { %v5216_v43 = vcombine.low %v2395_v9, %v2399_v10  ;;  %v4935_v61 = vcombine.high %v2110_v52, %v2114_v56 }
 0x39d   : > { %4132 = vmatmul.mubr.bf16.vlgmr.msra.gmra.mrb[12].mxu0 %v6560_v20  ;;  %4255 = vmatmul.mubr.bf16.vlgmr.msra.gmra.mrb[12].mxu1 %v6560_v20 }
 0x39e   : > { %4141 = vmatpush1.bf16.msra.mxu0 %v5168_v18  ;;  %4264 = vmatpush1.bf16.msra.mxu1 %v5170_v19  ;;  %v5217_v18 = vcombine.high %v2395_v9, %v2399_v10  ;;  %v5219_v19 = vcombine.high %v2396_v11, %v2400_v12  ;;  %v4934_v10 = vcombine.low %v2110_v52, %v2114_v56 }
 0x39f   : > { %4142 = vmatprep.subr.bf16.mxu0 %v5177_v21  ;;  %4265 = vmatprep.subr.bf16.mxu1 %v5179_v23  ;;  %v2403_v21 = vld [vmem:[#allocation11 + $0x9c0] sm:$0xff] }
 0x3a0   : > { %4172 = vmatprep.mubr.bf16.mxu0 %v6032_v1  ;;  %4295 = vmatprep.mubr.bf16.mxu1 %v6032_v1  ;;  %v2407_v23 = vld [vmem:[#allocation11 + $0x9e0] sm:$0xff] }
 0x3a1   : > { %v5225_v22 = vcombine.high %v2403_v21, %v2407_v23  ;;  %v5224_v50 = vcombine.low %v2403_v21, %v2407_v23  ;;  %v2133_v23 = vld [vmem:[#allocation11 + $0x150] sm:$0xff] }
 0x3a2   : > { %4143 = vmatpush1.bf16.msra.mxu0 %v5176_v4  ;;  %4266 = vmatpush1.bf16.msra.mxu1 %v5178_v29  ;;  %v5227_v4 = vcombine.high %v2404_v25, %v2408_v26  ;;  %v2093_v29 = vld [vmem:[#allocation11 + $0x10] sm:$0xff]  ;;  %v2134_v26 = vld [vmem:[#allocation11 + $0x158] sm:$0xff] }
 0x3a3   : > { %4144 = vmatprep.subr.bf16.mxu0 %v5185_v31  ;;  %4267 = vmatprep.subr.bf16.mxu1 %v5187_v27  ;;  %v2085_v31 = vmul.f32 0.2, %v2075_v28  ;;  %v2097_v27 = vld [vmem:[#allocation11 + $0x30] sm:$0xff] }
 0x3a4   : > { %v4917_v39 = vcombine.high %v2093_v29, %v2097_v27  ;;  %v4916_v3 = vcombine.low %v2093_v29, %v2097_v27  ;;  %v2137_v25 = vld [vmem:[#allocation11 + $0x170] sm:$0xff]  ;;  %v2142_v27 = vld [vmem:[#allocation11 + $0x198] sm:$0xff] }
 0x3a5   : > { %v2141_v29 = vld [vmem:[#allocation11 + $0x190] sm:$0xff] }
 0x3a6   : > { %4145 = vmatpush1.bf16.msra.mxu0 %v5184_v53  ;;  %4268 = vmatpush1.bf16.msra.mxu1 %v5186_v55  ;;  %v4919_v53 = vcombine.high %v2094_v33, %v2098_v49  ;;  %v2090_v55 = vsel %vm2080_vm8, %v2075_v28, %v2085_v31  ;;  %v2138_v28 = vld [vmem:[#allocation11 + $0x178] sm:$0xff]  ;;  %v2145_v31 = vld [vmem:[#allocation11 + $0x1b0] sm:$0xff]  ;;  %v4956_v49 = vcombine.low %v2133_v23, %v2137_v25 }
 0x3a7   : > { %4146 = vmatprep.subr.bf16.mxu0 %v5193_v36  ;;  %4269 = vmatprep.subr.bf16.mxu1 %v5195_v38  ;;  %v2101_v36 = vld [vmem:[#allocation11 + $0x50] sm:$0xff]  ;;  %v6573_v2 = vpack.c.bf16 %v2090_v55, %v2090_v55  ;;  %v2146_v33 = vld [vmem:[#allocation11 + $0x1b8] sm:$0xff] }
 0x3a8   : > { %v2105_v38 = vld [vmem:[#allocation11 + $0x70] sm:$0xff] }
 0x3a9   : > { %v4924_v63 = vcombine.low %v2101_v36, %v2105_v38  ;;  %v2153_v55 = vld [vmem:[#allocation11 + $0x1f0] sm:$0xff] }
 0x3aa   : > { %4147 = vmatpush1.bf16.msra.mxu0 %v5192_v42  ;;  %4270 = vmatpush1.bf16.msra.mxu1 %v5194_v60  ;;  %v4925_v42 = vcombine.high %v2101_v36, %v2105_v38  ;;  %v4927_v60 = vcombine.high %v2102_v0, %v2106_v41  ;;  %v2150_v36 = vld [vmem:[#allocation11 + $0x1d8] sm:$0xff]  ;;  %v4964_v0 = vcombine.low %v2141_v29, %v2145_v31 }
 0x3ab   : > { %4148 = vmatprep.subr.bf16.mxu0 %v5201_v44  ;;  %4271 = vmatprep.subr.bf16.mxu1 %v5203_v45  ;;  %v2109_v44 = vld [vmem:[#allocation11 + $0x90] sm:$0xff]  ;;  %v2154_v38 = vld [vmem:[#allocation11 + $0x1f8] sm:$0xff]  ;;  %v4966_v41 = vcombine.low %v2142_v27, %v2146_v33 }
 0x3ac   : > { %v2113_v45 = vld [vmem:[#allocation11 + $0xb0] sm:$0xff]  ;;  %v4974_v56 = vcombine.low %v2150_v36, %v2154_v38 }
 0x3ad   : > { %v4933_v59 = vcombine.high %v2109_v44, %v2113_v45  ;;  %v4932_v9 = vcombine.low %v2109_v44, %v2113_v45  ;;  %v2158_v44 = vld [vmem:[#allocation11 + $0x218] sm:$0xff] }
 0x3ae   : > { %4149 = vmatpush1.bf16.msra.mxu0 %v5200_v54  ;;  %4272 = vmatpush1.bf16.msra.mxu1 %v5202_v37  ;;  %v2117_v54 = vld [vmem:[#allocation11 + $0xd0] sm:$0xff]  ;;  %v2162_v45 = vld [vmem:[#allocation11 + $0x238] sm:$0xff] }
 0x3af   : > { %4150 = vmatprep.subr.bf16.mxu0 %v5209_v34  ;;  %4273 = vmatprep.subr.bf16.mxu1 %v5211_v8  ;;  %v2121_v37 = vld [vmem:[#allocation11 + $0xf0] sm:$0xff]  ;;  %v2118_v34 = vld [vmem:[#allocation11 + $0xd8] sm:$0xff] }
 0x3b0   : > { %v2122_v8 = vld [vmem:[#allocation11 + $0xf8] sm:$0xff]  ;;  %v4941_v11 = vcombine.high %v2117_v54, %v2121_v37 }
 0x3b1   : > { %v4943_v12 = vcombine.high %v2118_v34, %v2122_v8 }
 0x3b2   : > { %4151 = vmatpush1.bf16.msra.mxu0 %v5208_v17  ;;  %4274 = vmatpush1.bf16.msra.mxu1 %v5210_v62  ;;  %v2130_v17 = vld [vmem:[#allocation11 + $0x138] sm:$0xff]  ;;  %v4940_v62 = vcombine.low %v2117_v54, %v2121_v37 }
 0x3b3   : > { %4152 = vmatprep.subr.bf16.mxu0 %v5217_v18  ;;  %4275 = vmatprep.subr.bf16.mxu1 %v5219_v19  ;;  %v4942_v18 = vcombine.low %v2118_v34, %v2122_v8  ;;  %v4949_v19 = vcombine.high %v2125_v15, %v2129_v16  ;;  %v2166_v54 = vld [vmem:[#allocation11 + $0x258] sm:$0xff]  ;;  %v4982_v8 = vcombine.low %v2158_v44, %v2162_v45 }
 0x3b4   : > { %v2170_v37 = vld [vmem:[#allocation11 + $0x278] sm:$0xff] }
 0x3b6   : > { %4153 = vmatpush1.bf16.msra.mxu0 %v5216_v43  ;;  %4276 = vmatpush1.bf16.msra.mxu1 %v5218_v30  ;;  %v4948_v43 = vcombine.low %v2125_v15, %v2129_v16  ;;  %v2174_v15 = vld [vmem:[#allocation11 + $0x298] sm:$0xff] }
 0x3b7   : > { %4154 = vmatprep.subr.bf16.mxu0 %v5225_v22  ;;  %4277 = vmatprep.subr.bf16.mxu1 %v5227_v4  ;;  %v4957_v22 = vcombine.high %v2133_v23, %v2137_v25  ;;  %v4959_v4 = vcombine.high %v2134_v26, %v2138_v28  ;;  %v2178_v16 = vld [vmem:[#allocation11 + $0x2b8] sm:$0xff] }
 0x3b8   : > { %v2182_v23 = vld [vmem:[#allocation11 + $0x2d8] sm:$0xff] }
 0x3b9   : > { %v2186_v25 = vld [vmem:[#allocation11 + $0x2f8] sm:$0xff] }
 0x3ba   : > { %4155 = vmatpush1.bf16.msra.mxu0 %v5224_v50  ;;  %4278 = vmatpush1.bf16.msra.mxu1 %v5226_v51  ;;  %v4958_v50 = vcombine.low %v2134_v26, %v2138_v28  ;;  %v4965_v51 = vcombine.high %v2141_v29, %v2145_v31  ;;  %v4998_v28 = vcombine.low %v2174_v15, %v2178_v16  ;;  %v2190_v29 = vld [vmem:[#allocation11 + $0x318] sm:$0xff] }
 0x3bb   : > { %4304 = vmatprep.subr.bf16.mxu0 %v4917_v39  ;;  %4427 = vmatprep.subr.bf16.mxu1 %v4919_v53  ;;  %v4967_v39 = vcombine.high %v2142_v27, %v2146_v33  ;;  %v2149_v53 = vld [vmem:[#allocation11 + $0x1d0] sm:$0xff]  ;;  %v2194_v31 = vld [vmem:[#allocation11 + $0x338] sm:$0xff]  ;;  %v5006_v33 = vcombine.low %v2182_v23, %v2186_v25 }
 0x3bc   : > { %v4972_v52 = vcombine.low %v2149_v53, %v2153_v55 }
 0x3bd   : > { %4173 = vmatmul.mubr.bf16.vlgmr.msra.gmra.mrb[12].mxu0 %v6573_v2  ;;  %4296 = vmatmul.mubr.bf16.vlgmr.msra.gmra.mrb[12].mxu1 %v6573_v2 }
 0x3be   : > { %4305 = vmatpush1.bf16.msra.mxu0 %v4916_v3  ;;  %4336 = vmatprep.mubr.bf16.mxu0 %v6530_v13  ;;  %v4973_v3 = vcombine.high %v2149_v53, %v2153_v55  ;;  %v2198_v53 = vld [vmem:[#allocation11 + $0x358] sm:$0xff] }
 0x3bf   : > { %4428 = vmatpush1.bf16.msra.mxu1 %v4918_v58  ;;  %4459 = vmatprep.mubr.bf16.mxu1 %v6530_v13  ;;  %v2126_v13 = vld [vmem:[#allocation11 + $0x118] sm:$0xff]  ;;  %v4975_v58 = vcombine.high %v2150_v36, %v2154_v38  ;;  %v5014_v38 = vcombine.low %v2190_v29, %v2194_v31 }
 0x3c0   : > { %4306 = vmatprep.subr.bf16.mxu0 %v4925_v42  ;;  %4429 = vmatprep.subr.bf16.mxu1 %v4927_v60  ;;  %v4951_v21 = vcombine.high %v2126_v13, %v2130_v17  ;;  %v4950_v30 = vcombine.low %v2126_v13, %v2130_v17  ;;  %v2157_v42 = vld [vmem:[#allocation11 + $0x210] sm:$0xff]  ;;  %v4990_v17 = vcombine.low %v2166_v54, %v2170_v37  ;;  %v2202_v55 = vld [vmem:[#allocation11 + $0x378] sm:$0xff] }
 0x3c1   : > { %v2161_v60 = vld [vmem:[#allocation11 + $0x230] sm:$0xff] }
 0x3c2   : > { %4307 = vmatpush1.bf16.msra.mxu0 %v4924_v63  ;;  %v4981_v63 = vcombine.high %v2157_v42, %v2161_v60  ;;  %v4980_v34 = vcombine.low %v2157_v42, %v2161_v60  ;;  %v2206_v42 = vld [vmem:[#allocation11 + $0x398] sm:$0xff] }
 0x3c3   : > { %4430 = vmatpush1.bf16.msra.mxu1 %v4926_v5  ;;  %4308 = vmatprep.subr.bf16.mxu0 %v4933_v59  ;;  %v4983_v5 = vcombine.high %v2158_v44, %v2162_v45  ;;  %v2165_v59 = vld [vmem:[#allocation11 + $0x250] sm:$0xff]  ;;  %v2210_v60 = vld [vmem:[#allocation11 + $0x3b8] sm:$0xff]  ;;  %v5022_v45 = vcombine.low %v2198_v53, %v2202_v55 }
 0x3c4   : > { %4431 = vmatprep.subr.bf16.mxu1 %v4935_v61  ;;  %v2169_v61 = vld [vmem:[#allocation11 + $0x270] sm:$0xff] }
 0x3c5   : > { %v4988_v13 = vcombine.low %v2165_v59, %v2169_v61 }
 0x3c6   : > { %4309 = vmatpush1.bf16.msra.mxu0 %v4932_v9  ;;  %v4989_v9 = vcombine.high %v2165_v59, %v2169_v61  ;;  %v2214_v59 = vld [vmem:[#allocation11 + $0x3d8] sm:$0xff] }
 0x3c7   : > { %4432 = vmatpush1.bf16.msra.mxu1 %v4934_v10  ;;  %4310 = vmatprep.subr.bf16.mxu0 %v4941_v11  ;;  %v4991_v10 = vcombine.high %v2166_v54, %v2170_v37  ;;  %v2173_v11 = vld [vmem:[#allocation11 + $0x290] sm:$0xff]  ;;  %v2218_v61 = vld [vmem:[#allocation11 + $0x3f8] sm:$0xff]  ;;  %v5030_v37 = vcombine.low %v2206_v42, %v2210_v60 }
 0x3c8   : > { %4433 = vmatprep.subr.bf16.mxu1 %v4943_v12  ;;  %v2177_v12 = vld [vmem:[#allocation11 + $0x2b0] sm:$0xff] }
 0x3c9   : > { %v4996_v26 = vcombine.low %v2173_v11, %v2177_v12 }
 0x3ca   : > { %4311 = vmatpush1.bf16.msra.mxu0 %v4940_v62  ;;  %v4997_v62 = vcombine.high %v2173_v11, %v2177_v12  ;;  %v2222_v11 = vld [vmem:[#allocation11 + $0x418] sm:$0xff] }
 0x3cb   : > { %4434 = vmatpush1.bf16.msra.mxu1 %v4942_v18  ;;  %4312 = vmatprep.subr.bf16.mxu0 %v4949_v19  ;;  %v4999_v18 = vcombine.high %v2174_v15, %v2178_v16  ;;  %v2181_v19 = vld [vmem:[#allocation11 + $0x2d0] sm:$0xff]  ;;  %v2226_v12 = vld [vmem:[#allocation11 + $0x438] sm:$0xff]  ;;  %v5038_v16 = vcombine.low %v2214_v59, %v2218_v61 }
 0x3cc   : > { %4435 = vmatprep.subr.bf16.mxu1 %v4951_v21  ;;  %v2185_v21 = vld [vmem:[#allocation11 + $0x2f0] sm:$0xff] }
 0x3cd   : > { %v5004_v27 = vcombine.low %v2181_v19, %v2185_v21 }
 0x3ce   : > { %4313 = vmatpush1.bf16.msra.mxu0 %v4948_v43  ;;  %v5005_v43 = vcombine.high %v2181_v19, %v2185_v21  ;;  %v2230_v21 = vld [vmem:[#allocation11 + $0x458] sm:$0xff] }
 0x3cf   : > { %4436 = vmatpush1.bf16.msra.mxu1 %v4950_v30  ;;  %4314 = vmatprep.subr.bf16.mxu0 %v4957_v22  ;;  %v5007_v30 = vcombine.high %v2182_v23, %v2186_v25  ;;  %v2189_v22 = vld [vmem:[#allocation11 + $0x310] sm:$0xff]  ;;  %v2234_v23 = vld [vmem:[#allocation11 + $0x478] sm:$0xff]  ;;  %v5046_v25 = vcombine.low %v2222_v11, %v2226_v12 }
 0x3d0   : > { %4437 = vmatprep.subr.bf16.mxu1 %v4959_v4  ;;  %v2193_v4 = vld [vmem:[#allocation11 + $0x330] sm:$0xff] }
 0x3d1   : > { %v5012_v36 = vcombine.low %v2189_v22, %v2193_v4 }
 0x3d2   : > { %4315 = vmatpush1.bf16.msra.mxu0 %v4956_v49  ;;  %v5013_v49 = vcombine.high %v2189_v22, %v2193_v4  ;;  %v2238_v22 = vld [vmem:[#allocation11 + $0x498] sm:$0xff] }
 0x3d3   : > { %4438 = vmatpush1.bf16.msra.mxu1 %v4958_v50  ;;  %4316 = vmatprep.subr.bf16.mxu0 %v4965_v51  ;;  %v5015_v50 = vcombine.high %v2190_v29, %v2194_v31  ;;  %v2197_v51 = vld [vmem:[#allocation11 + $0x350] sm:$0xff]  ;;  %v2242_v4 = vld [vmem:[#allocation11 + $0x4b8] sm:$0xff]  ;;  %v5054_v31 = vcombine.low %v2230_v21, %v2234_v23 }
 0x3d4   : > { %4439 = vmatprep.subr.bf16.mxu1 %v4967_v39  ;;  %v2201_v39 = vld [vmem:[#allocation11 + $0x370] sm:$0xff] }
 0x3d5   : > { %v5020_v44 = vcombine.low %v2197_v51, %v2201_v39 }
 0x3d6   : > { %4317 = vmatpush1.bf16.msra.mxu0 %v4964_v0  ;;  %v5021_v0 = vcombine.high %v2197_v51, %v2201_v39  ;;  %v2246_v51 = vld [vmem:[#allocation11 + $0x4d8] sm:$0xff] }
 0x3d7   : > { %4440 = vmatpush1.bf16.msra.mxu1 %v4966_v41  ;;  %4318 = vmatprep.subr.bf16.mxu0 %v4973_v3  ;;  %v5023_v41 = vcombine.high %v2198_v53, %v2202_v55  ;;  %v2205_v3 = vld [vmem:[#allocation11 + $0x390] sm:$0xff]  ;;  %v2250_v39 = vld [vmem:[#allocation11 + $0x4f8] sm:$0xff] }
 0x3d8   : > { %4441 = vmatprep.subr.bf16.mxu1 %v4975_v58  ;;  %v2209_v58 = vld [vmem:[#allocation11 + $0x3b0] sm:$0xff] }
 0x3d9   : > { %v5028_v54 = vcombine.low %v2205_v3, %v2209_v58 }
 0x3da   : > { %4319 = vmatpush1.bf16.msra.mxu0 %v4972_v52  ;;  %v5029_v52 = vcombine.high %v2205_v3, %v2209_v58  ;;  %v2258_v3 = vld [vmem:[#allocation11 + $0x538] sm:$0xff]  ;;  %v5070_v58 = vcombine.low %v2246_v51, %v2250_v39 }
 0x3db   : > { %4442 = vmatpush1.bf16.msra.mxu1 %v4974_v56  ;;  %4320 = vmatprep.subr.bf16.mxu0 %v4981_v63  ;;  %v5031_v56 = vcombine.high %v2206_v42, %v2210_v60  ;;  %v2213_v63 = vld [vmem:[#allocation11 + $0x3d0] sm:$0xff] }
 0x3dc   : > { %4443 = vmatprep.subr.bf16.mxu1 %v4983_v5  ;;  %v2217_v5 = vld [vmem:[#allocation11 + $0x3f0] sm:$0xff] }
 0x3dd   : > { %v5036_v15 = vcombine.low %v2213_v63, %v2217_v5 }
 0x3de   : > { %4321 = vmatpush1.bf16.msra.mxu0 %v4980_v34  ;;  %v5037_v34 = vcombine.high %v2213_v63, %v2217_v5 }
 0x3df   : > { %4444 = vmatpush1.bf16.msra.mxu1 %v4982_v8  ;;  %4322 = vmatprep.subr.bf16.mxu0 %v4989_v9  ;;  %v5039_v8 = vcombine.high %v2214_v59, %v2218_v61  ;;  %v2221_v9 = vld [vmem:[#allocation11 + $0x410] sm:$0xff] }
 0x3e0   : > { %4445 = vmatprep.subr.bf16.mxu1 %v4991_v10  ;;  %v2225_v10 = vld [vmem:[#allocation11 + $0x430] sm:$0xff] }
 0x3e1   : > { %v5044_v19 = vcombine.low %v2221_v9, %v2225_v10 }
 0x3e2   : > { %4323 = vmatpush1.bf16.msra.mxu0 %v4988_v13  ;;  %v5045_v13 = vcombine.high %v2221_v9, %v2225_v10 }
 0x3e3   : > { %4446 = vmatpush1.bf16.msra.mxu1 %v4990_v17  ;;  %4324 = vmatprep.subr.bf16.mxu0 %v4997_v62  ;;  %v5047_v17 = vcombine.high %v2222_v11, %v2226_v12  ;;  %v2229_v62 = vld [vmem:[#allocation11 + $0x450] sm:$0xff] }
 0x3e4   : > { %4447 = vmatprep.subr.bf16.mxu1 %v4999_v18  ;;  %v2233_v18 = vld [vmem:[#allocation11 + $0x470] sm:$0xff] }
 0x3e5   : > { %v5052_v29 = vcombine.low %v2229_v62, %v2233_v18 }
 0x3e6   : > { %4325 = vmatpush1.bf16.msra.mxu0 %v4996_v26  ;;  %v5053_v26 = vcombine.high %v2229_v62, %v2233_v18 }
 0x3e7   : > { %4448 = vmatpush1.bf16.msra.mxu1 %v4998_v28  ;;  %4326 = vmatprep.subr.bf16.mxu0 %v5005_v43  ;;  %v2237_v28 = vld [vmem:[#allocation11 + $0x490] sm:$0xff] }
 0x3e8   : > { %4449 = vmatprep.subr.bf16.mxu1 %v5007_v30  ;;  %v2241_v43 = vld [vmem:[#allocation11 + $0x4b0] sm:$0xff]  ;;  %v5055_v30 = vcombine.high %v2230_v21, %v2234_v23 }
 0x3e9   : > { %v5060_v53 = vcombine.low %v2237_v28, %v2241_v43  ;;  %v2285_v23 = vld [vmem:[#allocation11 + $0x610] sm:$0xff] }
 0x3ea   : > { %4327 = vmatpush1.bf16.msra.mxu0 %v5004_v27  ;;  %v5061_v27 = vcombine.high %v2237_v28, %v2241_v43  ;;  %v2290_v28 = vld [vmem:[#allocation11 + $0x638] sm:$0xff] }
 0x3eb   : > { %4450 = vmatpush1.bf16.msra.mxu1 %v5006_v33  ;;  %4328 = vmatprep.subr.bf16.mxu0 %v5013_v49  ;;  %v5063_v33 = vcombine.high %v2238_v22, %v2242_v4  ;;  %v2245_v49 = vld [vmem:[#allocation11 + $0x4d0] sm:$0xff] }
 0x3ec   : > { %4451 = vmatprep.subr.bf16.mxu1 %v5015_v50  ;;  %v2249_v50 = vld [vmem:[#allocation11 + $0x4f0] sm:$0xff] }
 0x3ed   : > { %v5069_v55 = vcombine.high %v2245_v49, %v2249_v50 }
 0x3ee   : > { %4329 = vmatpush1.bf16.msra.mxu0 %v5012_v36  ;;  %v5071_v36 = vcombine.high %v2246_v51, %v2250_v39 }
 0x3ef   : > { %4452 = vmatpush1.bf16.msra.mxu1 %v5014_v38  ;;  %4330 = vmatprep.subr.bf16.mxu0 %v5021_v0  ;;  %v2253_v38 = vld [vmem:[#allocation11 + $0x510] sm:$0xff] }
 0x3f0   : > { %4453 = vmatprep.subr.bf16.mxu1 %v5023_v41  ;;  %v2257_v0 = vld [vmem:[#allocation11 + $0x530] sm:$0xff]  ;;  %v2254_v41 = vld [vmem:[#allocation11 + $0x518] sm:$0xff] }
 0x3f1   : > { %v5077_v42 = vcombine.high %v2253_v38, %v2257_v0  ;;  %v5079_v60 = vcombine.high %v2254_v41, %v2258_v3  ;;  %v5076_v63 = vcombine.low %v2253_v38, %v2257_v0  ;;  %v5078_v5 = vcombine.low %v2254_v41, %v2258_v3 }
 0x3f2   : > { %4331 = vmatpush1.bf16.msra.mxu0 %v5020_v44  ;;  %v2261_v44 = vld [vmem:[#allocation11 + $0x550] sm:$0xff] }
 0x3f3   : > { %4454 = vmatpush1.bf16.msra.mxu1 %v5022_v45  ;;  %4332 = vmatprep.subr.bf16.mxu0 %v5029_v52  ;;  %v2265_v45 = vld [vmem:[#allocation11 + $0x570] sm:$0xff]  ;;  %v2262_v52 = vld [vmem:[#allocation11 + $0x558] sm:$0xff] }
 0x3f4   : > { %4455 = vmatprep.subr.bf16.mxu1 %v5031_v56  ;;  %v2266_v56 = vld [vmem:[#allocation11 + $0x578] sm:$0xff]  ;;  %v5085_v59 = vcombine.high %v2261_v44, %v2265_v45  ;;  %v5084_v9 = vcombine.low %v2261_v44, %v2265_v45 }
 0x3f5   : > { %v5087_v61 = vcombine.high %v2262_v52, %v2266_v56  ;;  %v5086_v10 = vcombine.low %v2262_v52, %v2266_v56 }
 0x3f6   : > { %4333 = vmatpush1.bf16.msra.mxu0 %v5028_v54  ;;  %v2269_v54 = vld [vmem:[#allocation11 + $0x590] sm:$0xff] }
 0x3f7   : > { %4456 = vmatpush1.bf16.msra.mxu1 %v5030_v37  ;;  %4334 = vmatprep.subr.bf16.mxu0 %v5037_v34  ;;  %v2273_v37 = vld [vmem:[#allocation11 + $0x5b0] sm:$0xff]  ;;  %v2270_v34 = vld [vmem:[#allocation11 + $0x598] sm:$0xff] }
 0x3f8   : > { %4457 = vmatprep.subr.bf16.mxu1 %v5039_v8  ;;  %v2274_v8 = vld [vmem:[#allocation11 + $0x5b8] sm:$0xff]  ;;  %v5093_v11 = vcombine.high %v2269_v54, %v2273_v37  ;;  %v5092_v62 = vcombine.low %v2269_v54, %v2273_v37 }
 0x3f9   : > { %v5095_v12 = vcombine.high %v2270_v34, %v2274_v8  ;;  %v5094_v18 = vcombine.low %v2270_v34, %v2274_v8 }
 0x3fa   : > { %4335 = vmatpush1.bf16.msra.mxu0 %v5036_v15  ;;  %v2277_v15 = vld [vmem:[#allocation11 + $0x5d0] sm:$0xff] }
 0x3fb   : > { %4458 = vmatpush1.bf16.msra.mxu1 %v5038_v16  ;;  %4345 = vmatprep.subr.bf16.mxu0 %v5045_v13  ;;  %v2281_v16 = vld [vmem:[#allocation11 + $0x5f0] sm:$0xff]  ;;  %v2278_v13 = vld [vmem:[#allocation11 + $0x5d8] sm:$0xff] }
 0x3fc   : > { %4468 = vmatprep.subr.bf16.mxu1 %v5047_v17  ;;  %v2282_v17 = vld [vmem:[#allocation11 + $0x5f8] sm:$0xff]  ;;  %v5100_v43 = vcombine.low %v2277_v15, %v2281_v16 }
 0x3fd   : > { %4337 = vmatmul.mubr.bf16.vlgmr.msra.gmra.mrb[16].mxu0 %v6532_v14  ;;  %v5103_v21 = vcombine.high %v2278_v13, %v2282_v17 }
 0x3fe   : > { %4460 = vmatmul.mubr.bf16.vlgmr.msra.gmra.mrb[16].mxu1 %v6532_v14  ;;  %4346 = vmatpush1.bf16.msra.mxu0 %v5044_v19  ;;  %v5062_v14 = vcombine.low %v2238_v22, %v2242_v4  ;;  %v5101_v19 = vcombine.high %v2277_v15, %v2281_v16 }
 0x3ff   : > { %4377 = vmatprep.mubr.bf16.mxu0 %v6538_v24  ;;  %4469 = vmatpush1.bf16.msra.mxu1 %v5046_v25  ;;  %v2289_v25 = vld [vmem:[#allocation11 + $0x630] sm:$0xff] }
 0x400   : > { %4500 = vmatprep.mubr.bf16.mxu1 %v6538_v24  ;;  %4347 = vmatprep.subr.bf16.mxu0 %v5053_v26  ;;  %v5068_v24 = vcombine.low %v2245_v49, %v2249_v50  ;;  %v2286_v26 = vld [vmem:[#allocation11 + $0x618] sm:$0xff]  ;;  %v5109_v22 = vcombine.high %v2285_v23, %v2289_v25  ;;  %v5108_v49 = vcombine.low %v2285_v23, %v2289_v25 }
 0x401   : > { %4470 = vmatprep.subr.bf16.mxu1 %v5055_v30  ;;  %v5102_v30 = vcombine.low %v2278_v13, %v2282_v17  ;;  %v5111_v4 = vcombine.high %v2286_v26, %v2290_v28  ;;  %v5110_v50 = vcombine.low %v2286_v26, %v2290_v28 }
 0x402   : > { %4348 = vmatpush1.bf16.msra.mxu0 %v5052_v29  ;;  %v2293_v29 = vld [vmem:[#allocation11 + $0x650] sm:$0xff] }
 0x403   : > { %4471 = vmatpush1.bf16.msra.mxu1 %v5054_v31  ;;  %4349 = vmatprep.subr.bf16.mxu0 %v5061_v27  ;;  %v2297_v31 = vld [vmem:[#allocation11 + $0x670] sm:$0xff]  ;;  %v2294_v27 = vld [vmem:[#allocation11 + $0x658] sm:$0xff] }
 0x404   : > { %4472 = vmatprep.subr.bf16.mxu1 %v5063_v33  ;;  %v2298_v33 = vld [vmem:[#allocation11 + $0x678] sm:$0xff]  ;;  %v5117_v51 = vcombine.high %v2293_v29, %v2297_v31  ;;  %v5116_v38 = vcombine.low %v2293_v29, %v2297_v31 }
 0x405   : > { %v5119_v39 = vcombine.high %v2294_v27, %v2298_v33  ;;  %v5118_v0 = vcombine.low %v2294_v27, %v2298_v33 }
 0x406   : > { %4350 = vmatpush1.bf16.msra.mxu0 %v5060_v53  ;;  %v2301_v53 = vld [vmem:[#allocation11 + $0x690] sm:$0xff] }
 0x407   : > { %4473 = vmatpush1.bf16.msra.mxu1 %v5062_v14  ;;  %4351 = vmatprep.subr.bf16.mxu0 %v5069_v55  ;;  %v2305_v14 = vld [vmem:[#allocation11 + $0x6b0] sm:$0xff]  ;;  %v2302_v55 = vld [vmem:[#allocation11 + $0x698] sm:$0xff] }
 0x408   : > { %4474 = vmatprep.subr.bf16.mxu1 %v5071_v36  ;;  %v2306_v36 = vld [vmem:[#allocation11 + $0x6b8] sm:$0xff]  ;;  %v5125_v41 = vcombine.high %v2301_v53, %v2305_v14  ;;  %v5124_v44 = vcombine.low %v2301_v53, %v2305_v14 }
 0x409   : > { %v5127_v3 = vcombine.high %v2302_v55, %v2306_v36  ;;  %v5126_v45 = vcombine.low %v2302_v55, %v2306_v36 }
 0x40a   : > { %4352 = vmatpush1.bf16.msra.mxu0 %v5068_v24  ;;  %v2309_v24 = vld [vmem:[#allocation11 + $0x6d0] sm:$0xff] }
 0x40b   : > { %4475 = vmatpush1.bf16.msra.mxu1 %v5070_v58  ;;  %4353 = vmatprep.subr.bf16.mxu0 %v5077_v42  ;;  %v2313_v58 = vld [vmem:[#allocation11 + $0x6f0] sm:$0xff]  ;;  %v2310_v42 = vld [vmem:[#allocation11 + $0x6d8] sm:$0xff] }
 0x40c   : > { %4476 = vmatprep.subr.bf16.mxu1 %v5079_v60  ;;  %v2314_v60 = vld [vmem:[#allocation11 + $0x6f8] sm:$0xff]  ;;  %v5133_v52 = vcombine.high %v2309_v24, %v2313_v58  ;;  %v5132_v54 = vcombine.low %v2309_v24, %v2313_v58 }
 0x40d   : > { %v5135_v56 = vcombine.high %v2310_v42, %v2314_v60  ;;  %v5134_v37 = vcombine.low %v2310_v42, %v2314_v60 }
 0x40e   : > { %4354 = vmatpush1.bf16.msra.mxu0 %v5076_v63  ;;  %v2317_v63 = vld [vmem:[#allocation11 + $0x710] sm:$0xff] }
 0x40f   : > { %4477 = vmatpush1.bf16.msra.mxu1 %v5078_v5  ;;  %4355 = vmatprep.subr.bf16.mxu0 %v5085_v59  ;;  %v2321_v5 = vld [vmem:[#allocation11 + $0x730] sm:$0xff]  ;;  %v2318_v59 = vld [vmem:[#allocation11 + $0x718] sm:$0xff] }
 0x410   : > { %4478 = vmatprep.subr.bf16.mxu1 %v5087_v61  ;;  %v2322_v61 = vld [vmem:[#allocation11 + $0x738] sm:$0xff]  ;;  %v5141_v34 = vcombine.high %v2317_v63, %v2321_v5  ;;  %v5140_v15 = vcombine.low %v2317_v63, %v2321_v5 }
 0x411   : > { %v5143_v8 = vcombine.high %v2318_v59, %v2322_v61  ;;  %v5142_v16 = vcombine.low %v2318_v59, %v2322_v61 }
 0x412   : > { %4356 = vmatpush1.bf16.msra.mxu0 %v5084_v9  ;;  %v2325_v9 = vld [vmem:[#allocation11 + $0x750] sm:$0xff] }
 0x413   : > { %4479 = vmatpush1.bf16.msra.mxu1 %v5086_v10  ;;  %4357 = vmatprep.subr.bf16.mxu0 %v5093_v11  ;;  %v2329_v10 = vld [vmem:[#allocation11 + $0x770] sm:$0xff]  ;;  %v2326_v11 = vld [vmem:[#allocation11 + $0x758] sm:$0xff] }
 0x414   : > { %4480 = vmatprep.subr.bf16.mxu1 %v5095_v12  ;;  %v2330_v12 = vld [vmem:[#allocation11 + $0x778] sm:$0xff]  ;;  %v5149_v13 = vcombine.high %v2325_v9, %v2329_v10  ;;  %v5148_v23 = vcombine.low %v2325_v9, %v2329_v10 }
 0x415   : > { %v5151_v17 = vcombine.high %v2326_v11, %v2330_v12  ;;  %v5150_v25 = vcombine.low %v2326_v11, %v2330_v12  ;;  %v2381_v12 = vld [vmem:[#allocation11 + $0x910] sm:$0xff] }
 0x416   : > { %4358 = vmatpush1.bf16.msra.mxu0 %v5092_v62  ;;  %v2333_v62 = vld [vmem:[#allocation11 + $0x790] sm:$0xff] }
 0x417   : > { %4481 = vmatpush1.bf16.msra.mxu1 %v5094_v18  ;;  %4359 = vmatprep.subr.bf16.mxu0 %v5101_v19  ;;  %v2337_v18 = vld [vmem:[#allocation11 + $0x7b0] sm:$0xff]  ;;  %v2334_v19 = vld [vmem:[#allocation11 + $0x798] sm:$0xff] }
 0x418   : > { %4482 = vmatprep.subr.bf16.mxu1 %v5103_v21  ;;  %v2338_v21 = vld [vmem:[#allocation11 + $0x7b8] sm:$0xff]  ;;  %v5157_v26 = vcombine.high %v2333_v62, %v2337_v18  ;;  %v5156_v29 = vcombine.low %v2333_v62, %v2337_v18 }
 0x419   : > { %v5159_v28 = vcombine.high %v2334_v19, %v2338_v21  ;;  %v5158_v31 = vcombine.low %v2334_v19, %v2338_v21  ;;  %v2389_v19 = vld [vmem:[#allocation11 + $0x950] sm:$0xff] }
 0x41a   : > { %4360 = vmatpush1.bf16.msra.mxu0 %v5100_v43  ;;  %v2341_v43 = vld [vmem:[#allocation11 + $0x7d0] sm:$0xff] }
 0x41b   : > { %4483 = vmatpush1.bf16.msra.mxu1 %v5102_v30  ;;  %4361 = vmatprep.subr.bf16.mxu0 %v5109_v22  ;;  %v2345_v30 = vld [vmem:[#allocation11 + $0x7f0] sm:$0xff]  ;;  %v2342_v22 = vld [vmem:[#allocation11 + $0x7d8] sm:$0xff] }
 0x41c   : > { %4484 = vmatprep.subr.bf16.mxu1 %v5111_v4  ;;  %v2346_v4 = vld [vmem:[#allocation11 + $0x7f8] sm:$0xff]  ;;  %v5165_v27 = vcombine.high %v2341_v43, %v2345_v30  ;;  %v5164_v53 = vcombine.low %v2341_v43, %v2345_v30  ;;  %v2393_v21 = vld [vmem:[#allocation11 + $0x970] sm:$0xff] }
 0x41d   : > { %v5167_v33 = vcombine.high %v2342_v22, %v2346_v4  ;;  %v5166_v14 = vcombine.low %v2342_v22, %v2346_v4  ;;  %v5213_v43 = vcombine.high %v2389_v19, %v2393_v21  ;;  %v2397_v22 = vld [vmem:[#allocation11 + $0x990] sm:$0xff] }
 0x41e   : > { %4362 = vmatpush1.bf16.msra.mxu0 %v5108_v49  ;;  %v2349_v49 = vld [vmem:[#allocation11 + $0x810] sm:$0xff] }
 0x41f   : > { %4485 = vmatpush1.bf16.msra.mxu1 %v5110_v50  ;;  %4363 = vmatprep.subr.bf16.mxu0 %v5117_v51  ;;  %v2353_v50 = vld [vmem:[#allocation11 + $0x830] sm:$0xff]  ;;  %v2350_v51 = vld [vmem:[#allocation11 + $0x818] sm:$0xff] }
 0x420   : > { %4486 = vmatprep.subr.bf16.mxu1 %v5119_v39  ;;  %v2354_v39 = vld [vmem:[#allocation11 + $0x838] sm:$0xff]  ;;  %v5173_v55 = vcombine.high %v2349_v49, %v2353_v50  ;;  %v5172_v24 = vcombine.low %v2349_v49, %v2353_v50  ;;  %v2401_v4 = vld [vmem:[#allocation11 + $0x9b0] sm:$0xff] }
 0x421   : > { %v5175_v36 = vcombine.high %v2350_v51, %v2354_v39  ;;  %v5174_v58 = vcombine.low %v2350_v51, %v2354_v39  ;;  %v5221_v49 = vcombine.high %v2397_v22, %v2401_v4  ;;  %v2405_v51 = vld [vmem:[#allocation11 + $0x9d0] sm:$0xff] }
 0x422   : > { %4364 = vmatpush1.bf16.msra.mxu0 %v5116_v38  ;;  %v2357_v38 = vld [vmem:[#allocation11 + $0x850] sm:$0xff] }
 0x423   : > { %4487 = vmatpush1.bf16.msra.mxu1 %v5118_v0  ;;  %4365 = vmatprep.subr.bf16.mxu0 %v5125_v41  ;;  %v2361_v0 = vld [vmem:[#allocation11 + $0x870] sm:$0xff]  ;;  %v2358_v41 = vld [vmem:[#allocation11 + $0x858] sm:$0xff] }
 0x424   : > { %4488 = vmatprep.subr.bf16.mxu1 %v5127_v3  ;;  %v2362_v3 = vld [vmem:[#allocation11 + $0x878] sm:$0xff]  ;;  %v5181_v42 = vcombine.high %v2357_v38, %v2361_v0  ;;  %v5180_v63 = vcombine.low %v2357_v38, %v2361_v0  ;;  %v2409_v39 = vld [vmem:[#allocation11 + $0x9f0] sm:$0xff] }
 0x425   : > { %v5183_v60 = vcombine.high %v2358_v41, %v2362_v3  ;;  %v5182_v5 = vcombine.low %v2358_v41, %v2362_v3  ;;  %v5229_v38 = vcombine.high %v2405_v51, %v2409_v39  ;;  %v5228_v41 = vcombine.low %v2405_v51, %v2409_v39 }
 0x426   : > { %4366 = vmatpush1.bf16.msra.mxu0 %v5124_v44  ;;  %v2365_v44 = vld [vmem:[#allocation11 + $0x890] sm:$0xff] }
 0x427   : > { %4489 = vmatpush1.bf16.msra.mxu1 %v5126_v45  ;;  %4367 = vmatprep.subr.bf16.mxu0 %v5133_v52  ;;  %v2369_v45 = vld [vmem:[#allocation11 + $0x8b0] sm:$0xff]  ;;  %v2366_v52 = vld [vmem:[#allocation11 + $0x898] sm:$0xff] }
 0x428   : > { %4490 = vmatprep.subr.bf16.mxu1 %v5135_v56  ;;  %v2370_v56 = vld [vmem:[#allocation11 + $0x8b8] sm:$0xff]  ;;  %v5189_v59 = vcombine.high %v2365_v44, %v2369_v45  ;;  %v5188_v9 = vcombine.low %v2365_v44, %v2369_v45 }
 0x429   : > { %v5191_v61 = vcombine.high %v2366_v52, %v2370_v56 }
 0x42a   : > { %4368 = vmatpush1.bf16.msra.mxu0 %v5132_v54  ;;  %v2373_v54 = vld [vmem:[#allocation11 + $0x8d0] sm:$0xff] }
 0x42b   : > { %4491 = vmatpush1.bf16.msra.mxu1 %v5134_v37  ;;  %4369 = vmatprep.subr.bf16.mxu0 %v5141_v34  ;;  %v2377_v37 = vld [vmem:[#allocation11 + $0x8f0] sm:$0xff]  ;;  %v2374_v34 = vld [vmem:[#allocation11 + $0x8d8] sm:$0xff] }
 0x42c   : > { %4492 = vmatprep.subr.bf16.mxu1 %v5143_v8  ;;  %v2378_v8 = vld [vmem:[#allocation11 + $0x8f8] sm:$0xff]  ;;  %v5197_v10 = vcombine.high %v2373_v54, %v2377_v37 }
 0x42d   : > { %v5199_v11 = vcombine.high %v2374_v34, %v2378_v8  ;;  %v5198_v62 = vcombine.low %v2374_v34, %v2378_v8 }
 0x42e   : > { %4370 = vmatpush1.bf16.msra.mxu0 %v5140_v15  ;;  %v2385_v15 = vld [vmem:[#allocation11 + $0x930] sm:$0xff] }
 0x42f   : > { %4493 = vmatpush1.bf16.msra.mxu1 %v5142_v16  ;;  %4371 = vmatprep.subr.bf16.mxu0 %v5149_v13  ;;  %v2382_v16 = vld [vmem:[#allocation11 + $0x918] sm:$0xff]  ;;  %v5205_v18 = vcombine.high %v2381_v12, %v2385_v15 }
 0x430   : > { %4494 = vmatprep.subr.bf16.mxu1 %v5151_v17  ;;  %v2386_v13 = vld [vmem:[#allocation11 + $0x938] sm:$0xff]  ;;  %v5196_v17 = vcombine.low %v2373_v54, %v2377_v37 }
 0x432   : > { %4372 = vmatpush1.bf16.msra.mxu0 %v5148_v23  ;;  %v2390_v23 = vld [vmem:[#allocation11 + $0x958] sm:$0xff] }
 0x433   : > { %4495 = vmatpush1.bf16.msra.mxu1 %v5150_v25  ;;  %4373 = vmatprep.subr.bf16.mxu0 %v5157_v26  ;;  %v2394_v25 = vld [vmem:[#allocation11 + $0x978] sm:$0xff]  ;;  %v5204_v26 = vcombine.low %v2381_v12, %v2385_v15 }
 0x434   : > { %4496 = vmatprep.subr.bf16.mxu1 %v5159_v28  ;;  %v5206_v28 = vcombine.low %v2382_v16, %v2386_v13  ;;  %v5215_v30 = vcombine.high %v2390_v23, %v2394_v25 }
 0x436   : > { %4374 = vmatpush1.bf16.msra.mxu0 %v5156_v29  ;;  %v2398_v29 = vld [vmem:[#allocation11 + $0x998] sm:$0xff] }
 0x437   : > { %4497 = vmatpush1.bf16.msra.mxu1 %v5158_v31  ;;  %4375 = vmatprep.subr.bf16.mxu0 %v5165_v27  ;;  %v2402_v31 = vld [vmem:[#allocation11 + $0x9b8] sm:$0xff]  ;;  %v5212_v27 = vcombine.low %v2389_v19, %v2393_v21 }
 0x438   : > { %4498 = vmatprep.subr.bf16.mxu1 %v5167_v33  ;;  %v5214_v33 = vcombine.low %v2390_v23, %v2394_v25  ;;  %v5223_v50 = vcombine.high %v2398_v29, %v2402_v31 }
 0x43a   : > { %4376 = vmatpush1.bf16.msra.mxu0 %v5164_v53  ;;  %v2406_v53 = vld [vmem:[#allocation11 + $0x9d8] sm:$0xff] }
 0x43b   : > { %4499 = vmatpush1.bf16.msra.mxu1 %v5166_v14  ;;  %4386 = vmatprep.subr.bf16.mxu0 %v5173_v55  ;;  %v2410_v14 = vld [vmem:[#allocation11 + $0x9f8] sm:$0xff]  ;;  %v5220_v55 = vcombine.low %v2397_v22, %v2401_v4 }
 0x43c   : > { %4509 = vmatprep.subr.bf16.mxu1 %v5175_v36  ;;  %v5222_v36 = vcombine.low %v2398_v29, %v2402_v31  ;;  %v5231_v0 = vcombine.high %v2406_v53, %v2410_v14  ;;  %v5230_v3 = vcombine.low %v2406_v53, %v2410_v14 }
 0x43d   : > { %4378 = vmatmul.mubr.bf16.vlgmr.msra.gmra.mrb[16].mxu0 %v6560_v20 }
 0x43e   : > { %4501 = vmatmul.mubr.bf16.vlgmr.msra.gmra.mrb[16].mxu1 %v6560_v20  ;;  %4387 = vmatpush1.bf16.msra.mxu0 %v5172_v24  ;;  %v5190_v20 = vcombine.low %v2366_v52, %v2370_v56  ;;  %v2411_v24 = vld [vmem:[#allocation13] sm:$0xff] }
 0x43f   : > { %4510 = vmatpush1.bf16.msra.mxu1 %v5174_v58  ;;  %4388 = vmatprep.subr.bf16.mxu0 %v5181_v42  ;;  %v2421_v58 = vrot.slane %v2411_v24, %v6379_v46  ;;  %v2429_v42 = vrot.slane %v2411_v24, %v6382_v47  ;;  %v2433_v44 = vrot.slane %v2411_v24, %v6402_v6 }
 0x440   : > { %4511 = vmatprep.subr.bf16.mxu1 %v5183_v60  ;;  %4418 = vmatprep.mubr.bf16.mxu0 %v6032_v1  ;;  %v2425_v60 = vrot.slane %v2411_v24, %v6399_v57  ;;  %v2437_v19 = vrot.slane %v2411_v24, %v6385_v48  ;;  %v2445_v21 = vrot.slane %v2411_v24, %v1948_v32 }
 0x441   : > { %4541 = vmatprep.mubr.bf16.mxu1 %v6032_v1  ;;  %v5207_v1 = vcombine.high %v2382_v16, %v2386_v13  ;;  %v2441_v23 = vrot.slane %v2411_v24, %v6405_v7  ;;  %v2449_v25 = vrot.slane %v2411_v24, %v2040_v40 }
 0x442   : > { %4389 = vmatpush1.bf16.msra.mxu0 %v5180_v63 }
 0x443   : > { %4512 = vmatpush1.bf16.msra.mxu1 %v5182_v5  ;;  %4390 = vmatprep.subr.bf16.mxu0 %v5189_v59 }
 0x444   : > { %4513 = vmatprep.subr.bf16.mxu1 %v5191_v61 }
 0x446   : > { %4391 = vmatpush1.bf16.msra.mxu0 %v5188_v9 }
 0x447   : > { %4514 = vmatpush1.bf16.msra.mxu1 %v5190_v20  ;;  %4392 = vmatprep.subr.bf16.mxu0 %v5197_v10 }
 0x448   : > { %4515 = vmatprep.subr.bf16.mxu1 %v5199_v11 }
 0x44a   : > { %4393 = vmatpush1.bf16.msra.mxu0 %v5196_v17 }
 0x44b   : > { %4516 = vmatpush1.bf16.msra.mxu1 %v5198_v62  ;;  %4394 = vmatprep.subr.bf16.mxu0 %v5205_v18 }
 0x44c   : > { %4517 = vmatprep.subr.bf16.mxu1 %v5207_v1 }
 0x44e   : > { %4395 = vmatpush1.bf16.msra.mxu0 %v5204_v26 }
 0x44f   : > { %4518 = vmatpush1.bf16.msra.mxu1 %v5206_v28  ;;  %4396 = vmatprep.subr.bf16.mxu0 %v5213_v43 }
 0x450   : > { %4519 = vmatprep.subr.bf16.mxu1 %v5215_v30 }
 0x452   : > { %4397 = vmatpush1.bf16.msra.mxu0 %v5212_v27 }
 0x453   : > { %4520 = vmatpush1.bf16.msra.mxu1 %v5214_v33  ;;  %4398 = vmatprep.subr.bf16.mxu0 %v5221_v49 }
 0x454   : > { %4521 = vmatprep.subr.bf16.mxu1 %v5223_v50 }
 0x456   : > { %4399 = vmatpush1.bf16.msra.mxu0 %v5220_v55 }
 0x457   : > { %4522 = vmatpush1.bf16.msra.mxu1 %v5222_v36  ;;  %4400 = vmatprep.subr.bf16.mxu0 %v5229_v38 }
 0x458   : > { %4523 = vmatprep.subr.bf16.mxu1 %v5231_v0 }
 0x45a   : > { %4401 = vmatpush1.bf16.msra.mxu0 %v5228_v41 }
 0x45b   : > { %4524 = vmatpush1.bf16.msra.mxu1 %v5230_v3 }
 0x45d   : > { %4419 = vmatmul.mubr.bf16.vlgmr.msra.gmra.mrb[16].mxu0 %v6573_v2 }
 0x45e   : > { %4542 = vmatmul.mubr.bf16.vlgmr.msra.gmra.mrb[16].mxu1 %v6573_v2 }
 0x490   : > { %v4174_v45 = vpop.f32.mrb[12].mxu0  ;;  %v4297_v52 = vpop.f32.mrb[12].mxu1 }
 0x491   : > { %v5326_v56 = vadd.f32 %v4174_v45, %v2421_v58  ;;  %v5328_v63 = vadd.f32 %v4297_v52, %v2429_v42  ;;  %v4176_v5 = vpop.f32.mrb[13].mxu0  ;;  %v4299_v59 = vpop.f32.mrb[13].mxu1 }
 0x492   : > { %v5327_v61 = vadd.f32 %v4176_v5, %v2425_v60  ;;  %v5329_v54 = vadd.f32 %v4299_v59, %v2433_v44  ;;  %v4178_v37 = vpop.f32.mrb[14].mxu0  ;;  %v4301_v34 = vpop.f32.mrb[14].mxu1 }
 0x493   : > { %v5232_v2 = vmul.f32 -1.442695, %v5326_v56  ;;  %v5234_v8 = vmul.f32 -1.442695, %v5328_v63  ;;  %v4179_v9 = vpop.f32.mrb[15].mxu0  ;;  %v4302_v46 = vpop.f32.mrb[15].mxu1 }
 0x494   : > { %v5233_v20 = vmul.f32 -1.442695, %v5327_v61  ;;  %v5235_v47 = vmul.f32 -1.442695, %v5329_v54 }
 0x495   : > { %5707 = vpow2.f32 %v5232_v2 }
 0x496   : > { %5709 = vpow2.f32 %v5234_v8 }
 0x497   : > { %5711 = vpow2.f32 %v5233_v20 }
 0x498   : > { %5713 = vpow2.f32 %v5235_v47 }
 0x49f   : > { %v5708_v57 = vpop.eup %5707 }
 0x4a0   : > { %v5710_v6 = vpop.eup %5709  ;;  %v4574_v10 = vadd.f32 1.0, %v5708_v57 }
 0x4a1   : > { %v5712_v11 = vpop.eup %5711  ;;  %v4576_v12 = vadd.f32 1.0, %v5710_v6 }
 0x4a2   : > { %v5714_v15 = vpop.eup %5713  ;;  %5715 = vrcp.f32 %v4574_v10  ;;  %v4575_v16 = vadd.f32 1.0, %v5712_v11 }
 0x4a3   : > { %5717 = vrcp.f32 %v4576_v12  ;;  %v4577_v13 = vadd.f32 1.0, %v5714_v15 }
 0x4a4   : > { %5719 = vrcp.f32 %v4575_v16 }
 0x4a5   : > { %5721 = vrcp.f32 %v4577_v13 }
 0x4ac   : > { %v5716_v17 = vpop.eup %5715 }
 0x4ad   : > { %v5718_v62 = vpop.eup %5717  ;;  %4598 = vst [vmem:[%s6594_s20] sm:$0xff] %v5716_v17 }
 0x4ae   : > { %v5720_v18 = vpop.eup %5719  ;;  %4600 = vst [vmem:[%s6594_s20 + $0x10] sm:$0xff] %v5718_v62 }
 0x4af   : > { %v5722_v1 = vpop.eup %5721  ;;  %4599 = vst [vmem:[%s6594_s20 + $0x8] sm:$0xff] %v5720_v18 }
 0x4b0   : > { %4601 = vst [vmem:[%s6594_s20 + $0x18] sm:$0xff] %v5722_v1 }
 0x530   : > { %v4420_v26 = vpop.f32.mrb[16].mxu0 }
 0x531   : > { %v5330_v28 = vadd.f32 %v4420_v26, %v2437_v19  ;;  %v4543_v43 = vpop.f32.mrb[16].mxu1  ;;  %v4422_v30 = vpop.f32.mrb[17].mxu0 }
 0x532   : > { %v5332_v22 = vadd.f32 %v4543_v43, %v2445_v21  ;;  %v5331_v4 = vadd.f32 %v4422_v30, %v2441_v23  ;;  %v4545_v29 = vpop.f32.mrb[17].mxu1  ;;  %v4424_v31 = vpop.f32.mrb[18].mxu0 }
 0x533   : > { %v5236_v27 = vmul.f32 -1.442695, %v5330_v28  ;;  %v5333_v33 = vadd.f32 %v4545_v29, %v2449_v25  ;;  %v4547_v49 = vpop.f32.mrb[18].mxu1  ;;  %v4425_v48 = vpop.f32.mrb[19].mxu0 }
 0x534   : > { %v5238_v50 = vmul.f32 -1.442695, %v5332_v22  ;;  %v5237_v51 = vmul.f32 -1.442695, %v5331_v4  ;;  %v4548_v32 = vpop.f32.mrb[19].mxu1 }
 0x535   : > { %5723 = vpow2.f32 %v5236_v27  ;;  %v5239_v7 = vmul.f32 -1.442695, %v5333_v33 }
 0x536   : > { %5725 = vpow2.f32 %v5238_v50 }
 0x537   : > { %5727 = vpow2.f32 %v5237_v51 }
 0x538   : > { %5729 = vpow2.f32 %v5239_v7 }
 0x53f   : > { %v5724_v35 = vpop.eup %5723 }
 0x540   : > { %v5726_v40 = vpop.eup %5725  ;;  %v4578_v39 = vadd.f32 1.0, %v5724_v35 }
 0x541   : > { %v5728_v53 = vpop.eup %5727  ;;  %v4580_v14 = vadd.f32 1.0, %v5726_v40 }
 0x542   : > { %v5730_v55 = vpop.eup %5729  ;;  %5731 = vrcp.f32 %v4578_v39  ;;  %v4579_v36 = vadd.f32 1.0, %v5728_v53 }
 0x543   : > { %5733 = vrcp.f32 %v4580_v14  ;;  %v4581_v38 = vadd.f32 1.0, %v5730_v55 }
 0x544   : > { %5735 = vrcp.f32 %v4579_v36 }
 0x545   : > { %5737 = vrcp.f32 %v4581_v38 }
 0x54c   : > { %v5732_v0 = vpop.eup %5731 }
 0x54d   : > { %v5734_v41 = vpop.eup %5733  ;;  %4602 = vst [vmem:[%s6594_s20 + $0x20] sm:$0xff] %v5732_v0 }
 0x54e   : > { %v5736_v3 = vpop.eup %5735  ;;  %4604 = vst [vmem:[%s6594_s20 + $0x30] sm:$0xff] %v5734_v41 }
 0x54f   : > { %v5738_v24 = vpop.eup %5737  ;;  %4603 = vst [vmem:[%s6594_s20 + $0x28] sm:$0xff] %v5736_v3 }
 0x550   : > { %4605 = vst [vmem:[%s6594_s20 + $0x38] sm:$0xff] %v5738_v24 }
 0x551   : > { %5950 = shalt.err (!%p5947_p3)
}
 0x552   : > { %s5951_s16 = scalar_lea.hbm %s6613_s22, 1024  ;;  %s5955_s18 = scalar_lea.hbm %s6665_s7, 4096 }
 0x553   : > { %p5952_p6 = scmp.ne.s32.totalorder %s6613_s22, %s5951_s16  ;;  %p5956_p7 = scmp.lt.u32.totalorder %s6613_s22, %s6665_s7 }
 0x554   : > { %p5957_p0 = scmp.lt.u32.totalorder %s5955_s18, %s5951_s16  ;;  %p5959_p5 = scmp.lt.u32.totalorder %s5951_s16, %s6613_s22 }
 0x555   : > { %p5953_p8 = pnand %p5952_p6, %p6687_p4 }
 0x556   : > { %p5958_p2 = por %p5957_p0, %p5956_p7 }
 0x557   : > { %p5954_p9 = pneg %p5953_p8 }
 0x558   : > { %p5960_p10 = por %p5959_p5, %p5958_p2 }
 0x55a   : > { %p5961_p1 = pnand %p5960_p10, %p5954_p9 }
 0x55c   : > { %5964 = shalt.err (!%p5961_p1)
}
 0x55d   : > { %5400 = dma.vmem_to_hbm [thread:$0]  (%p6687_p4), %s6615_s12, 1024, %s6613_s22, %s4607_s30  }
 0x55e PF: > { %p5442_p11 = scmp.ge.s32.totalorder %s6015_s27, 2  ;;  %s4633_s28 = sand.u32 1, %s6003_s24  }
 0x55f   : > { %p6688_p12 = scmp.ne.s32.totalorder %s6678_s10, 0  ;;  %s4634_s15 = scalar_lea.sflag [#allocation4], %s4633_s28 }
 0x561   : > { %p5426_p13 = pnand %p5442_p11, %p6688_p12 }
 0x563   : > { %5998 = dma.done.wait (!%p5426_p13), %s4634_s15, 1024  }
 0x564   : > { %6000 = vsyncadd (!%p5426_p13), %s4634_s15, 4294966272  ;;  %p23_p3 = scmp.ge.s32.totalorder %s6246_s11, 6   ;;  %s6689_s24 = smov %s6007_s25 }
 0x565   : > { %s6690_s25 = smov %s6011_s26  ;;  %s6691_s26 = smov %s6257_s9 }
 0x566   : > { %s6692_s27 = smov %s6246_s11  ;;  %25 = sbr.rel (!%p23_p3) target bundleno = 10 (0xa), region = 117 }
 0x56d   :  { %4639 = vsyncpa [#allocation3], 1 }
 0x56e   :  { %4641 = vsyncpa [#allocation3 + $0x1], 1 }
 0x56f   :  { %4642 = vsyncpa [#allocation6], 1 }
 0x570   :  { %4643 = vsyncpa [#allocation9], 1 }
 0x571   :  { %4644 = vsyncpa [#allocation12], 1 }
 0x572   :  { %4645 = vsyncpa [#allocation4], 1 }
 0x573   :  { %4647 = vsyncpa [#allocation4 + $0x1], 1 }

</bundles_post_ra>
